<compile_context>
chip_gen: v7x
topology: tpu7x:2x2x1
jax: 0.10.0
libtpu: 0.0.40
codegen_flags: <defaults>
</compile_context>

<pallas_src>
import functools

import jax
import jax.numpy as jnp
from jax.experimental import pallas as pl
from jax.experimental.pallas import tpu as pltpu

L0, L1, L2 = 1024, 512, 256   # size_dict['small']
NCLS = 2                      # classifier classes
NATT = 2                      # attention_c outputs (mu, logvar)


def _round_up(x, m):
    return ((x + m - 1) // m) * m


def _default_tile_rows():
    # 256 rows feed the 256-wide MXU on v6e/v7x; v5e's MXU is 128-wide.
    try:
        kind = jax.devices()[0].device_kind.lower()
        if "v5" in kind:
            return 128
    except Exception:
        pass
    return 256


def bmil_kernel(h_ref, eps_ref, w1_ref, b1_ref, wab_ref, bab_ref,
                wc_ref, bc_ref, wcls_ref, bcls_ref,
                a_out_ref, cls_out_ref, acc_m, acc_s,
                *, n_per_bag, n_bags):
    t = pl.program_id(0)
    tm = h_ref.shape[0]

    @pl.when(t == 0)
    def _init():
        acc_m[...] = jnp.zeros_like(acc_m)
        acc_s[...] = jnp.zeros_like(acc_s)

    # ---- per-instance layers on a [TM, *] row tile (rows from any bag) ----
    # fc1: Linear(1024, 512) + ReLU  (bf16 inputs, f32 MXU accumulation)
    h1 = jnp.maximum(
        jnp.dot(h_ref[...], w1_ref[...], preferred_element_type=jnp.float32)
        + b1_ref[...], 0.0)                                          # [TM, 512] f32
    h1_bf = h1.astype(jnp.bfloat16)      # the only copy used downstream

    # Fused gated attention: one matmul for [attention_a | attention_b].
    ab = jnp.dot(h1_bf, wab_ref[...],
                 preferred_element_type=jnp.float32) + bab_ref[...]  # [TM, 512] f32
    gated = jnp.tanh(ab[:, :L2]) * jax.nn.sigmoid(ab[:, L2:])        # [TM, 256] f32

    # attention_c -> (mu, logvar); reparameterize + sigmoid -> A in (0, 1).
    param = jnp.dot(gated, wc_ref[...],
                    preferred_element_type=jnp.float32) + bc_ref[...]  # [TM, 2] f32
    gaus = param[:, 0:1] + eps_ref[...] * jnp.exp(0.5 * param[:, 1:2])
    att = jax.nn.sigmoid(gaus)                                          # [TM, 1] f32
    a_out_ref[...] = att

    # ---- per-bag attention pooling, streamed across row tiles ----
    # One-hot bag membership of each row of this tile (padding rows -> no bag),
    # scaled by A; built with comparisons only (no integer division).
    row = t * tm + jax.lax.broadcasted_iota(jnp.int32, (tm, n_bags), 0)
    bag_lo = jax.lax.broadcasted_iota(jnp.int32, (tm, n_bags), 1) * n_per_bag
    in_bag = jnp.logical_and(row >= bag_lo, row < bag_lo + n_per_bag)
    w = jnp.where(in_bag, att, 0.0).astype(jnp.bfloat16)                # [TM, B]

    # sum_i A_i * h1_i  and  sum_i A_i  per bag, both on the MXU (f32 accum).
    dn = (((0,), (0,)), ((), ()))
    acc_m[...] += jax.lax.dot_general(w, h1_bf, dn,
                                      preferred_element_type=jnp.float32)
    acc_s[...] += jax.lax.dot_general(w, jnp.ones((tm, 1), jnp.bfloat16), dn,
                                      preferred_element_type=jnp.float32)

    # ---- finalize: M = pooled / sum(A), classifier, softmax (last tile) ----
    @pl.when(t == pl.num_programs(0) - 1)
    def _finalize():
        m = acc_m[...] / acc_s[...]                                     # [B, 512]
        logits = jnp.dot(m, wcls_ref[...],
                         preferred_element_type=jnp.float32) + bcls_ref[...]
        cls_out_ref[:, 0:NCLS] = logits
        cls_out_ref[:, NCLS:2 * NCLS] = jax.nn.softmax(logits, axis=-1)


def bmil_vis_forward(h_bags, eps, params, *, top_k=1, tile_rows=None):
    """Batched forward: B independent bags, each following the original
    single-bag semantics of probabilistic_MIL_Bayes_vis.forward."""
    w1, b1, wa, ba, wb, bb, wc, bc, wcls, bcls = params
    B, N, l0 = h_bags.shape
    assert l0 == L0

    if tile_rows is None:
        tile_rows = _default_tile_rows()
    R = B * N
    TM = min(tile_rows, _round_up(R, 16))    # small problems -> one short tile
    R_pad = _round_up(R, TM)
    num_tiles = R_pad // TM

    # Flatten bags into one [B*N, 1024] row matrix so row tiles fill the MXU
    # regardless of per-bag size; pad to a whole number of tiles (padding rows
    # are masked out of the pooling by the one-hot bag weights).
    h_flat = h_bags.reshape(R, L0).astype(jnp.bfloat16)
    eps_flat = eps.reshape(R, 1).astype(jnp.float32)
    if R_pad != R:
        h_flat = jnp.pad(h_flat, ((0, R_pad - R), (0, 0)))
        eps_flat = jnp.pad(eps_flat, ((0, R_pad - R), (0, 0)))

    # bf16 storage for the two large weights (f32 accumulation in-kernel);
    # the tiny heads stay f32 for precision.
    w1_bf = w1.astype(jnp.bfloat16)
    wab = jnp.concatenate([wa, wb], axis=1).astype(jnp.bfloat16)   # [512, 512]
    bab = jnp.concatenate([ba, bb], axis=1).astype(jnp.float32)    # [1, 512]

    kernel = functools.partial(bmil_kernel, n_per_bag=N, n_bags=B)

    def run(single_buffer_weights):
        def wspec(shape):
            if single_buffer_weights:
                return pl.BlockSpec(shape, lambda t: (0, 0),
                                    pipeline_mode=pl.Buffered(1))
            return pl.BlockSpec(shape, lambda t: (0, 0))

        in_specs = [
            pl.BlockSpec((TM, L0), lambda t: (t, 0)),   # h row tile (streamed)
            pl.BlockSpec((TM, 1), lambda t: (t, 0)),    # eps row tile
            wspec((L0, L1)),                            # w1    (VMEM resident)
            wspec((1, L1)),                             # b1
            wspec((L1, 2 * L2)),                        # wab (fused a|b)
            wspec((1, 2 * L2)),                         # bab
            wspec((L2, NATT)),                          # wc
            wspec((1, NATT)),                           # bc
            wspec((L1, NCLS)),                          # wcls
            wspec((1, NCLS)),                           # bcls
        ]
        out_specs = [
            pl.BlockSpec((TM, 1), lambda t: (t, 0)),         # per-instance A
            pl.BlockSpec((B, 2 * NCLS), lambda t: (0, 0)),   # per-bag logits|probs
        ]
        return pl.pallas_call(
            kernel,
            grid=(num_tiles,),
            in_specs=in_specs,
            out_specs=out_specs,
            out_shape=[
                jax.ShapeDtypeStruct((R_pad, 1), jnp.float32),
                jax.ShapeDtypeStruct((B, 2 * NCLS), jnp.float32),
            ],
            scratch_shapes=[
                pltpu.VMEM((B, L1), jnp.float32),   # sum_i A_i * h1_i per bag
                pltpu.VMEM((B, 1), jnp.float32),    # sum_i A_i        per bag
            ],
            compiler_params=pltpu.CompilerParams(
                # Row-tile axis carries the per-bag reductions -> sequential.
                dimension_semantics=("arbitrary",),
                vmem_limit_bytes=32 * 1024 * 1024),
        )(h_flat, eps_flat, w1_bf, b1.astype(jnp.float32), wab, bab,
          wc.astype(jnp.float32), bc.astype(jnp.float32),
          wcls.astype(jnp.float32), bcls.astype(jnp.float32))

    try:
        a_flat, cls = run(True)
    except Exception:
        # pl.Buffered(1) not supported by this Pallas build -> default buffering.
        a_flat, cls = run(False)

    A = a_flat[:R, 0].reshape(B, 1, N)        # beta_samples.unsqueeze(0) per bag
    logits = cls[:, None, 0:NCLS]             # [B, 1, 2]
    y_probs = cls[:, None, NCLS:2 * NCLS]     # [B, 1, 2]

    # Top-instance glue (tiny, data-dependent -> plain JAX).  As in the
    # original module, logits has a single pooled row per bag, so top-k
    # selects over that length-1 axis.
    def _select(lg, yp):
        idx = jax.lax.top_k(yp[:, 1], top_k)[1]
        ti = lg[idx]
        y_hat = jnp.argmax(ti, axis=1, keepdims=True)
        y_prob = jax.nn.softmax(ti, axis=1)
        return ti, y_prob, y_hat

    top_instance, Y_prob, Y_hat = jax.vmap(_select)(logits, y_probs)
    return top_instance, Y_prob, Y_hat, y_probs, A


def bmil_vis_reference(h_bags, eps, params):
    """Pure-JAX f32 reference of the original torch forward (per bag)."""
    w1, b1, wa, ba, wb, bb, wc, bc, wcls, bcls = params

    def one(h, e):
        h1 = jnp.maximum(h @ w1 + b1, 0.0)
        a = jnp.tanh(h1 @ wa + ba)
        g = jax.nn.sigmoid(h1 @ wb + bb)
        par = (a * g) @ wc + bc
        att = jax.nn.sigmoid(par[:, 0] + e[:, 0] * jnp.exp(0.5 * par[:, 1]))
        m = (att[None, :] @ h1) / jnp.sum(att)
        logits = m @ wcls + bcls
        return att, logits, jax.nn.softmax(logits, axis=1)

    return jax.vmap(one)(h_bags, eps)


if __name__ == "__main__":
    key = jax.random.PRNGKey(0)
    ks = jax.random.split(key, 12)
    B, N = 2, 8   # two small bags of 8 instances each

    def init_linear(kw, kb, fan_in, fan_out):
        limit = 1.0 / jnp.sqrt(jnp.float32(fan_in))
        w = jax.random.uniform(kw, (fan_in, fan_out), jnp.float32, -limit, limit)
        b = jax.random.uniform(kb, (1, fan_out), jnp.float32, -limit, limit)
        return w, b

    w1, b1 = init_linear(ks[0], ks[1], L0, L1)        # first transform
    wa, ba = init_linear(ks[2], ks[3], L1, L2)        # attention_a (LinearVDO)
    wb, bb = init_linear(ks[4], ks[5], L1, L2)        # attention_b (LinearVDO)
    wc, bc = init_linear(ks[6], ks[7], L2, NATT)      # attention_c (LinearVDO)
    wcls, bcls = init_linear(ks[8], ks[9], L1, NCLS)  # classifiers (LinearVDO)
    params = (w1, b1, wa, ba, wb, bb, wc, bc, wcls, bcls)

    h = jax.random.normal(ks[10], (B, N, L0), jnp.float32)
    eps = jax.random.normal(ks[11], (B, N, 1), jnp.float32)  # randn_like(std)

    outs = bmil_vis_forward(h, eps, params, top_k=1)
    jax.block_until_ready(outs)
    top_instance, Y_prob, Y_hat, y_probs, A = outs

    assert top_instance.shape == (B, 1, NCLS)
    assert Y_prob.shape == (B, 1, NCLS)
    assert Y_hat.shape == (B, 1, 1)
    assert y_probs.shape == (B, 1, NCLS)
    assert A.shape == (B, 1, N)

    # Tolerance check against a pure-JAX f32 reference (bf16 weight/activation
    # storage in the kernel -> loose tolerances).
    A_ref, logits_ref, probs_ref = bmil_vis_reference(h, eps, params)
    assert jnp.allclose(A[:, 0, :], A_ref, atol=5e-2), "A mismatch"
    assert jnp.allclose(y_probs[:, 0, :], probs_ref[:, 0, :], atol=5e-2), "probs mismatch"
    assert jnp.allclose(top_instance[:, 0, :], logits_ref[:, 0, :], atol=8e-2), "logits mismatch"

    print("KERNEL_OK")
</pallas_src>

<mosaic_0001>
module attributes {stable_mosaic.version = 11 : i64} {
  func.func @bmil_kernel(%arg0: i32, %arg1: memref<16x1024xbf16, #tpu.memory_space<vmem>>, %arg2: memref<16x1xf32, #tpu.memory_space<vmem>>, %arg3: memref<1024x512xbf16, #tpu.memory_space<vmem>>, %arg4: memref<1x512xf32, #tpu.memory_space<vmem>>, %arg5: memref<512x512xbf16, #tpu.memory_space<vmem>>, %arg6: memref<1x512xf32, #tpu.memory_space<vmem>>, %arg7: memref<256x2xf32, #tpu.memory_space<vmem>>, %arg8: memref<1x2xf32, #tpu.memory_space<vmem>>, %arg9: memref<512x2xf32, #tpu.memory_space<vmem>>, %arg10: memref<1x2xf32, #tpu.memory_space<vmem>>, %arg11: memref<16x1xf32, #tpu.memory_space<vmem>>, %arg12: memref<2x4xf32, #tpu.memory_space<vmem>>, %arg13: memref<2x512xf32, #tpu.memory_space<vmem>>, %arg14: memref<2x1xf32, #tpu.memory_space<vmem>>) attributes {dimension_semantics = [#tpu.dimension_semantics<arbitrary>], iteration_bounds = array<i64: 1>, scalar_prefetch = 0 : i64, scratch_operands = 2 : i64, tpu.core_type = #tpu.core_type<tc>, window_params = [{transform_indices = @transform_0, window_bounds = array<i64: 16, 1024>}, {transform_indices = @transform_1, window_bounds = array<i64: 16, 1>}, {pipeline_mode = #tpu.pipeline_mode<synchronous>, transform_indices = @transform_2, window_bounds = array<i64: 1024, 512>}, {pipeline_mode = #tpu.pipeline_mode<synchronous>, transform_indices = @transform_3, window_bounds = array<i64: 1, 512>}, {pipeline_mode = #tpu.pipeline_mode<synchronous>, transform_indices = @transform_4, window_bounds = array<i64: 512, 512>}, {pipeline_mode = #tpu.pipeline_mode<synchronous>, transform_indices = @transform_5, window_bounds = array<i64: 1, 512>}, {pipeline_mode = #tpu.pipeline_mode<synchronous>, transform_indices = @transform_6, window_bounds = array<i64: 256, 2>}, {pipeline_mode = #tpu.pipeline_mode<synchronous>, transform_indices = @transform_7, window_bounds = array<i64: 1, 2>}, {pipeline_mode = #tpu.pipeline_mode<synchronous>, transform_indices = @transform_8, window_bounds = array<i64: 512, 2>}, {pipeline_mode = #tpu.pipeline_mode<synchronous>, transform_indices = @transform_9, window_bounds = array<i64: 1, 2>}, {transform_indices = @transform_10, window_bounds = array<i64: 16, 1>}, {pipeline_mode = #tpu.pipeline_mode<synchronous>, transform_indices = @transform_11, window_bounds = array<i64: 2, 4>}]} {
    %c0_i32 = arith.constant 0 : i32
    %0 = arith.cmpi eq, %arg0, %c0_i32 : i32
    %1 = arith.extui %0 : i1 to i32
    %c0_i32_0 = arith.constant 0 : i32
    %2 = arith.cmpi ne, %1, %c0_i32_0 : i32
    scf.if %2 {
      %cst_39 = arith.constant 0.000000e+00 : f32
      %74 = vector.broadcast %cst_39 : f32 to vector<2x512xf32>
      %c0_40 = arith.constant 0 : index
      %c0_41 = arith.constant 0 : index
      %75 = vector.load %arg13[%c0_40, %c0_41] : memref<2x512xf32, #tpu.memory_space<vmem>>, vector<2x512xf32>
      tpu.vector_store %arg13[%c0_40, %c0_41], %74 {strides = array<i32>} : memref<2x512xf32, #tpu.memory_space<vmem>>, vector<2x512xf32>,
      %cst_42 = arith.constant 0.000000e+00 : f32
      %76 = vector.broadcast %cst_42 : f32 to vector<2x1xf32>
      %c0_43 = arith.constant 0 : index
      %c0_44 = arith.constant 0 : index
      %77 = vector.load %arg14[%c0_43, %c0_44] : memref<2x1xf32, #tpu.memory_space<vmem>>, vector<2x1xf32>
      tpu.vector_store %arg14[%c0_43, %c0_44], %76 {strides = array<i32>} : memref<2x1xf32, #tpu.memory_space<vmem>>, vector<2x1xf32>,
    } else {
    }
    %c0 = arith.constant 0 : index
    %c0_1 = arith.constant 0 : index
    %3 = vector.load %arg1[%c0, %c0_1] : memref<16x1024xbf16, #tpu.memory_space<vmem>>, vector<16x1024xbf16>
    %c0_2 = arith.constant 0 : index
    %c0_3 = arith.constant 0 : index
    %4 = vector.load %arg3[%c0_2, %c0_3] : memref<1024x512xbf16, #tpu.memory_space<vmem>>, vector<1024x512xbf16>
    %cst = arith.constant dense<0.000000e+00> : vector<16x512xf32>
    %5 = tpu.matmul %3, %4, %cst {dimension_numbers = #tpu.dot_dimension_numbers<[1], [0], [0], [1], [0, 0, 1, 1], [], []>} : vector<16x1024xbf16>, vector<1024x512xbf16>, vector<16x512xf32> -> vector<16x512xf32>
    %c0_4 = arith.constant 0 : index
    %c0_5 = arith.constant 0 : index
    %6 = vector.load %arg4[%c0_4, %c0_5] : memref<1x512xf32, #tpu.memory_space<vmem>>, vector<1x512xf32>
    %7 = vector.broadcast %6 : vector<1x512xf32> to vector<16x512xf32>
    %8 = arith.addf %5, %7 : vector<16x512xf32>
    %cst_6 = arith.constant 0.000000e+00 : f32
    %9 = vector.broadcast %cst_6 : f32 to vector<16x512xf32>
    %10 = arith.maximumf %8, %9 : vector<16x512xf32>
    %11 = arith.truncf %10 : vector<16x512xf32> to vector<16x512xbf16>
    %c0_7 = arith.constant 0 : index
    %c0_8 = arith.constant 0 : index
    %12 = vector.load %arg5[%c0_7, %c0_8] : memref<512x512xbf16, #tpu.memory_space<vmem>>, vector<512x512xbf16>
    %cst_9 = arith.constant dense<0.000000e+00> : vector<16x512xf32>
    %13 = tpu.matmul %11, %12, %cst_9 {dimension_numbers = #tpu.dot_dimension_numbers<[1], [0], [0], [1], [0, 0, 1, 1], [], []>} : vector<16x512xbf16>, vector<512x512xbf16>, vector<16x512xf32> -> vector<16x512xf32>
    %c0_10 = arith.constant 0 : index
    %c0_11 = arith.constant 0 : index
    %14 = vector.load %arg6[%c0_10, %c0_11] : memref<1x512xf32, #tpu.memory_space<vmem>>, vector<1x512xf32>
    %15 = vector.broadcast %14 : vector<1x512xf32> to vector<16x512xf32>
    %16 = arith.addf %13, %15 : vector<16x512xf32>
    %17 = vector.extract_strided_slice %16 {offsets = [0, 0], sizes = [16, 256], strides = [1, 1]} : vector<16x512xf32> to vector<16x256xf32>
    %18 = math.tanh %17 : vector<16x256xf32>
    %19 = vector.extract_strided_slice %16 {offsets = [0, 256], sizes = [16, 256], strides = [1, 1]} : vector<16x512xf32> to vector<16x256xf32>
    %20 = arith.negf %19 : vector<16x256xf32>
    %21 = math.exp %20 : vector<16x256xf32>
    %cst_12 = arith.constant 1.000000e+00 : f32
    %22 = vector.broadcast %cst_12 : f32 to vector<16x256xf32>
    %23 = arith.addf %22, %21 : vector<16x256xf32>
    %24 = arith.divf %22, %23 : vector<16x256xf32>
    %25 = arith.mulf %18, %24 : vector<16x256xf32>
    %c0_13 = arith.constant 0 : index
    %c0_14 = arith.constant 0 : index
    %26 = vector.load %arg7[%c0_13, %c0_14] : memref<256x2xf32, #tpu.memory_space<vmem>>, vector<256x2xf32>
    %cst_15 = arith.constant dense<0.000000e+00> : vector<16x2xf32>
    %27 = tpu.matmul %25, %26, %cst_15 {dimension_numbers = #tpu.dot_dimension_numbers<[1], [0], [0], [1], [0, 0, 1, 1], [], []>} : vector<16x256xf32>, vector<256x2xf32>, vector<16x2xf32> -> vector<16x2xf32>
    %c0_16 = arith.constant 0 : index
    %c0_17 = arith.constant 0 : index
    %28 = vector.load %arg8[%c0_16, %c0_17] : memref<1x2xf32, #tpu.memory_space<vmem>>, vector<1x2xf32>
    %29 = vector.broadcast %28 : vector<1x2xf32> to vector<16x2xf32>
    %30 = arith.addf %27, %29 : vector<16x2xf32>
    %31 = vector.extract_strided_slice %30 {offsets = [0, 0], sizes = [16, 1], strides = [1, 1]} : vector<16x2xf32> to vector<16x1xf32>
    %c0_18 = arith.constant 0 : index
    %c0_19 = arith.constant 0 : index
    %32 = vector.load %arg2[%c0_18, %c0_19] : memref<16x1xf32, #tpu.memory_space<vmem>>, vector<16x1xf32>
    %33 = vector.extract_strided_slice %30 {offsets = [0, 1], sizes = [16, 1], strides = [1, 1]} : vector<16x2xf32> to vector<16x1xf32>
    %cst_20 = arith.constant 5.000000e-01 : f32
    %34 = vector.broadcast %cst_20 : f32 to vector<16x1xf32>
    %35 = arith.mulf %34, %33 : vector<16x1xf32>
    %36 = math.exp %35 : vector<16x1xf32>
    %37 = arith.mulf %32, %36 : vector<16x1xf32>
    %38 = arith.addf %31, %37 : vector<16x1xf32>
    %39 = arith.negf %38 : vector<16x1xf32>
    %40 = math.exp %39 : vector<16x1xf32>
    %cst_21 = arith.constant 1.000000e+00 : f32
    %41 = vector.broadcast %cst_21 : f32 to vector<16x1xf32>
    %42 = arith.addf %41, %40 : vector<16x1xf32>
    %43 = arith.divf %41, %42 : vector<16x1xf32>
    %c0_22 = arith.constant 0 : index
    %c0_23 = arith.constant 0 : index
    %44 = vector.load %arg11[%c0_22, %c0_23] : memref<16x1xf32, #tpu.memory_space<vmem>>, vector<16x1xf32>
    tpu.vector_store %arg11[%c0_22, %c0_23], %43 {strides = array<i32>} : memref<16x1xf32, #tpu.memory_space<vmem>>, vector<16x1xf32>,
    %c16_i32 = arith.constant 16 : i32
    %45 = arith.muli %arg0, %c16_i32 : i32
    %46 = tpu.iota {dimensions = array<i32: 0>} : vector<16x2xi32>
    %47 = vector.broadcast %45 : i32 to vector<16x2xi32>
    %48 = arith.addi %47, %46 : vector<16x2xi32>
    %49 = tpu.iota {dimensions = array<i32: 1>} : vector<16x2xi32>
    %c8_i32 = arith.constant 8 : i32
    %50 = vector.broadcast %c8_i32 : i32 to vector<16x2xi32>
    %51 = arith.muli %49, %50 : vector<16x2xi32>
    %52 = arith.cmpi sge, %48, %51 : vector<16x2xi32>
    %c8_i32_24 = arith.constant 8 : i32
    %53 = vector.broadcast %c8_i32_24 : i32 to vector<16x2xi32>
    %54 = arith.addi %51, %53 : vector<16x2xi32>
    %55 = arith.cmpi slt, %48, %54 : vector<16x2xi32>
    %56 = arith.andi %52, %55 : vector<16x2xi1>
    %cst_25 = arith.constant 0.000000e+00 : f32
    %57 = vector.shape_cast %43 : vector<16x1xf32> to vector<16x1xf32>
    %58 = vector.broadcast %57 : vector<16x1xf32> to vector<16x2xf32>
    %59 = vector.broadcast %cst_25 : f32 to vector<16x2xf32>
    %60 = arith.select %56, %58, %59 : vector<16x2xi1>, vector<16x2xf32>
    %61 = arith.truncf %60 : vector<16x2xf32> to vector<16x2xbf16>
    %c0_26 = arith.constant 0 : index
    %c0_27 = arith.constant 0 : index
    %62 = vector.load %arg13[%c0_26, %c0_27] : memref<2x512xf32, #tpu.memory_space<vmem>>, vector<2x512xf32>
    %cst_28 = arith.constant dense<0.000000e+00> : vector<2x512xf32>
    %63 = tpu.matmul %61, %11, %cst_28 {dimension_numbers = #tpu.dot_dimension_numbers<[0], [0], [1], [1], [0, 1, 1, 1], [], []>} : vector<16x2xbf16>, vector<16x512xbf16>, vector<2x512xf32> -> vector<2x512xf32>
    %64 = arith.addf %62, %63 : vector<2x512xf32>
    %c0_29 = arith.constant 0 : index
    %c0_30 = arith.constant 0 : index
    %65 = vector.load %arg13[%c0_29, %c0_30] : memref<2x512xf32, #tpu.memory_space<vmem>>, vector<2x512xf32>
    tpu.vector_store %arg13[%c0_29, %c0_30], %64 {strides = array<i32>} : memref<2x512xf32, #tpu.memory_space<vmem>>, vector<2x512xf32>,
    %c0_31 = arith.constant 0 : index
    %c0_32 = arith.constant 0 : index
    %66 = vector.load %arg14[%c0_31, %c0_32] : memref<2x1xf32, #tpu.memory_space<vmem>>, vector<2x1xf32>
    %cst_33 = arith.constant 1.000000e+00 : bf16
    %67 = vector.broadcast %cst_33 : bf16 to vector<16x1xbf16>
    %cst_34 = arith.constant dense<0.000000e+00> : vector<2x1xf32>
    %68 = tpu.matmul %61, %67, %cst_34 {dimension_numbers = #tpu.dot_dimension_numbers<[0], [0], [1], [1], [0, 1, 1, 1], [], []>} : vector<16x2xbf16>, vector<16x1xbf16>, vector<2x1xf32> -> vector<2x1xf32>
    %69 = arith.addf %66, %68 : vector<2x1xf32>
    %c0_35 = arith.constant 0 : index
    %c0_36 = arith.constant 0 : index
    %70 = vector.load %arg14[%c0_35, %c0_36] : memref<2x1xf32, #tpu.memory_space<vmem>>, vector<2x1xf32>
    tpu.vector_store %arg14[%c0_35, %c0_36], %69 {strides = array<i32>} : memref<2x1xf32, #tpu.memory_space<vmem>>, vector<2x1xf32>,
    %c0_i32_37 = arith.constant 0 : i32
    %71 = arith.cmpi eq, %arg0, %c0_i32_37 : i32
    %72 = arith.extui %71 : i1 to i32
    %c0_i32_38 = arith.constant 0 : i32
    %73 = arith.cmpi ne, %72, %c0_i32_38 : i32
    scf.if %73 {
      %c0_39 = arith.constant 0 : index
      %c0_40 = arith.constant 0 : index
      %74 = vector.load %arg13[%c0_39, %c0_40] : memref<2x512xf32, #tpu.memory_space<vmem>>, vector<2x512xf32>
      %c0_41 = arith.constant 0 : index
      %c0_42 = arith.constant 0 : index
      %75 = vector.load %arg14[%c0_41, %c0_42] : memref<2x1xf32, #tpu.memory_space<vmem>>, vector<2x1xf32>
      %76 = vector.broadcast %75 : vector<2x1xf32> to vector<2x512xf32>
      %77 = arith.divf %74, %76 : vector<2x512xf32>
      %c0_43 = arith.constant 0 : index
      %c0_44 = arith.constant 0 : index
      %78 = vector.load %arg9[%c0_43, %c0_44] : memref<512x2xf32, #tpu.memory_space<vmem>>, vector<512x2xf32>
      %cst_45 = arith.constant dense<0.000000e+00> : vector<2x2xf32>
      %79 = tpu.matmul %77, %78, %cst_45 {dimension_numbers = #tpu.dot_dimension_numbers<[1], [0], [0], [1], [0, 0, 1, 1], [], []>} : vector<2x512xf32>, vector<512x2xf32>, vector<2x2xf32> -> vector<2x2xf32>
      %c0_46 = arith.constant 0 : index
      %c0_47 = arith.constant 0 : index
      %80 = vector.load %arg10[%c0_46, %c0_47] : memref<1x2xf32, #tpu.memory_space<vmem>>, vector<1x2xf32>
      %81 = vector.broadcast %80 : vector<1x2xf32> to vector<2x2xf32>
      %82 = arith.addf %79, %81 : vector<2x2xf32>
      %c0_48 = arith.constant 0 : index
      %c0_49 = arith.constant 0 : index
      %83 = vector.load %arg12[%c0_48, %c0_49] : memref<2x4xf32, #tpu.memory_space<vmem>>, vector<2x2xf32>
      tpu.vector_store %arg12[%c0_48, %c0_49], %82 {strides = array<i32>} : memref<2x4xf32, #tpu.memory_space<vmem>>, vector<2x2xf32>,
      %cst_50 = arith.constant dense<0xFF800000> : vector<2xf32>
      %84 = vector.multi_reduction <maximumf>, %82, %cst_50 [1] : vector<2x2xf32> to vector<2xf32>
      %cst_51 = arith.constant 0xFF800000 : f32
      %85 = vector.broadcast %cst_51 : f32 to vector<2xf32>
      %86 = arith.maximumf %85, %84 : vector<2xf32>
      %87 = vector.shape_cast %86 : vector<2xf32> to vector<2x1xf32>
      %88 = vector.broadcast %87 : vector<2x1xf32> to vector<2x2xf32>
      %89 = arith.subf %82, %88 : vector<2x2xf32>
      %90 = math.exp %89 : vector<2x2xf32>
      %cst_52 = arith.constant dense<0.000000e+00> : vector<2xf32>
      %91 = vector.multi_reduction <add>, %90, %cst_52 [1] : vector<2x2xf32> to vector<2xf32>
      %92 = vector.shape_cast %91 : vector<2xf32> to vector<2x1xf32>
      %93 = vector.broadcast %92 : vector<2x1xf32> to vector<2x2xf32>
      %94 = arith.divf %90, %93 : vector<2x2xf32>
      %c0_53 = arith.constant 0 : index
      %c2 = arith.constant 2 : index
      %95 = vector.load %arg12[%c0_53, %c2] : memref<2x4xf32, #tpu.memory_space<vmem>>, vector<2x2xf32>
      tpu.vector_store %arg12[%c0_53, %c2], %94 {strides = array<i32>} : memref<2x4xf32, #tpu.memory_space<vmem>>, vector<2x2xf32>,
    } else {
    }
    return
  }
  func.func @transform_0(%arg0: i32) -> (i32, i32) {
    %c0_i32 = arith.constant 0 : i32
    %c0_i32_0 = arith.constant 0 : i32
    return %arg0, %c0_i32 : i32, i32
  }
  func.func @transform_1(%arg0: i32) -> (i32, i32) {
    %c0_i32 = arith.constant 0 : i32
    %c0_i32_0 = arith.constant 0 : i32
    return %arg0, %c0_i32 : i32, i32
  }
  func.func @transform_2(%arg0: i32) -> (i32, i32) {
    %c0_i32 = arith.constant 0 : i32
    %c0_i32_0 = arith.constant 0 : i32
    %c0_i32_1 = arith.constant 0 : i32
    return %c0_i32, %c0_i32_0 : i32, i32
  }
  func.func @transform_3(%arg0: i32) -> (i32, i32) {
    %c0_i32 = arith.constant 0 : i32
    %c0_i32_0 = arith.constant 0 : i32
    %c0_i32_1 = arith.constant 0 : i32
    return %c0_i32, %c0_i32_0 : i32, i32
  }
  func.func @transform_4(%arg0: i32) -> (i32, i32) {
    %c0_i32 = arith.constant 0 : i32
    %c0_i32_0 = arith.constant 0 : i32
    %c0_i32_1 = arith.constant 0 : i32
    return %c0_i32, %c0_i32_0 : i32, i32
  }
  func.func @transform_5(%arg0: i32) -> (i32, i32) {
    %c0_i32 = arith.constant 0 : i32
    %c0_i32_0 = arith.constant 0 : i32
    %c0_i32_1 = arith.constant 0 : i32
    return %c0_i32, %c0_i32_0 : i32, i32
  }
  func.func @transform_6(%arg0: i32) -> (i32, i32) {
    %c0_i32 = arith.constant 0 : i32
    %c0_i32_0 = arith.constant 0 : i32
    %c0_i32_1 = arith.constant 0 : i32
    return %c0_i32, %c0_i32_0 : i32, i32
  }
  func.func @transform_7(%arg0: i32) -> (i32, i32) {
    %c0_i32 = arith.constant 0 : i32
    %c0_i32_0 = arith.constant 0 : i32
    %c0_i32_1 = arith.constant 0 : i32
    return %c0_i32, %c0_i32_0 : i32, i32
  }
  func.func @transform_8(%arg0: i32) -> (i32, i32) {
    %c0_i32 = arith.constant 0 : i32
    %c0_i32_0 = arith.constant 0 : i32
    %c0_i32_1 = arith.constant 0 : i32
    return %c0_i32, %c0_i32_0 : i32, i32
  }
  func.func @transform_9(%arg0: i32) -> (i32, i32) {
    %c0_i32 = arith.constant 0 : i32
    %c0_i32_0 = arith.constant 0 : i32
    %c0_i32_1 = arith.constant 0 : i32
    return %c0_i32, %c0_i32_0 : i32, i32
  }
  func.func @transform_10(%arg0: i32) -> (i32, i32) {
    %c0_i32 = arith.constant 0 : i32
    %c0_i32_0 = arith.constant 0 : i32
    return %arg0, %c0_i32 : i32, i32
  }
  func.func @transform_11(%arg0: i32) -> (i32, i32) {
    %c0_i32 = arith.constant 0 : i32
    %c0_i32_0 = arith.constant 0 : i32
    %c0_i32_1 = arith.constant 0 : i32
    return %c0_i32, %c0_i32_0 : i32, i32
  }
}

module attributes {stable_mosaic.version = 11 : i64} {
  func.func @bmil_kernel(%arg0: i32, %arg1: memref<16x1024xbf16, #tpu.memory_space<vmem>>, %arg2: memref<16x1xf32, #tpu.memory_space<vmem>>, %arg3: memref<1024x512xbf16, #tpu.memory_space<vmem>>, %arg4: memref<1x512xf32, #tpu.memory_space<vmem>>, %arg5: memref<512x512xbf16, #tpu.memory_space<vmem>>, %arg6: memref<1x512xf32, #tpu.memory_space<vmem>>, %arg7: memref<256x2xf32, #tpu.memory_space<vmem>>, %arg8: memref<1x2xf32, #tpu.memory_space<vmem>>, %arg9: memref<512x2xf32, #tpu.memory_space<vmem>>, %arg10: memref<1x2xf32, #tpu.memory_space<vmem>>, %arg11: memref<16x1xf32, #tpu.memory_space<vmem>>, %arg12: memref<2x4xf32, #tpu.memory_space<vmem>>, %arg13: memref<2x512xf32, #tpu.memory_space<vmem>>, %arg14: memref<2x1xf32, #tpu.memory_space<vmem>>) attributes {dimension_semantics = [#tpu.dimension_semantics<arbitrary>], iteration_bounds = array<i64: 1>, scalar_prefetch = 0 : i64, scratch_operands = 2 : i64, tpu.core_type = #tpu.core_type<tc>, window_params = [{transform_indices = @transform_0, window_bounds = array<i64: 16, 1024>}, {transform_indices = @transform_1, window_bounds = array<i64: 16, 1>}, {pipeline_mode = #tpu.pipeline_mode<synchronous>, transform_indices = @transform_2, window_bounds = array<i64: 1024, 512>}, {pipeline_mode = #tpu.pipeline_mode<synchronous>, transform_indices = @transform_3, window_bounds = array<i64: 1, 512>}, {pipeline_mode = #tpu.pipeline_mode<synchronous>, transform_indices = @transform_4, window_bounds = array<i64: 512, 512>}, {pipeline_mode = #tpu.pipeline_mode<synchronous>, transform_indices = @transform_5, window_bounds = array<i64: 1, 512>}, {pipeline_mode = #tpu.pipeline_mode<synchronous>, transform_indices = @transform_6, window_bounds = array<i64: 256, 2>}, {pipeline_mode = #tpu.pipeline_mode<synchronous>, transform_indices = @transform_7, window_bounds = array<i64: 1, 2>}, {pipeline_mode = #tpu.pipeline_mode<synchronous>, transform_indices = @transform_8, window_bounds = array<i64: 512, 2>}, {pipeline_mode = #tpu.pipeline_mode<synchronous>, transform_indices = @transform_9, window_bounds = array<i64: 1, 2>}, {transform_indices = @transform_10, window_bounds = array<i64: 16, 1>}, {pipeline_mode = #tpu.pipeline_mode<synchronous>, transform_indices = @transform_11, window_bounds = array<i64: 2, 4>}]} {
    %c0_i32 = arith.constant 0 : i32
    %0 = arith.cmpi eq, %arg0, %c0_i32 : i32
    %1 = arith.extui %0 : i1 to i32
    %c0_i32_0 = arith.constant 0 : i32
    %2 = arith.cmpi ne, %1, %c0_i32_0 : i32
    scf.if %2 {
      %cst_39 = arith.constant 0.000000e+00 : f32
      %74 = vector.broadcast %cst_39 : f32 to vector<2x512xf32>
      %c0_40 = arith.constant 0 : index
      %c0_41 = arith.constant 0 : index
      %75 = vector.load %arg13[%c0_40, %c0_41] : memref<2x512xf32, #tpu.memory_space<vmem>>, vector<2x512xf32>
      tpu.vector_store %arg13[%c0_40, %c0_41], %74 {strides = array<i32>} : memref<2x512xf32, #tpu.memory_space<vmem>>, vector<2x512xf32>,
      %cst_42 = arith.constant 0.000000e+00 : f32
      %76 = vector.broadcast %cst_42 : f32 to vector<2x1xf32>
      %c0_43 = arith.constant 0 : index
      %c0_44 = arith.constant 0 : index
      %77 = vector.load %arg14[%c0_43, %c0_44] : memref<2x1xf32, #tpu.memory_space<vmem>>, vector<2x1xf32>
      tpu.vector_store %arg14[%c0_43, %c0_44], %76 {strides = array<i32>} : memref<2x1xf32, #tpu.memory_space<vmem>>, vector<2x1xf32>,
    } else {
    }
    %c0 = arith.constant 0 : index
    %c0_1 = arith.constant 0 : index
    %3 = vector.load %arg1[%c0, %c0_1] : memref<16x1024xbf16, #tpu.memory_space<vmem>>, vector<16x1024xbf16>
    %c0_2 = arith.constant 0 : index
    %c0_3 = arith.constant 0 : index
    %4 = vector.load %arg3[%c0_2, %c0_3] : memref<1024x512xbf16, #tpu.memory_space<vmem>>, vector<1024x512xbf16>
    %cst = arith.constant dense<0.000000e+00> : vector<16x512xf32>
    %5 = tpu.matmul %3, %4, %cst {dimension_numbers = #tpu.dot_dimension_numbers<[1], [0], [0], [1], [0, 0, 1, 1], [], []>} : vector<16x1024xbf16>, vector<1024x512xbf16>, vector<16x512xf32> -> vector<16x512xf32>
    %c0_4 = arith.constant 0 : index
    %c0_5 = arith.constant 0 : index
    %6 = vector.load %arg4[%c0_4, %c0_5] : memref<1x512xf32, #tpu.memory_space<vmem>>, vector<1x512xf32>
    %7 = vector.broadcast %6 : vector<1x512xf32> to vector<16x512xf32>
    %8 = arith.addf %5, %7 : vector<16x512xf32>
    %cst_6 = arith.constant 0.000000e+00 : f32
    %9 = vector.broadcast %cst_6 : f32 to vector<16x512xf32>
    %10 = arith.maximumf %8, %9 : vector<16x512xf32>
    %11 = arith.truncf %10 : vector<16x512xf32> to vector<16x512xbf16>
    %c0_7 = arith.constant 0 : index
    %c0_8 = arith.constant 0 : index
    %12 = vector.load %arg5[%c0_7, %c0_8] : memref<512x512xbf16, #tpu.memory_space<vmem>>, vector<512x512xbf16>
    %cst_9 = arith.constant dense<0.000000e+00> : vector<16x512xf32>
    %13 = tpu.matmul %11, %12, %cst_9 {dimension_numbers = #tpu.dot_dimension_numbers<[1], [0], [0], [1], [0, 0, 1, 1], [], []>} : vector<16x512xbf16>, vector<512x512xbf16>, vector<16x512xf32> -> vector<16x512xf32>
    %c0_10 = arith.constant 0 : index
    %c0_11 = arith.constant 0 : index
    %14 = vector.load %arg6[%c0_10, %c0_11] : memref<1x512xf32, #tpu.memory_space<vmem>>, vector<1x512xf32>
    %15 = vector.broadcast %14 : vector<1x512xf32> to vector<16x512xf32>
    %16 = arith.addf %13, %15 : vector<16x512xf32>
    %17 = vector.extract_strided_slice %16 {offsets = [0, 0], sizes = [16, 256], strides = [1, 1]} : vector<16x512xf32> to vector<16x256xf32>
    %18 = math.tanh %17 : vector<16x256xf32>
    %19 = vector.extract_strided_slice %16 {offsets = [0, 256], sizes = [16, 256], strides = [1, 1]} : vector<16x512xf32> to vector<16x256xf32>
    %20 = arith.negf %19 : vector<16x256xf32>
    %21 = math.exp %20 : vector<16x256xf32>
    %cst_12 = arith.constant 1.000000e+00 : f32
    %22 = vector.broadcast %cst_12 : f32 to vector<16x256xf32>
    %23 = arith.addf %22, %21 : vector<16x256xf32>
    %24 = arith.divf %22, %23 : vector<16x256xf32>
    %25 = arith.mulf %18, %24 : vector<16x256xf32>
    %c0_13 = arith.constant 0 : index
    %c0_14 = arith.constant 0 : index
    %26 = vector.load %arg7[%c0_13, %c0_14] : memref<256x2xf32, #tpu.memory_space<vmem>>, vector<256x2xf32>
    %cst_15 = arith.constant dense<0.000000e+00> : vector<16x2xf32>
    %27 = tpu.matmul %25, %26, %cst_15 {dimension_numbers = #tpu.dot_dimension_numbers<[1], [0], [0], [1], [0, 0, 1, 1], [], []>} : vector<16x256xf32>, vector<256x2xf32>, vector<16x2xf32> -> vector<16x2xf32>
    %c0_16 = arith.constant 0 : index
    %c0_17 = arith.constant 0 : index
    %28 = vector.load %arg8[%c0_16, %c0_17] : memref<1x2xf32, #tpu.memory_space<vmem>>, vector<1x2xf32>
    %29 = vector.broadcast %28 : vector<1x2xf32> to vector<16x2xf32>
    %30 = arith.addf %27, %29 : vector<16x2xf32>
    %31 = vector.extract_strided_slice %30 {offsets = [0, 0], sizes = [16, 1], strides = [1, 1]} : vector<16x2xf32> to vector<16x1xf32>
    %c0_18 = arith.constant 0 : index
    %c0_19 = arith.constant 0 : index
    %32 = vector.load %arg2[%c0_18, %c0_19] : memref<16x1xf32, #tpu.memory_space<vmem>>, vector<16x1xf32>
    %33 = vector.extract_strided_slice %30 {offsets = [0, 1], sizes = [16, 1], strides = [1, 1]} : vector<16x2xf32> to vector<16x1xf32>
    %cst_20 = arith.constant 5.000000e-01 : f32
    %34 = vector.broadcast %cst_20 : f32 to vector<16x1xf32>
    %35 = arith.mulf %34, %33 : vector<16x1xf32>
    %36 = math.exp %35 : vector<16x1xf32>
    %37 = arith.mulf %32, %36 : vector<16x1xf32>
    %38 = arith.addf %31, %37 : vector<16x1xf32>
    %39 = arith.negf %38 : vector<16x1xf32>
    %40 = math.exp %39 : vector<16x1xf32>
    %cst_21 = arith.constant 1.000000e+00 : f32
    %41 = vector.broadcast %cst_21 : f32 to vector<16x1xf32>
    %42 = arith.addf %41, %40 : vector<16x1xf32>
    %43 = arith.divf %41, %42 : vector<16x1xf32>
    %c0_22 = arith.constant 0 : index
    %c0_23 = arith.constant 0 : index
    %44 = vector.load %arg11[%c0_22, %c0_23] : memref<16x1xf32, #tpu.memory_space<vmem>>, vector<16x1xf32>
    tpu.vector_store %arg11[%c0_22, %c0_23], %43 {strides = array<i32>} : memref<16x1xf32, #tpu.memory_space<vmem>>, vector<16x1xf32>,
    %c16_i32 = arith.constant 16 : i32
    %45 = arith.muli %arg0, %c16_i32 : i32
    %46 = tpu.iota {dimensions = array<i32: 0>} : vector<16x2xi32>
    %47 = vector.broadcast %45 : i32 to vector<16x2xi32>
    %48 = arith.addi %47, %46 : vector<16x2xi32>
    %49 = tpu.iota {dimensions = array<i32: 1>} : vector<16x2xi32>
    %c8_i32 = arith.constant 8 : i32
    %50 = vector.broadcast %c8_i32 : i32 to vector<16x2xi32>
    %51 = arith.muli %49, %50 : vector<16x2xi32>
    %52 = arith.cmpi sge, %48, %51 : vector<16x2xi32>
    %c8_i32_24 = arith.constant 8 : i32
    %53 = vector.broadcast %c8_i32_24 : i32 to vector<16x2xi32>
    %54 = arith.addi %51, %53 : vector<16x2xi32>
    %55 = arith.cmpi slt, %48, %54 : vector<16x2xi32>
    %56 = arith.andi %52, %55 : vector<16x2xi1>
    %cst_25 = arith.constant 0.000000e+00 : f32
    %57 = vector.shape_cast %43 : vector<16x1xf32> to vector<16x1xf32>
    %58 = vector.broadcast %57 : vector<16x1xf32> to vector<16x2xf32>
    %59 = vector.broadcast %cst_25 : f32 to vector<16x2xf32>
    %60 = arith.select %56, %58, %59 : vector<16x2xi1>, vector<16x2xf32>
    %61 = arith.truncf %60 : vector<16x2xf32> to vector<16x2xbf16>
    %c0_26 = arith.constant 0 : index
    %c0_27 = arith.constant 0 : index
    %62 = vector.load %arg13[%c0_26, %c0_27] : memref<2x512xf32, #tpu.memory_space<vmem>>, vector<2x512xf32>
    %cst_28 = arith.constant dense<0.000000e+00> : vector<2x512xf32>
    %63 = tpu.matmul %61, %11, %cst_28 {dimension_numbers = #tpu.dot_dimension_numbers<[0], [0], [1], [1], [0, 1, 1, 1], [], []>} : vector<16x2xbf16>, vector<16x512xbf16>, vector<2x512xf32> -> vector<2x512xf32>
    %64 = arith.addf %62, %63 : vector<2x512xf32>
    %c0_29 = arith.constant 0 : index
    %c0_30 = arith.constant 0 : index
    %65 = vector.load %arg13[%c0_29, %c0_30] : memref<2x512xf32, #tpu.memory_space<vmem>>, vector<2x512xf32>
    tpu.vector_store %arg13[%c0_29, %c0_30], %64 {strides = array<i32>} : memref<2x512xf32, #tpu.memory_space<vmem>>, vector<2x512xf32>,
    %c0_31 = arith.constant 0 : index
    %c0_32 = arith.constant 0 : index
    %66 = vector.load %arg14[%c0_31, %c0_32] : memref<2x1xf32, #tpu.memory_space<vmem>>, vector<2x1xf32>
    %cst_33 = arith.constant 1.000000e+00 : bf16
    %67 = vector.broadcast %cst_33 : bf16 to vector<16x1xbf16>
    %cst_34 = arith.constant dense<0.000000e+00> : vector<2x1xf32>
    %68 = tpu.matmul %61, %67, %cst_34 {dimension_numbers = #tpu.dot_dimension_numbers<[0], [0], [1], [1], [0, 1, 1, 1], [], []>} : vector<16x2xbf16>, vector<16x1xbf16>, vector<2x1xf32> -> vector<2x1xf32>
    %69 = arith.addf %66, %68 : vector<2x1xf32>
    %c0_35 = arith.constant 0 : index
    %c0_36 = arith.constant 0 : index
    %70 = vector.load %arg14[%c0_35, %c0_36] : memref<2x1xf32, #tpu.memory_space<vmem>>, vector<2x1xf32>
    tpu.vector_store %arg14[%c0_35, %c0_36], %69 {strides = array<i32>} : memref<2x1xf32, #tpu.memory_space<vmem>>, vector<2x1xf32>,
    %c0_i32_37 = arith.constant 0 : i32
    %71 = arith.cmpi eq, %arg0, %c0_i32_37 : i32
    %72 = arith.extui %71 : i1 to i32
    %c0_i32_38 = arith.constant 0 : i32
    %73 = arith.cmpi ne, %72, %c0_i32_38 : i32
    scf.if %73 {
      %c0_39 = arith.constant 0 : index
      %c0_40 = arith.constant 0 : index
      %74 = vector.load %arg13[%c0_39, %c0_40] : memref<2x512xf32, #tpu.memory_space<vmem>>, vector<2x512xf32>
      %c0_41 = arith.constant 0 : index
      %c0_42 = arith.constant 0 : index
      %75 = vector.load %arg14[%c0_41, %c0_42] : memref<2x1xf32, #tpu.memory_space<vmem>>, vector<2x1xf32>
      %76 = vector.broadcast %75 : vector<2x1xf32> to vector<2x512xf32>
      %77 = arith.divf %74, %76 : vector<2x512xf32>
      %c0_43 = arith.constant 0 : index
      %c0_44 = arith.constant 0 : index
      %78 = vector.load %arg9[%c0_43, %c0_44] : memref<512x2xf32, #tpu.memory_space<vmem>>, vector<512x2xf32>
      %cst_45 = arith.constant dense<0.000000e+00> : vector<2x2xf32>
      %79 = tpu.matmul %77, %78, %cst_45 {dimension_numbers = #tpu.dot_dimension_numbers<[1], [0], [0], [1], [0, 0, 1, 1], [], []>} : vector<2x512xf32>, vector<512x2xf32>, vector<2x2xf32> -> vector<2x2xf32>
      %c0_46 = arith.constant 0 : index
      %c0_47 = arith.constant 0 : index
      %80 = vector.load %arg10[%c0_46, %c0_47] : memref<1x2xf32, #tpu.memory_space<vmem>>, vector<1x2xf32>
      %81 = vector.broadcast %80 : vector<1x2xf32> to vector<2x2xf32>
      %82 = arith.addf %79, %81 : vector<2x2xf32>
      %c0_48 = arith.constant 0 : index
      %c0_49 = arith.constant 0 : index
      %83 = vector.load %arg12[%c0_48, %c0_49] : memref<2x4xf32, #tpu.memory_space<vmem>>, vector<2x2xf32>
      tpu.vector_store %arg12[%c0_48, %c0_49], %82 {strides = array<i32>} : memref<2x4xf32, #tpu.memory_space<vmem>>, vector<2x2xf32>,
      %cst_50 = arith.constant dense<0xFF800000> : vector<2xf32>
      %84 = vector.multi_reduction <maximumf>, %82, %cst_50 [1] : vector<2x2xf32> to vector<2xf32>
      %cst_51 = arith.constant 0xFF800000 : f32
      %85 = vector.broadcast %cst_51 : f32 to vector<2xf32>
      %86 = arith.maximumf %85, %84 : vector<2xf32>
      %87 = vector.shape_cast %86 : vector<2xf32> to vector<2x1xf32>
      %88 = vector.broadcast %87 : vector<2x1xf32> to vector<2x2xf32>
      %89 = arith.subf %82, %88 : vector<2x2xf32>
      %90 = math.exp %89 : vector<2x2xf32>
      %cst_52 = arith.constant dense<0.000000e+00> : vector<2xf32>
      %91 = vector.multi_reduction <add>, %90, %cst_52 [1] : vector<2x2xf32> to vector<2xf32>
      %92 = vector.shape_cast %91 : vector<2xf32> to vector<2x1xf32>
      %93 = vector.broadcast %92 : vector<2x1xf32> to vector<2x2xf32>
      %94 = arith.divf %90, %93 : vector<2x2xf32>
      %c0_53 = arith.constant 0 : index
      %c2 = arith.constant 2 : index
      %95 = vector.load %arg12[%c0_53, %c2] : memref<2x4xf32, #tpu.memory_space<vmem>>, vector<2x2xf32>
      tpu.vector_store %arg12[%c0_53, %c2], %94 {strides = array<i32>} : memref<2x4xf32, #tpu.memory_space<vmem>>, vector<2x2xf32>,
    } else {
    }
    return
  }
  func.func @transform_0(%arg0: i32) -> (i32, i32) {
    %c0_i32 = arith.constant 0 : i32
    %c0_i32_0 = arith.constant 0 : i32
    return %arg0, %c0_i32 : i32, i32
  }
  func.func @transform_1(%arg0: i32) -> (i32, i32) {
    %c0_i32 = arith.constant 0 : i32
    %c0_i32_0 = arith.constant 0 : i32
    return %arg0, %c0_i32 : i32, i32
  }
  func.func @transform_2(%arg0: i32) -> (i32, i32) {
    %c0_i32 = arith.constant 0 : i32
    %c0_i32_0 = arith.constant 0 : i32
    %c0_i32_1 = arith.constant 0 : i32
    return %c0_i32, %c0_i32_0 : i32, i32
  }
  func.func @transform_3(%arg0: i32) -> (i32, i32) {
    %c0_i32 = arith.constant 0 : i32
    %c0_i32_0 = arith.constant 0 : i32
    %c0_i32_1 = arith.constant 0 : i32
    return %c0_i32, %c0_i32_0 : i32, i32
  }
  func.func @transform_4(%arg0: i32) -> (i32, i32) {
    %c0_i32 = arith.constant 0 : i32
    %c0_i32_0 = arith.constant 0 : i32
    %c0_i32_1 = arith.constant 0 : i32
    return %c0_i32, %c0_i32_0 : i32, i32
  }
  func.func @transform_5(%arg0: i32) -> (i32, i32) {
    %c0_i32 = arith.constant 0 : i32
    %c0_i32_0 = arith.constant 0 : i32
    %c0_i32_1 = arith.constant 0 : i32
    return %c0_i32, %c0_i32_0 : i32, i32
  }
  func.func @transform_6(%arg0: i32) -> (i32, i32) {
    %c0_i32 = arith.constant 0 : i32
    %c0_i32_0 = arith.constant 0 : i32
    %c0_i32_1 = arith.constant 0 : i32
    return %c0_i32, %c0_i32_0 : i32, i32
  }
  func.func @transform_7(%arg0: i32) -> (i32, i32) {
    %c0_i32 = arith.constant 0 : i32
    %c0_i32_0 = arith.constant 0 : i32
    %c0_i32_1 = arith.constant 0 : i32
    return %c0_i32, %c0_i32_0 : i32, i32
  }
  func.func @transform_8(%arg0: i32) -> (i32, i32) {
    %c0_i32 = arith.constant 0 : i32
    %c0_i32_0 = arith.constant 0 : i32
    %c0_i32_1 = arith.constant 0 : i32
    return %c0_i32, %c0_i32_0 : i32, i32
  }
  func.func @transform_9(%arg0: i32) -> (i32, i32) {
    %c0_i32 = arith.constant 0 : i32
    %c0_i32_0 = arith.constant 0 : i32
    %c0_i32_1 = arith.constant 0 : i32
    return %c0_i32, %c0_i32_0 : i32, i32
  }
  func.func @transform_10(%arg0: i32) -> (i32, i32) {
    %c0_i32 = arith.constant 0 : i32
    %c0_i32_0 = arith.constant 0 : i32
    return %arg0, %c0_i32 : i32, i32
  }
  func.func @transform_11(%arg0: i32) -> (i32, i32) {
    %c0_i32 = arith.constant 0 : i32
    %c0_i32_0 = arith.constant 0 : i32
    %c0_i32_1 = arith.constant 0 : i32
    return %c0_i32, %c0_i32_0 : i32, i32
  }
}

</mosaic_0001>

<bundles_post_ra>
// kernel: tpu_custom_call.1
= control target key start
LH: loop header
LB: loop body
LE: loop exit
PB: predicated region body
PF: predicated region fallthrough
CT: control target
= control target key end

     0   :  { %17 = vsyncpa [#allocation5], 0  ;;  %s5580_s0 = inlined_call_operand.vmem [shape: bf16[16,1024], index: 0, kind: input, shape index: {}]   ;;  %s5581_s1 = inlined_call_operand.vmem [shape: f32[16,1], index: 1, kind: input, shape index: {}]   ;;  %s5582_s2 = inlined_call_operand.hbm [shape: bf16[1024,512], index: 2, kind: input, shape index: {}]   ;;  %s5583_s3 = inlined_call_operand.vmem [shape: f32[1,512], index: 3, kind: input, shape index: {}]   ;;  %s5584_s4 = inlined_call_operand.hbm [shape: bf16[512,512], index: 4, kind: input, shape index: {}]   ;;  %s5585_s5 = inlined_call_operand.vmem [shape: f32[1,512], index: 5, kind: input, shape index: {}]   ;;  %s5586_s6 = inlined_call_operand.vmem [shape: f32[256,2], index: 6, kind: input, shape index: {}]   ;;  %s5587_s7 = inlined_call_operand.vmem [shape: f32[1,2], index: 7, kind: input, shape index: {}]   ;;  %s5588_s8 = inlined_call_operand.vmem [shape: f32[512,2], index: 8, kind: input, shape index: {}]   ;;  %s5589_s9 = inlined_call_operand.vmem [shape: f32[1,2], index: 9, kind: input, shape index: {}]   ;;  %s5590_s10 = inlined_call_operand.vmem [shape: f32[16,1], index: 10, kind: output, shape index: {0}]   ;;  %s5591_s11 = inlined_call_operand.hbm [shape: f32[2,4], index: 11, kind: output, shape index: {1}]  }
   0x1   :  { %18 = vsyncpa [#allocation8], 0 }
   0x2   :  { %19 = vsyncpa [#allocation6], 0  ;;  %s5045_s17 = smov [#allocation4]   ;;  %s4973_s21 = scalar_lea.hbm %s5582_s2, 32768 }
   0x3   :  { %s29_s18 = sshll.u32 %s5045_s17, 4  ;;  %p4974_p0 = scmp.ne.s32.totalorder %s5582_s2, %s4973_s21  ;;  %s30_s18 = int_to_ptr.vmem [resolvable:$true] %s29_s18 }
   0x4   :  { %p4977_p1 = scmp.lt.u32.totalorder %s4973_s21, %s5582_s2 }
   0x6   :  { %p4979_p2 = pnand %p4977_p1, %p4974_p0 }
   0x8   :  { %4982 = shalt.err (!%p4979_p2)
}
   0x9   :  { %s4983_s26 = scalar_lea.vmem %s30_s18, 32768  ;;  %p4988_p4 = scmp.lt.s32.totalorder %s30_s18, %s30_s18 }
   0xa   :  { %p4984_p3 = scmp.ne.s32.totalorder %s30_s18, %s4983_s26  ;;  %p4989_p5 = scmp.lt.s32.totalorder %s4983_s26, %s4983_s26 }
   0xc   :  { %p4990_p6 = por %p4989_p5, %p4988_p4 }
   0xe   :  { %p4991_p7 = pnand %p4990_p6, %p4984_p3 }
  0x10   :  { %4994 = shalt.err (!%p4991_p7)
}
  0x11   :  { %s5046_s27 = smov 256   ;;  %s5047_s28 = smov 16  }
  0x12   :  { %35 = dma.hbm_to_vmem [thread:$0]  %s5582_s2, 32768, %s30_s18, [#allocation5], %s5046_s27, %s5046_s27, %s5047_s28  }
  0x13   :  { %s5048_s12 = smov [#allocation7]   ;;  %s4995_s16 = scalar_lea.hbm %s5584_s4, 16384 }
  0x14   :  { %s43_s13 = sshll.u32 %s5048_s12, 4  ;;  %p4996_p8 = scmp.ne.s32.totalorder %s5584_s4, %s4995_s16  ;;  %s44_s13 = int_to_ptr.vmem [resolvable:$true] %s43_s13 }
  0x15   :  { %p4999_p9 = scmp.lt.u32.totalorder %s4995_s16, %s5584_s4 }
  0x17   :  { %p5001_p10 = pnand %p4999_p9, %p4996_p8 }
  0x19   :  { %5004 = shalt.err (!%p5001_p10)
}
  0x1a   :  { %s5005_s22 = scalar_lea.vmem %s44_s13, 16384  ;;  %p5010_p12 = scmp.lt.s32.totalorder %s44_s13, %s44_s13 }
  0x1b   :  { %p5006_p11 = scmp.ne.s32.totalorder %s44_s13, %s5005_s22  ;;  %p5011_p13 = scmp.lt.s32.totalorder %s5005_s22, %s5005_s22 }
  0x1d   :  { %p5012_p0 = por %p5011_p13, %p5010_p12 }
  0x1f   :  { %p5013_p1 = pnand %p5012_p0, %p5006_p11 }
  0x21   :  { %5016 = shalt.err (!%p5013_p1)
}
  0x22   :  { %49 = dma.hbm_to_vmem [thread:$0]  %s5584_s4, 16384, %s44_s13, [#allocation8], %s5046_s27, %s5046_s27, %s5047_s28  }
  0x23   :  { %5039 = dma.done.wait [#allocation5], 32768  }
  0x24   :  { %5040 = vsyncadd [#allocation5], 4294934528 }
  0x25   :  { %5041 = dma.done.wait [#allocation8], 16384  }
  0x26   :  { %5042 = vsyncadd [#allocation8], 4294950912  ;;  %v4355_v0 = vld [vmem:[#allocation4 + $0x4] ss:$16 sps:$4 sm:$0xff]   ;;  %v4357_v1 = vld [vmem:[#allocation4 + $0xc] ss:$16 sps:$4 sm:$0xff]  }
  0x27   :  { %1681 = vmatprep.subr.bf16.mxu0 %v4355_v0  ;;  %v4359_v2 = vld [vmem:[#allocation4] ss:$16 sps:$4 sm:$0xff]   ;;  %v4360_v3 = vld [vmem:[#allocation4 + $0x8] ss:$16 sps:$4 sm:$0xff]   ;;  %1853 = vmatprep.subr.bf16.mxu1 %v4357_v1  ;;  %v4361_v4 = vld [vmem:[#allocation4 + $0x24] ss:$16 sps:$4 sm:$0xff]  }
  0x28   :  { %1682 = vmatpush1.bf16.msra.mxu0 %v4359_v2  ;;  %1854 = vmatpush1.bf16.msra.mxu1 %v4360_v3  ;;  %v4363_v5 = vld [vmem:[#allocation4 + $0x2c] ss:$16 sps:$4 sm:$0xff]   ;;  %v4365_v6 = vld [vmem:[#allocation4 + $0x20] ss:$16 sps:$4 sm:$0xff]   ;;  %v4366_v7 = vld [vmem:[#allocation4 + $0x28] ss:$16 sps:$4 sm:$0xff]  }
  0x29   :  { %1683 = vmatprep.subr.bf16.mxu0 %v4361_v4  ;;  %1855 = vmatprep.subr.bf16.mxu1 %v4363_v5  ;;  %v4367_v8 = vld [vmem:[#allocation4 + $0x44] ss:$16 sps:$4 sm:$0xff]   ;;  %v4369_v9 = vld [vmem:[#allocation4 + $0x4c] ss:$16 sps:$4 sm:$0xff]   ;;  %v4371_v10 = vld [vmem:[#allocation4 + $0x40] ss:$16 sps:$4 sm:$0xff]  }
  0x2a   :  { %v4372_v11 = vld [vmem:[#allocation4 + $0x48] ss:$16 sps:$4 sm:$0xff]   ;;  %v4373_v12 = vld [vmem:[#allocation4 + $0x64] ss:$16 sps:$4 sm:$0xff]   ;;  %v4375_v13 = vld [vmem:[#allocation4 + $0x6c] ss:$16 sps:$4 sm:$0xff]  }
  0x2b   :  { %v4377_v14 = vld [vmem:[#allocation4 + $0x60] ss:$16 sps:$4 sm:$0xff]   ;;  %v4378_v15 = vld [vmem:[#allocation4 + $0x68] ss:$16 sps:$4 sm:$0xff]   ;;  %v4379_v16 = vld [vmem:[#allocation4 + $0x84] ss:$16 sps:$4 sm:$0xff]  }
  0x2c   :  { %1684 = vmatpush1.bf16.msra.mxu0 %v4365_v6  ;;  %1856 = vmatpush1.bf16.msra.mxu1 %v4366_v7  ;;  %v4381_v17 = vld [vmem:[#allocation4 + $0x8c] ss:$16 sps:$4 sm:$0xff]   ;;  %v4383_v18 = vld [vmem:[#allocation4 + $0x80] ss:$16 sps:$4 sm:$0xff]   ;;  %v4384_v19 = vld [vmem:[#allocation4 + $0x88] ss:$16 sps:$4 sm:$0xff]  }
  0x2d   :  { %1685 = vmatprep.subr.bf16.mxu0 %v4367_v8  ;;  %1857 = vmatprep.subr.bf16.mxu1 %v4369_v9  ;;  %v4385_v20 = vld [vmem:[#allocation4 + $0xa4] ss:$16 sps:$4 sm:$0xff]   ;;  %v4387_v21 = vld [vmem:[#allocation4 + $0xac] ss:$16 sps:$4 sm:$0xff]   ;;  %v4389_v22 = vld [vmem:[#allocation4 + $0xa0] ss:$16 sps:$4 sm:$0xff]  }
  0x2e   :  { %v4390_v23 = vld [vmem:[#allocation4 + $0xa8] ss:$16 sps:$4 sm:$0xff]   ;;  %v4391_v24 = vld [vmem:[#allocation4 + $0xc4] ss:$16 sps:$4 sm:$0xff]   ;;  %v4393_v25 = vld [vmem:[#allocation4 + $0xcc] ss:$16 sps:$4 sm:$0xff]  }
  0x2f   :  { %v4395_v26 = vld [vmem:[#allocation4 + $0xc0] ss:$16 sps:$4 sm:$0xff]   ;;  %v4396_v27 = vld [vmem:[#allocation4 + $0xc8] ss:$16 sps:$4 sm:$0xff]   ;;  %v4397_v28 = vld [vmem:[#allocation4 + $0xe4] ss:$16 sps:$4 sm:$0xff]  }
  0x30   :  { %1686 = vmatpush1.bf16.msra.mxu0 %v4371_v10  ;;  %1858 = vmatpush1.bf16.msra.mxu1 %v4372_v11  ;;  %v4399_v29 = vld [vmem:[#allocation4 + $0xec] ss:$16 sps:$4 sm:$0xff]   ;;  %v4401_v30 = vld [vmem:[#allocation4 + $0xe0] ss:$16 sps:$4 sm:$0xff]   ;;  %v4402_v31 = vld [vmem:[#allocation4 + $0xe8] ss:$16 sps:$4 sm:$0xff]  }
  0x31   :  { %1687 = vmatprep.subr.bf16.mxu0 %v4373_v12  ;;  %1859 = vmatprep.subr.bf16.mxu1 %v4375_v13  ;;  %v4403_v32 = vld [vmem:[#allocation4 + $0x104] ss:$16 sps:$4 sm:$0xff]   ;;  %v4405_v33 = vld [vmem:[#allocation4 + $0x10c] ss:$16 sps:$4 sm:$0xff]   ;;  %v4407_v34 = vld [vmem:[#allocation4 + $0x100] ss:$16 sps:$4 sm:$0xff]  }
  0x32   :  { %v4408_v35 = vld [vmem:[#allocation4 + $0x108] ss:$16 sps:$4 sm:$0xff]   ;;  %v4409_v36 = vld [vmem:[#allocation4 + $0x124] ss:$16 sps:$4 sm:$0xff]   ;;  %v4411_v37 = vld [vmem:[#allocation4 + $0x12c] ss:$16 sps:$4 sm:$0xff]  }
  0x33   :  { %v4413_v38 = vld [vmem:[#allocation4 + $0x120] ss:$16 sps:$4 sm:$0xff]   ;;  %v4414_v39 = vld [vmem:[#allocation4 + $0x128] ss:$16 sps:$4 sm:$0xff]   ;;  %v4415_v40 = vld [vmem:[#allocation4 + $0x144] ss:$16 sps:$4 sm:$0xff]  }
  0x34   :  { %1688 = vmatpush1.bf16.msra.mxu0 %v4377_v14  ;;  %1860 = vmatpush1.bf16.msra.mxu1 %v4378_v15  ;;  %v4417_v41 = vld [vmem:[#allocation4 + $0x14c] ss:$16 sps:$4 sm:$0xff]   ;;  %v4419_v42 = vld [vmem:[#allocation4 + $0x140] ss:$16 sps:$4 sm:$0xff]   ;;  %v4420_v43 = vld [vmem:[#allocation4 + $0x148] ss:$16 sps:$4 sm:$0xff]  }
  0x35   :  { %1689 = vmatprep.subr.bf16.mxu0 %v4379_v16  ;;  %1861 = vmatprep.subr.bf16.mxu1 %v4381_v17  ;;  %v4421_v44 = vld [vmem:[#allocation4 + $0x164] ss:$16 sps:$4 sm:$0xff]   ;;  %v4423_v45 = vld [vmem:[#allocation4 + $0x16c] ss:$16 sps:$4 sm:$0xff]   ;;  %v4425_v48 = vld [vmem:[#allocation4 + $0x160] ss:$16 sps:$4 sm:$0xff]  }
  0x36   :  { %v75_v46 = vld [vmem:[%s5580_s0] sm:$0xff]  ;;  %v4426_v49 = vld [vmem:[#allocation4 + $0x168] ss:$16 sps:$4 sm:$0xff]   ;;  %s5049_s19 = smov 127   ;;  %vm3177_vm0 = vcmask 7168   ;;  %vm73_vm1 = vcmask 1024  }
  0x37   :  { %v79_v47 = vld [vmem:[%s5580_s0 + $0x20] sm:$0xff]  ;;  %v4432_v54 = vld [vmem:[#allocation4 + $0x188] ss:$16 sps:$4 sm:$0xff]   ;;  %vm3227_vm8 = vcmask 130048   ;;  %vm5053_vm9 = vmmov 0   ;;  %vm3633_vm10 = vcmask 9216  }
  0x38   :  { %1690 = vmatpush1.bf16.msra.mxu0 %v4383_v18  ;;  %1862 = vmatpush1.bf16.msra.mxu1 %v4384_v19  ;;  %v3673_v50 = vcombine.high %v75_v46, %v79_v47  ;;  %v4427_v51 = vld [vmem:[#allocation4 + $0x184] ss:$16 sps:$4 sm:$0xff]   ;;  %v4429_v52 = vld [vmem:[#allocation4 + $0x18c] ss:$16 sps:$4 sm:$0xff]   ;;  %v4431_v53 = vld [vmem:[#allocation4 + $0x180] ss:$16 sps:$4 sm:$0xff]   ;;  %v3672_v5 = vcombine.low %v75_v46, %v79_v47 }
  0x39   :  { %1691 = vmatprep.subr.bf16.mxu0 %v4385_v20  ;;  %1863 = vmatprep.subr.bf16.mxu1 %v4387_v21  ;;  %v4433_v55 = vld [vmem:[#allocation4 + $0x1a4] ss:$16 sps:$4 sm:$0xff]   ;;  %v4435_v56 = vld [vmem:[#allocation4 + $0x1ac] ss:$16 sps:$4 sm:$0xff]   ;;  %v4437_v57 = vld [vmem:[#allocation4 + $0x1a0] ss:$16 sps:$4 sm:$0xff]  }
  0x3a   :  { %1713 = vmatprep.mubr.bf16.mxu0 %v3673_v50  ;;  %1885 = vmatprep.mubr.bf16.mxu1 %v3673_v50  ;;  %v4438_v58 = vld [vmem:[#allocation4 + $0x1a8] ss:$16 sps:$4 sm:$0xff]   ;;  %v4439_v59 = vld [vmem:[#allocation4 + $0x1c4] ss:$16 sps:$4 sm:$0xff]   ;;  %v4441_v60 = vld [vmem:[#allocation4 + $0x1cc] ss:$16 sps:$4 sm:$0xff]  }
  0x3b   :  { %v4443_v61 = vld [vmem:[#allocation4 + $0x1c0] ss:$16 sps:$4 sm:$0xff]   ;;  %v4444_v62 = vld [vmem:[#allocation4 + $0x1c8] ss:$16 sps:$4 sm:$0xff]   ;;  %v4445_v63 = vld [vmem:[#allocation4 + $0x1e4] ss:$16 sps:$4 sm:$0xff]  }
  0x3c   :  { %1692 = vmatpush1.bf16.msra.mxu0 %v4389_v22  ;;  %1864 = vmatpush1.bf16.msra.mxu1 %v4390_v23  ;;  %v4447_v0 = vld [vmem:[#allocation4 + $0x1ec] ss:$16 sps:$4 sm:$0xff]   ;;  %v4449_v1 = vld [vmem:[#allocation4 + $0x1e0] ss:$16 sps:$4 sm:$0xff]   ;;  %v4450_v2 = vld [vmem:[#allocation4 + $0x1e8] ss:$16 sps:$4 sm:$0xff]  }
  0x3d   :  { %1693 = vmatprep.subr.bf16.mxu0 %v4391_v24  ;;  %1865 = vmatprep.subr.bf16.mxu1 %v4393_v25  ;;  %v4453_v3 = vld [vmem:[#allocation4 + $0x204] ss:$16 sps:$4 sm:$0xff]   ;;  %v4456_v4 = vld [vmem:[#allocation4 + $0x20c] ss:$16 sps:$4 sm:$0xff]   ;;  %v4451_v6 = vld [vmem:[#allocation4 + $0x200] ss:$16 sps:$4 sm:$0xff]  }
  0x3e   :  { %v4454_v7 = vld [vmem:[#allocation4 + $0x208] ss:$16 sps:$4 sm:$0xff]   ;;  %v4459_v8 = vld [vmem:[#allocation4 + $0x224] ss:$16 sps:$4 sm:$0xff]   ;;  %v4462_v9 = vld [vmem:[#allocation4 + $0x22c] ss:$16 sps:$4 sm:$0xff]  }
  0x3f   :  { %v4457_v10 = vld [vmem:[#allocation4 + $0x220] ss:$16 sps:$4 sm:$0xff]   ;;  %v4460_v11 = vld [vmem:[#allocation4 + $0x228] ss:$16 sps:$4 sm:$0xff]   ;;  %v4465_v12 = vld [vmem:[#allocation4 + $0x244] ss:$16 sps:$4 sm:$0xff]  }
  0x40   :  { %1694 = vmatpush1.bf16.msra.mxu0 %v4395_v26  ;;  %1866 = vmatpush1.bf16.msra.mxu1 %v4396_v27  ;;  %v4468_v13 = vld [vmem:[#allocation4 + $0x24c] ss:$16 sps:$4 sm:$0xff]   ;;  %v4463_v14 = vld [vmem:[#allocation4 + $0x240] ss:$16 sps:$4 sm:$0xff]   ;;  %v4466_v15 = vld [vmem:[#allocation4 + $0x248] ss:$16 sps:$4 sm:$0xff]  }
  0x41   :  { %1695 = vmatprep.subr.bf16.mxu0 %v4397_v28  ;;  %1867 = vmatprep.subr.bf16.mxu1 %v4399_v29  ;;  %v4471_v16 = vld [vmem:[#allocation4 + $0x264] ss:$16 sps:$4 sm:$0xff]   ;;  %v4474_v17 = vld [vmem:[#allocation4 + $0x26c] ss:$16 sps:$4 sm:$0xff]   ;;  %v4469_v18 = vld [vmem:[#allocation4 + $0x260] ss:$16 sps:$4 sm:$0xff]  }
  0x42   :  { %v4472_v19 = vld [vmem:[#allocation4 + $0x268] ss:$16 sps:$4 sm:$0xff]   ;;  %v4477_v20 = vld [vmem:[#allocation4 + $0x284] ss:$16 sps:$4 sm:$0xff]   ;;  %v4480_v21 = vld [vmem:[#allocation4 + $0x28c] ss:$16 sps:$4 sm:$0xff]  }
  0x43   :  { %v4475_v22 = vld [vmem:[#allocation4 + $0x280] ss:$16 sps:$4 sm:$0xff]   ;;  %v4478_v23 = vld [vmem:[#allocation4 + $0x288] ss:$16 sps:$4 sm:$0xff]   ;;  %v4483_v24 = vld [vmem:[#allocation4 + $0x2a4] ss:$16 sps:$4 sm:$0xff]  }
  0x44   :  { %1696 = vmatpush1.bf16.msra.mxu0 %v4401_v30  ;;  %1868 = vmatpush1.bf16.msra.mxu1 %v4402_v31  ;;  %v4486_v25 = vld [vmem:[#allocation4 + $0x2ac] ss:$16 sps:$4 sm:$0xff]   ;;  %v4481_v26 = vld [vmem:[#allocation4 + $0x2a0] ss:$16 sps:$4 sm:$0xff]   ;;  %v4484_v27 = vld [vmem:[#allocation4 + $0x2a8] ss:$16 sps:$4 sm:$0xff]  }
  0x45   :  { %1697 = vmatprep.subr.bf16.mxu0 %v4403_v32  ;;  %1869 = vmatprep.subr.bf16.mxu1 %v4405_v33  ;;  %v4489_v28 = vld [vmem:[#allocation4 + $0x2c4] ss:$16 sps:$4 sm:$0xff]   ;;  %v4492_v29 = vld [vmem:[#allocation4 + $0x2cc] ss:$16 sps:$4 sm:$0xff]   ;;  %v4487_v32 = vld [vmem:[#allocation4 + $0x2c0] ss:$16 sps:$4 sm:$0xff]  }
  0x46   :  { %v5151_v30 = vld [vmem:[%s5580_s0 + $0x8] sm:$0xff]  ;;  %vm3650_vm11 = vcmask 25616  }
  0x47   :  { %v5156_v31 = vld [vmem:[%s5580_s0 + $0x28] sm:$0xff] }
  0x48   :  { %1698 = vmatpush1.bf16.msra.mxu0 %v4407_v34  ;;  %1870 = vmatpush1.bf16.msra.mxu1 %v4408_v35  ;;  %v4490_v33 = vld [vmem:[#allocation4 + $0x2c8] ss:$16 sps:$4 sm:$0xff]   ;;  %v3675_v34 = vcombine.high %v5151_v30, %v5156_v31  ;;  %v4495_v35 = vld [vmem:[#allocation4 + $0x2e4] ss:$16 sps:$4 sm:$0xff]  }
  0x49   :  { %1699 = vmatprep.subr.bf16.mxu0 %v4409_v36  ;;  %1871 = vmatprep.subr.bf16.mxu1 %v4411_v37  ;;  %v4498_v36 = vld [vmem:[#allocation4 + $0x2ec] ss:$16 sps:$4 sm:$0xff]   ;;  %v4493_v37 = vld [vmem:[#allocation4 + $0x2e0] ss:$16 sps:$4 sm:$0xff]   ;;  %v4508_v46 = vld [vmem:[#allocation4 + $0x328] ss:$16 sps:$4 sm:$0xff]  }
  0x4a   :  { %v4513_v47 = vld [vmem:[#allocation4 + $0x344] ss:$16 sps:$4 sm:$0xff]   ;;  %v4514_v50 = vld [vmem:[#allocation4 + $0x348] ss:$16 sps:$4 sm:$0xff]  }
  0x4c   :  { %1700 = vmatpush1.bf16.msra.mxu0 %v4413_v38  ;;  %1872 = vmatpush1.bf16.msra.mxu1 %v4414_v39  ;;  %v4496_v38 = vld [vmem:[#allocation4 + $0x2e8] ss:$16 sps:$4 sm:$0xff]   ;;  %v4501_v39 = vld [vmem:[#allocation4 + $0x304] ss:$16 sps:$4 sm:$0xff]  }
  0x4d   :  { %1701 = vmatprep.subr.bf16.mxu0 %v4415_v40  ;;  %1873 = vmatprep.subr.bf16.mxu1 %v4417_v41  ;;  %v4504_v40 = vld [vmem:[#allocation4 + $0x30c] ss:$16 sps:$4 sm:$0xff]   ;;  %v4499_v41 = vld [vmem:[#allocation4 + $0x300] ss:$16 sps:$4 sm:$0xff]  }
  0x50   :  { %1702 = vmatpush1.bf16.msra.mxu0 %v4419_v42  ;;  %1874 = vmatpush1.bf16.msra.mxu1 %v4420_v43  ;;  %v4502_v42 = vld [vmem:[#allocation4 + $0x308] ss:$16 sps:$4 sm:$0xff]   ;;  %v4507_v43 = vld [vmem:[#allocation4 + $0x324] ss:$16 sps:$4 sm:$0xff]  }
  0x51   :  { %1703 = vmatprep.subr.bf16.mxu0 %v4421_v44  ;;  %1875 = vmatprep.subr.bf16.mxu1 %v4423_v45  ;;  %v4510_v44 = vld [vmem:[#allocation4 + $0x32c] ss:$16 sps:$4 sm:$0xff]   ;;  %v4505_v45 = vld [vmem:[#allocation4 + $0x320] ss:$16 sps:$4 sm:$0xff]  }
  0x54   :  { %1704 = vmatpush1.bf16.msra.mxu0 %v4425_v48  ;;  %1876 = vmatpush1.bf16.msra.mxu1 %v4426_v49  ;;  %v4516_v48 = vld [vmem:[#allocation4 + $0x34c] ss:$16 sps:$4 sm:$0xff]   ;;  %v4511_v49 = vld [vmem:[#allocation4 + $0x340] ss:$16 sps:$4 sm:$0xff]  }
  0x55   :  { %1705 = vmatprep.subr.bf16.mxu0 %v4427_v51  ;;  %1877 = vmatprep.subr.bf16.mxu1 %v4429_v52  ;;  %v4519_v51 = vld [vmem:[#allocation4 + $0x364] ss:$16 sps:$4 sm:$0xff]   ;;  %v4522_v52 = vld [vmem:[#allocation4 + $0x36c] ss:$16 sps:$4 sm:$0xff]  }
  0x58   :  { %1706 = vmatpush1.bf16.msra.mxu0 %v4431_v53  ;;  %1878 = vmatpush1.bf16.msra.mxu1 %v4432_v54  ;;  %v4517_v53 = vld [vmem:[#allocation4 + $0x360] ss:$16 sps:$4 sm:$0xff]   ;;  %v4520_v54 = vld [vmem:[#allocation4 + $0x368] ss:$16 sps:$4 sm:$0xff]  }
  0x59   :  { %1707 = vmatprep.subr.bf16.mxu0 %v4433_v55  ;;  %1879 = vmatprep.subr.bf16.mxu1 %v4435_v56  ;;  %v4525_v55 = vld [vmem:[#allocation4 + $0x384] ss:$16 sps:$4 sm:$0xff]   ;;  %v4528_v56 = vld [vmem:[#allocation4 + $0x38c] ss:$16 sps:$4 sm:$0xff]  }
  0x5c   :  { %1708 = vmatpush1.bf16.msra.mxu0 %v4437_v57  ;;  %1880 = vmatpush1.bf16.msra.mxu1 %v4438_v58  ;;  %v4523_v57 = vld [vmem:[#allocation4 + $0x380] ss:$16 sps:$4 sm:$0xff]   ;;  %v4526_v58 = vld [vmem:[#allocation4 + $0x388] ss:$16 sps:$4 sm:$0xff]  }
  0x5d   :  { %1709 = vmatprep.subr.bf16.mxu0 %v4439_v59  ;;  %1881 = vmatprep.subr.bf16.mxu1 %v4441_v60  ;;  %v4531_v59 = vld [vmem:[#allocation4 + $0x3a4] ss:$16 sps:$4 sm:$0xff]   ;;  %v4534_v60 = vld [vmem:[#allocation4 + $0x3ac] ss:$16 sps:$4 sm:$0xff]  }
  0x60   :  { %1710 = vmatpush1.bf16.msra.mxu0 %v4443_v61  ;;  %1882 = vmatpush1.bf16.msra.mxu1 %v4444_v62  ;;  %v4529_v61 = vld [vmem:[#allocation4 + $0x3a0] ss:$16 sps:$4 sm:$0xff]   ;;  %v4532_v62 = vld [vmem:[#allocation4 + $0x3a8] ss:$16 sps:$4 sm:$0xff]  }
  0x61   :  { %1711 = vmatprep.subr.bf16.mxu0 %v4445_v63  ;;  %1883 = vmatprep.subr.bf16.mxu1 %v4447_v0  ;;  %v4537_v63 = vld [vmem:[#allocation4 + $0x3c4] ss:$16 sps:$4 sm:$0xff]   ;;  %v4540_v0 = vld [vmem:[#allocation4 + $0x3cc] ss:$16 sps:$4 sm:$0xff]  }
  0x64   :  { %1712 = vmatpush1.bf16.msra.mxu0 %v4449_v1  ;;  %1884 = vmatpush1.bf16.msra.mxu1 %v4450_v2  ;;  %v4535_v1 = vld [vmem:[#allocation4 + $0x3c0] ss:$16 sps:$4 sm:$0xff]   ;;  %v4538_v2 = vld [vmem:[#allocation4 + $0x3c8] ss:$16 sps:$4 sm:$0xff]  }
  0x65   :  { %1724 = vmatprep.subr.bf16.mxu0 %v4453_v3  ;;  %1896 = vmatprep.subr.bf16.mxu1 %v4456_v4  ;;  %v4543_v3 = vld [vmem:[#allocation4 + $0x3e4] ss:$16 sps:$4 sm:$0xff]   ;;  %v4546_v4 = vld [vmem:[#allocation4 + $0x3ec] ss:$16 sps:$4 sm:$0xff]  }
  0x67   :  { %1714 = vmatmul.mubr.bf16.vlgmr.msra.gmra.mrb[0].mxu0 %v3672_v5  ;;  %1886 = vmatmul.mubr.bf16.vlgmr.msra.gmra.mrb[0].mxu1 %v3672_v5  ;;  %v4541_v5 = vld [vmem:[#allocation4 + $0x3e0] ss:$16 sps:$4 sm:$0xff]  }
  0x68   :  { %1725 = vmatpush1.bf16.msra.mxu0 %v4451_v6  ;;  %1897 = vmatpush1.bf16.msra.mxu1 %v4454_v7  ;;  %v4544_v6 = vld [vmem:[#allocation4 + $0x3e8] ss:$16 sps:$4 sm:$0xff]   ;;  %v4549_v7 = vld [vmem:[#allocation4 + $0x404] ss:$16 sps:$4 sm:$0xff]  }
  0x69   :  { %1726 = vmatprep.subr.bf16.mxu0 %v4459_v8  ;;  %1898 = vmatprep.subr.bf16.mxu1 %v4462_v9  ;;  %v4552_v8 = vld [vmem:[#allocation4 + $0x40c] ss:$16 sps:$4 sm:$0xff]   ;;  %v3674_v9 = vcombine.low %v5151_v30, %v5156_v31  ;;  %v4574_v30 = vld [vmem:[#allocation4 + $0x488] ss:$16 sps:$4 sm:$0xff]   ;;  %v4579_v31 = vld [vmem:[#allocation4 + $0x4a4] ss:$16 sps:$4 sm:$0xff]  }
  0x6a   :  { %1756 = vmatprep.mubr.bf16.mxu0 %v3675_v34  ;;  %1928 = vmatprep.mubr.bf16.mxu1 %v3675_v34  ;;  %v4580_v34 = vld [vmem:[#allocation4 + $0x4a8] ss:$16 sps:$4 sm:$0xff]  }
  0x6c   :  { %1727 = vmatpush1.bf16.msra.mxu0 %v4457_v10  ;;  %1899 = vmatpush1.bf16.msra.mxu1 %v4460_v11  ;;  %v4547_v10 = vld [vmem:[#allocation4 + $0x400] ss:$16 sps:$4 sm:$0xff]   ;;  %v4550_v11 = vld [vmem:[#allocation4 + $0x408] ss:$16 sps:$4 sm:$0xff]  }
  0x6d   :  { %1728 = vmatprep.subr.bf16.mxu0 %v4465_v12  ;;  %1900 = vmatprep.subr.bf16.mxu1 %v4468_v13  ;;  %v4555_v12 = vld [vmem:[#allocation4 + $0x424] ss:$16 sps:$4 sm:$0xff]   ;;  %v4558_v13 = vld [vmem:[#allocation4 + $0x42c] ss:$16 sps:$4 sm:$0xff]  }
  0x70   :  { %1729 = vmatpush1.bf16.msra.mxu0 %v4463_v14  ;;  %1901 = vmatpush1.bf16.msra.mxu1 %v4466_v15  ;;  %v5165_v14 = vld [vmem:[%s5580_s0 + $0x10] sm:$0xff] }
  0x71   :  { %1730 = vmatprep.subr.bf16.mxu0 %v4471_v16  ;;  %1902 = vmatprep.subr.bf16.mxu1 %v4474_v17  ;;  %v5170_v15 = vld [vmem:[%s5580_s0 + $0x30] sm:$0xff] }
  0x72   :  { %v3677_v16 = vcombine.high %v5165_v14, %v5170_v15  ;;  %v4553_v17 = vld [vmem:[#allocation4 + $0x420] ss:$16 sps:$4 sm:$0xff]  }
  0x74   :  { %1731 = vmatpush1.bf16.msra.mxu0 %v4469_v18  ;;  %1903 = vmatpush1.bf16.msra.mxu1 %v4472_v19  ;;  %v4556_v18 = vld [vmem:[#allocation4 + $0x428] ss:$16 sps:$4 sm:$0xff]   ;;  %v4561_v19 = vld [vmem:[#allocation4 + $0x444] ss:$16 sps:$4 sm:$0xff]  }
  0x75   :  { %1732 = vmatprep.subr.bf16.mxu0 %v4477_v20  ;;  %1904 = vmatprep.subr.bf16.mxu1 %v4480_v21  ;;  %v4564_v20 = vld [vmem:[#allocation4 + $0x44c] ss:$16 sps:$4 sm:$0xff]   ;;  %v4559_v21 = vld [vmem:[#allocation4 + $0x440] ss:$16 sps:$4 sm:$0xff]  }
  0x78   :  { %1733 = vmatpush1.bf16.msra.mxu0 %v4475_v22  ;;  %1905 = vmatpush1.bf16.msra.mxu1 %v4478_v23  ;;  %v4562_v22 = vld [vmem:[#allocation4 + $0x448] ss:$16 sps:$4 sm:$0xff]   ;;  %v4567_v23 = vld [vmem:[#allocation4 + $0x464] ss:$16 sps:$4 sm:$0xff]  }
  0x79   :  { %1734 = vmatprep.subr.bf16.mxu0 %v4483_v24  ;;  %1906 = vmatprep.subr.bf16.mxu1 %v4486_v25  ;;  %v4570_v24 = vld [vmem:[#allocation4 + $0x46c] ss:$16 sps:$4 sm:$0xff]   ;;  %v4565_v25 = vld [vmem:[#allocation4 + $0x460] ss:$16 sps:$4 sm:$0xff]  }
  0x7c   :  { %1735 = vmatpush1.bf16.msra.mxu0 %v4481_v26  ;;  %1907 = vmatpush1.bf16.msra.mxu1 %v4484_v27  ;;  %v4568_v26 = vld [vmem:[#allocation4 + $0x468] ss:$16 sps:$4 sm:$0xff]   ;;  %v4573_v27 = vld [vmem:[#allocation4 + $0x484] ss:$16 sps:$4 sm:$0xff]  }
  0x7d   :  { %1736 = vmatprep.subr.bf16.mxu0 %v4489_v28  ;;  %1908 = vmatprep.subr.bf16.mxu1 %v4492_v29  ;;  %v4576_v28 = vld [vmem:[#allocation4 + $0x48c] ss:$16 sps:$4 sm:$0xff]   ;;  %v4571_v29 = vld [vmem:[#allocation4 + $0x480] ss:$16 sps:$4 sm:$0xff]  }
  0x80   :  { %1737 = vmatpush1.bf16.msra.mxu0 %v4487_v32  ;;  %1909 = vmatpush1.bf16.msra.mxu1 %v4490_v33  ;;  %v4582_v32 = vld [vmem:[#allocation4 + $0x4ac] ss:$16 sps:$4 sm:$0xff]   ;;  %v4577_v33 = vld [vmem:[#allocation4 + $0x4a0] ss:$16 sps:$4 sm:$0xff]  }
  0x81   :  { %1738 = vmatprep.subr.bf16.mxu0 %v4495_v35  ;;  %1910 = vmatprep.subr.bf16.mxu1 %v4498_v36  ;;  %v4585_v35 = vld [vmem:[#allocation4 + $0x4c4] ss:$16 sps:$4 sm:$0xff]   ;;  %v4588_v36 = vld [vmem:[#allocation4 + $0x4cc] ss:$16 sps:$4 sm:$0xff]  }
  0x84   :  { %1739 = vmatpush1.bf16.msra.mxu0 %v4493_v37  ;;  %1911 = vmatpush1.bf16.msra.mxu1 %v4496_v38  ;;  %v4583_v37 = vld [vmem:[#allocation4 + $0x4c0] ss:$16 sps:$4 sm:$0xff]   ;;  %v4586_v38 = vld [vmem:[#allocation4 + $0x4c8] ss:$16 sps:$4 sm:$0xff]  }
  0x85   :  { %1740 = vmatprep.subr.bf16.mxu0 %v4501_v39  ;;  %1912 = vmatprep.subr.bf16.mxu1 %v4504_v40  ;;  %v4591_v39 = vld [vmem:[#allocation4 + $0x4e4] ss:$16 sps:$4 sm:$0xff]   ;;  %v4594_v40 = vld [vmem:[#allocation4 + $0x4ec] ss:$16 sps:$4 sm:$0xff]  }
  0x88   :  { %1741 = vmatpush1.bf16.msra.mxu0 %v4499_v41  ;;  %1913 = vmatpush1.bf16.msra.mxu1 %v4502_v42  ;;  %v4589_v41 = vld [vmem:[#allocation4 + $0x4e0] ss:$16 sps:$4 sm:$0xff]   ;;  %v4592_v42 = vld [vmem:[#allocation4 + $0x4e8] ss:$16 sps:$4 sm:$0xff]  }
  0x89   :  { %1742 = vmatprep.subr.bf16.mxu0 %v4507_v43  ;;  %1914 = vmatprep.subr.bf16.mxu1 %v4510_v44  ;;  %v4597_v43 = vld [vmem:[#allocation4 + $0x504] ss:$16 sps:$4 sm:$0xff]   ;;  %v4600_v44 = vld [vmem:[#allocation4 + $0x50c] ss:$16 sps:$4 sm:$0xff]  }
  0x8c   :  { %1743 = vmatpush1.bf16.msra.mxu0 %v4505_v45  ;;  %1915 = vmatpush1.bf16.msra.mxu1 %v4508_v46  ;;  %v4595_v45 = vld [vmem:[#allocation4 + $0x500] ss:$16 sps:$4 sm:$0xff]   ;;  %v4598_v46 = vld [vmem:[#allocation4 + $0x508] ss:$16 sps:$4 sm:$0xff]  }
  0x8d   :  { %1744 = vmatprep.subr.bf16.mxu0 %v4513_v47  ;;  %1916 = vmatprep.subr.bf16.mxu1 %v4516_v48  ;;  %v4603_v47 = vld [vmem:[#allocation4 + $0x524] ss:$16 sps:$4 sm:$0xff]   ;;  %v4606_v48 = vld [vmem:[#allocation4 + $0x52c] ss:$16 sps:$4 sm:$0xff]  }
  0x90   :  { %1745 = vmatpush1.bf16.msra.mxu0 %v4511_v49  ;;  %1917 = vmatpush1.bf16.msra.mxu1 %v4514_v50  ;;  %v4601_v49 = vld [vmem:[#allocation4 + $0x520] ss:$16 sps:$4 sm:$0xff]   ;;  %v4604_v50 = vld [vmem:[#allocation4 + $0x528] ss:$16 sps:$4 sm:$0xff]  }
  0x91   :  { %1746 = vmatprep.subr.bf16.mxu0 %v4519_v51  ;;  %1918 = vmatprep.subr.bf16.mxu1 %v4522_v52  ;;  %v4609_v51 = vld [vmem:[#allocation4 + $0x544] ss:$16 sps:$4 sm:$0xff]   ;;  %v4612_v52 = vld [vmem:[#allocation4 + $0x54c] ss:$16 sps:$4 sm:$0xff]  }
  0x94   :  { %1747 = vmatpush1.bf16.msra.mxu0 %v4517_v53  ;;  %1919 = vmatpush1.bf16.msra.mxu1 %v4520_v54  ;;  %v4607_v53 = vld [vmem:[#allocation4 + $0x540] ss:$16 sps:$4 sm:$0xff]   ;;  %v4610_v54 = vld [vmem:[#allocation4 + $0x548] ss:$16 sps:$4 sm:$0xff]  }
  0x95   :  { %1748 = vmatprep.subr.bf16.mxu0 %v4525_v55  ;;  %1920 = vmatprep.subr.bf16.mxu1 %v4528_v56  ;;  %v4615_v55 = vld [vmem:[#allocation4 + $0x564] ss:$16 sps:$4 sm:$0xff]   ;;  %v4618_v56 = vld [vmem:[#allocation4 + $0x56c] ss:$16 sps:$4 sm:$0xff]  }
  0x98   :  { %1749 = vmatpush1.bf16.msra.mxu0 %v4523_v57  ;;  %1921 = vmatpush1.bf16.msra.mxu1 %v4526_v58  ;;  %v4613_v57 = vld [vmem:[#allocation4 + $0x560] ss:$16 sps:$4 sm:$0xff]   ;;  %v4616_v58 = vld [vmem:[#allocation4 + $0x568] ss:$16 sps:$4 sm:$0xff]  }
  0x99   :  { %1750 = vmatprep.subr.bf16.mxu0 %v4531_v59  ;;  %1922 = vmatprep.subr.bf16.mxu1 %v4534_v60  ;;  %v4621_v59 = vld [vmem:[#allocation4 + $0x584] ss:$16 sps:$4 sm:$0xff]   ;;  %v4624_v60 = vld [vmem:[#allocation4 + $0x58c] ss:$16 sps:$4 sm:$0xff]  }
  0x9c   :  { %1751 = vmatpush1.bf16.msra.mxu0 %v4529_v61  ;;  %1923 = vmatpush1.bf16.msra.mxu1 %v4532_v62  ;;  %v4619_v61 = vld [vmem:[#allocation4 + $0x580] ss:$16 sps:$4 sm:$0xff]   ;;  %v4622_v62 = vld [vmem:[#allocation4 + $0x588] ss:$16 sps:$4 sm:$0xff]  }
  0x9d   :  { %1752 = vmatprep.subr.bf16.mxu0 %v4537_v63  ;;  %1924 = vmatprep.subr.bf16.mxu1 %v4540_v0  ;;  %v4627_v63 = vld [vmem:[#allocation4 + $0x5a4] ss:$16 sps:$4 sm:$0xff]   ;;  %v4630_v0 = vld [vmem:[#allocation4 + $0x5ac] ss:$16 sps:$4 sm:$0xff]  }
  0xa0   :  { %1753 = vmatpush1.bf16.msra.mxu0 %v4535_v1  ;;  %1925 = vmatpush1.bf16.msra.mxu1 %v4538_v2  ;;  %v4625_v1 = vld [vmem:[#allocation4 + $0x5a0] ss:$16 sps:$4 sm:$0xff]   ;;  %v4628_v2 = vld [vmem:[#allocation4 + $0x5a8] ss:$16 sps:$4 sm:$0xff]  }
  0xa1   :  { %1754 = vmatprep.subr.bf16.mxu0 %v4543_v3  ;;  %1926 = vmatprep.subr.bf16.mxu1 %v4546_v4  ;;  %v4633_v3 = vld [vmem:[#allocation4 + $0x5c4] ss:$16 sps:$4 sm:$0xff]   ;;  %v4636_v4 = vld [vmem:[#allocation4 + $0x5cc] ss:$16 sps:$4 sm:$0xff]  }
  0xa4   :  { %1755 = vmatpush1.bf16.msra.mxu0 %v4541_v5  ;;  %1927 = vmatpush1.bf16.msra.mxu1 %v4544_v6  ;;  %v4631_v5 = vld [vmem:[#allocation4 + $0x5c0] ss:$16 sps:$4 sm:$0xff]   ;;  %v4634_v6 = vld [vmem:[#allocation4 + $0x5c8] ss:$16 sps:$4 sm:$0xff]  }
  0xa5   :  { %1767 = vmatprep.subr.bf16.mxu0 %v4549_v7  ;;  %1939 = vmatprep.subr.bf16.mxu1 %v4552_v8  ;;  %v4639_v7 = vld [vmem:[#allocation4 + $0x5e4] ss:$16 sps:$4 sm:$0xff]   ;;  %v4642_v8 = vld [vmem:[#allocation4 + $0x5ec] ss:$16 sps:$4 sm:$0xff]  }
  0xa7   :  { %1757 = vmatmul.mubr.bf16.vlgmr.msra.gmra.mrb[0].mxu0 %v3674_v9  ;;  %1929 = vmatmul.mubr.bf16.vlgmr.msra.gmra.mrb[0].mxu1 %v3674_v9  ;;  %v4637_v9 = vld [vmem:[#allocation4 + $0x5e0] ss:$16 sps:$4 sm:$0xff]  }
  0xa8   :  { %1768 = vmatpush1.bf16.msra.mxu0 %v4547_v10  ;;  %1940 = vmatpush1.bf16.msra.mxu1 %v4550_v11  ;;  %v4640_v10 = vld [vmem:[#allocation4 + $0x5e8] ss:$16 sps:$4 sm:$0xff]   ;;  %v4645_v11 = vld [vmem:[#allocation4 + $0x604] ss:$16 sps:$4 sm:$0xff]  }
  0xa9   :  { %1769 = vmatprep.subr.bf16.mxu0 %v4555_v12  ;;  %1941 = vmatprep.subr.bf16.mxu1 %v4558_v13  ;;  %v4648_v12 = vld [vmem:[#allocation4 + $0x60c] ss:$16 sps:$4 sm:$0xff]   ;;  %v4643_v13 = vld [vmem:[#allocation4 + $0x600] ss:$16 sps:$4 sm:$0xff]  }
  0xaa   :  { %1799 = vmatprep.mubr.bf16.mxu0 %v3677_v16  ;;  %1971 = vmatprep.mubr.bf16.mxu1 %v3677_v16  ;;  %v4646_v16 = vld [vmem:[#allocation4 + $0x608] ss:$16 sps:$4 sm:$0xff]  }
  0xac   :  { %1770 = vmatpush1.bf16.msra.mxu0 %v4553_v17  ;;  %1942 = vmatpush1.bf16.msra.mxu1 %v4556_v18  ;;  %v3676_v17 = vcombine.low %v5165_v14, %v5170_v15  ;;  %v5179_v18 = vld [vmem:[%s5580_s0 + $0x18] sm:$0xff]  ;;  %v4649_v14 = vld [vmem:[#allocation4 + $0x620] ss:$16 sps:$4 sm:$0xff]  }
  0xad   :  { %1771 = vmatprep.subr.bf16.mxu0 %v4561_v19  ;;  %1943 = vmatprep.subr.bf16.mxu1 %v4564_v20  ;;  %v5184_v19 = vld [vmem:[%s5580_s0 + $0x38] sm:$0xff] }
  0xae   :  { %v4651_v20 = vld [vmem:[#allocation4 + $0x624] ss:$16 sps:$4 sm:$0xff]   ;;  %v4652_v15 = vld [vmem:[#allocation4 + $0x628] ss:$16 sps:$4 sm:$0xff]  }
  0xb0   :  { %1772 = vmatpush1.bf16.msra.mxu0 %v4559_v21  ;;  %1944 = vmatpush1.bf16.msra.mxu1 %v4562_v22  ;;  %v4654_v21 = vld [vmem:[#allocation4 + $0x62c] ss:$16 sps:$4 sm:$0xff]   ;;  %v3679_v22 = vcombine.high %v5179_v18, %v5184_v19 }
  0xb1   :  { %1773 = vmatprep.subr.bf16.mxu0 %v4567_v23  ;;  %1945 = vmatprep.subr.bf16.mxu1 %v4570_v24  ;;  %v4657_v23 = vld [vmem:[#allocation4 + $0x644] ss:$16 sps:$4 sm:$0xff]   ;;  %v4660_v24 = vld [vmem:[#allocation4 + $0x64c] ss:$16 sps:$4 sm:$0xff]  }
  0xb4   :  { %1774 = vmatpush1.bf16.msra.mxu0 %v4565_v25  ;;  %1946 = vmatpush1.bf16.msra.mxu1 %v4568_v26  ;;  %v4655_v25 = vld [vmem:[#allocation4 + $0x640] ss:$16 sps:$4 sm:$0xff]   ;;  %v4658_v26 = vld [vmem:[#allocation4 + $0x648] ss:$16 sps:$4 sm:$0xff]  }
  0xb5   :  { %1775 = vmatprep.subr.bf16.mxu0 %v4573_v27  ;;  %1947 = vmatprep.subr.bf16.mxu1 %v4576_v28  ;;  %v4663_v27 = vld [vmem:[#allocation4 + $0x664] ss:$16 sps:$4 sm:$0xff]   ;;  %v4666_v28 = vld [vmem:[#allocation4 + $0x66c] ss:$16 sps:$4 sm:$0xff]  }
  0xb8   :  { %1776 = vmatpush1.bf16.msra.mxu0 %v4571_v29  ;;  %1948 = vmatpush1.bf16.msra.mxu1 %v4574_v30  ;;  %v4661_v29 = vld [vmem:[#allocation4 + $0x660] ss:$16 sps:$4 sm:$0xff]   ;;  %v4664_v30 = vld [vmem:[#allocation4 + $0x668] ss:$16 sps:$4 sm:$0xff]  }
  0xb9   :  { %1777 = vmatprep.subr.bf16.mxu0 %v4579_v31  ;;  %1949 = vmatprep.subr.bf16.mxu1 %v4582_v32  ;;  %v4669_v31 = vld [vmem:[#allocation4 + $0x684] ss:$16 sps:$4 sm:$0xff]   ;;  %v4672_v32 = vld [vmem:[#allocation4 + $0x68c] ss:$16 sps:$4 sm:$0xff]  }
  0xbc   :  { %1778 = vmatpush1.bf16.msra.mxu0 %v4577_v33  ;;  %1950 = vmatpush1.bf16.msra.mxu1 %v4580_v34  ;;  %v4667_v33 = vld [vmem:[#allocation4 + $0x680] ss:$16 sps:$4 sm:$0xff]   ;;  %v4670_v34 = vld [vmem:[#allocation4 + $0x688] ss:$16 sps:$4 sm:$0xff]  }
  0xbd   :  { %1779 = vmatprep.subr.bf16.mxu0 %v4585_v35  ;;  %1951 = vmatprep.subr.bf16.mxu1 %v4588_v36  ;;  %v4675_v35 = vld [vmem:[#allocation4 + $0x6a4] ss:$16 sps:$4 sm:$0xff]   ;;  %v4678_v36 = vld [vmem:[#allocation4 + $0x6ac] ss:$16 sps:$4 sm:$0xff]  }
  0xc0   :  { %1780 = vmatpush1.bf16.msra.mxu0 %v4583_v37  ;;  %1952 = vmatpush1.bf16.msra.mxu1 %v4586_v38  ;;  %v4673_v37 = vld [vmem:[#allocation4 + $0x6a0] ss:$16 sps:$4 sm:$0xff]   ;;  %v4676_v38 = vld [vmem:[#allocation4 + $0x6a8] ss:$16 sps:$4 sm:$0xff]  }
  0xc1   :  { %1781 = vmatprep.subr.bf16.mxu0 %v4591_v39  ;;  %1953 = vmatprep.subr.bf16.mxu1 %v4594_v40  ;;  %v4681_v39 = vld [vmem:[#allocation4 + $0x6c4] ss:$16 sps:$4 sm:$0xff]   ;;  %v4684_v40 = vld [vmem:[#allocation4 + $0x6cc] ss:$16 sps:$4 sm:$0xff]  }
  0xc4   :  { %1782 = vmatpush1.bf16.msra.mxu0 %v4589_v41  ;;  %1954 = vmatpush1.bf16.msra.mxu1 %v4592_v42  ;;  %v4679_v41 = vld [vmem:[#allocation4 + $0x6c0] ss:$16 sps:$4 sm:$0xff]   ;;  %v4682_v42 = vld [vmem:[#allocation4 + $0x6c8] ss:$16 sps:$4 sm:$0xff]  }
  0xc5   :  { %1783 = vmatprep.subr.bf16.mxu0 %v4597_v43  ;;  %1955 = vmatprep.subr.bf16.mxu1 %v4600_v44  ;;  %v4687_v43 = vld [vmem:[#allocation4 + $0x6e4] ss:$16 sps:$4 sm:$0xff]   ;;  %v4690_v44 = vld [vmem:[#allocation4 + $0x6ec] ss:$16 sps:$4 sm:$0xff]  }
  0xc8   :  { %1784 = vmatpush1.bf16.msra.mxu0 %v4595_v45  ;;  %1956 = vmatpush1.bf16.msra.mxu1 %v4598_v46  ;;  %v4685_v45 = vld [vmem:[#allocation4 + $0x6e0] ss:$16 sps:$4 sm:$0xff]   ;;  %v4688_v46 = vld [vmem:[#allocation4 + $0x6e8] ss:$16 sps:$4 sm:$0xff]  }
  0xc9   :  { %1785 = vmatprep.subr.bf16.mxu0 %v4603_v47  ;;  %1957 = vmatprep.subr.bf16.mxu1 %v4606_v48  ;;  %v4693_v47 = vld [vmem:[#allocation4 + $0x704] ss:$16 sps:$4 sm:$0xff]   ;;  %v4696_v48 = vld [vmem:[#allocation4 + $0x70c] ss:$16 sps:$4 sm:$0xff]  }
  0xcc   :  { %1786 = vmatpush1.bf16.msra.mxu0 %v4601_v49  ;;  %1958 = vmatpush1.bf16.msra.mxu1 %v4604_v50  ;;  %v4691_v49 = vld [vmem:[#allocation4 + $0x700] ss:$16 sps:$4 sm:$0xff]   ;;  %v4694_v50 = vld [vmem:[#allocation4 + $0x708] ss:$16 sps:$4 sm:$0xff]  }
  0xcd   :  { %1787 = vmatprep.subr.bf16.mxu0 %v4609_v51  ;;  %1959 = vmatprep.subr.bf16.mxu1 %v4612_v52  ;;  %v4699_v51 = vld [vmem:[#allocation4 + $0x724] ss:$16 sps:$4 sm:$0xff]   ;;  %v4702_v52 = vld [vmem:[#allocation4 + $0x72c] ss:$16 sps:$4 sm:$0xff]  }
  0xd0   :  { %1788 = vmatpush1.bf16.msra.mxu0 %v4607_v53  ;;  %1960 = vmatpush1.bf16.msra.mxu1 %v4610_v54  ;;  %v4697_v53 = vld [vmem:[#allocation4 + $0x720] ss:$16 sps:$4 sm:$0xff]   ;;  %v4700_v54 = vld [vmem:[#allocation4 + $0x728] ss:$16 sps:$4 sm:$0xff]  }
  0xd1   :  { %1789 = vmatprep.subr.bf16.mxu0 %v4615_v55  ;;  %1961 = vmatprep.subr.bf16.mxu1 %v4618_v56  ;;  %v4705_v55 = vld [vmem:[#allocation4 + $0x744] ss:$16 sps:$4 sm:$0xff]   ;;  %v4708_v56 = vld [vmem:[#allocation4 + $0x74c] ss:$16 sps:$4 sm:$0xff]  }
  0xd4   :  { %1790 = vmatpush1.bf16.msra.mxu0 %v4613_v57  ;;  %1962 = vmatpush1.bf16.msra.mxu1 %v4616_v58  ;;  %v4703_v57 = vld [vmem:[#allocation4 + $0x740] ss:$16 sps:$4 sm:$0xff]   ;;  %v4706_v58 = vld [vmem:[#allocation4 + $0x748] ss:$16 sps:$4 sm:$0xff]  }
  0xd5   :  { %1791 = vmatprep.subr.bf16.mxu0 %v4621_v59  ;;  %1963 = vmatprep.subr.bf16.mxu1 %v4624_v60  ;;  %v4711_v59 = vld [vmem:[#allocation4 + $0x764] ss:$16 sps:$4 sm:$0xff]   ;;  %v4714_v60 = vld [vmem:[#allocation4 + $0x76c] ss:$16 sps:$4 sm:$0xff]  }
  0xd8   :  { %1792 = vmatpush1.bf16.msra.mxu0 %v4619_v61  ;;  %1964 = vmatpush1.bf16.msra.mxu1 %v4622_v62  ;;  %v4709_v61 = vld [vmem:[#allocation4 + $0x760] ss:$16 sps:$4 sm:$0xff]   ;;  %v4712_v62 = vld [vmem:[#allocation4 + $0x768] ss:$16 sps:$4 sm:$0xff]  }
  0xd9   :  { %1793 = vmatprep.subr.bf16.mxu0 %v4627_v63  ;;  %1965 = vmatprep.subr.bf16.mxu1 %v4630_v0  ;;  %v4717_v63 = vld [vmem:[#allocation4 + $0x784] ss:$16 sps:$4 sm:$0xff]   ;;  %v4720_v0 = vld [vmem:[#allocation4 + $0x78c] ss:$16 sps:$4 sm:$0xff]  }
  0xdc   :  { %1794 = vmatpush1.bf16.msra.mxu0 %v4625_v1  ;;  %1966 = vmatpush1.bf16.msra.mxu1 %v4628_v2  ;;  %v4715_v1 = vld [vmem:[#allocation4 + $0x780] ss:$16 sps:$4 sm:$0xff]   ;;  %v4718_v2 = vld [vmem:[#allocation4 + $0x788] ss:$16 sps:$4 sm:$0xff]  }
  0xdd   :  { %1795 = vmatprep.subr.bf16.mxu0 %v4633_v3  ;;  %1967 = vmatprep.subr.bf16.mxu1 %v4636_v4  ;;  %v4723_v3 = vld [vmem:[#allocation4 + $0x7a4] ss:$16 sps:$4 sm:$0xff]   ;;  %v4726_v4 = vld [vmem:[#allocation4 + $0x7ac] ss:$16 sps:$4 sm:$0xff]  }
  0xe0   :  { %1796 = vmatpush1.bf16.msra.mxu0 %v4631_v5  ;;  %1968 = vmatpush1.bf16.msra.mxu1 %v4634_v6  ;;  %v4721_v5 = vld [vmem:[#allocation4 + $0x7a0] ss:$16 sps:$4 sm:$0xff]   ;;  %v4724_v6 = vld [vmem:[#allocation4 + $0x7a8] ss:$16 sps:$4 sm:$0xff]  }
  0xe1   :  { %1797 = vmatprep.subr.bf16.mxu0 %v4639_v7  ;;  %1969 = vmatprep.subr.bf16.mxu1 %v4642_v8  ;;  %v4729_v7 = vld [vmem:[#allocation4 + $0x7c4] ss:$16 sps:$4 sm:$0xff]   ;;  %v4732_v8 = vld [vmem:[#allocation4 + $0x7cc] ss:$16 sps:$4 sm:$0xff]  }
  0xe4   :  { %1798 = vmatpush1.bf16.msra.mxu0 %v4637_v9  ;;  %1970 = vmatpush1.bf16.msra.mxu1 %v4640_v10  ;;  %v4727_v9 = vld [vmem:[#allocation4 + $0x7c0] ss:$16 sps:$4 sm:$0xff]   ;;  %v4730_v10 = vld [vmem:[#allocation4 + $0x7c8] ss:$16 sps:$4 sm:$0xff]  }
  0xe5   :  { %1810 = vmatprep.subr.bf16.mxu0 %v4645_v11  ;;  %1982 = vmatprep.subr.bf16.mxu1 %v4648_v12  ;;  %v4735_v11 = vld [vmem:[#allocation4 + $0x7e4] ss:$16 sps:$4 sm:$0xff]   ;;  %v4738_v12 = vld [vmem:[#allocation4 + $0x7ec] ss:$16 sps:$4 sm:$0xff]  }
  0xe7   :  { %1800 = vmatmul.mubr.bf16.vlgmr.msra.gmra.mrb[0].mxu0 %v3676_v17  ;;  %1972 = vmatmul.mubr.bf16.vlgmr.msra.gmra.mrb[0].mxu1 %v3676_v17  ;;  %v4741_v17 = vld [vmem:[#allocation7 + $0x4] ss:$16 sps:$4 sm:$0xff]  }
  0xe8   :  { %1811 = vmatpush1.bf16.msra.mxu0 %v4643_v13  ;;  %1983 = vmatpush1.bf16.msra.mxu1 %v4646_v16  ;;  %v4733_v13 = vld [vmem:[#allocation4 + $0x7e0] ss:$16 sps:$4 sm:$0xff]   ;;  %v4736_v16 = vld [vmem:[#allocation4 + $0x7e8] ss:$16 sps:$4 sm:$0xff]  }
  0xe9   :  { %1812 = vmatprep.subr.bf16.mxu0 %v4651_v20  ;;  %1984 = vmatprep.subr.bf16.mxu1 %v4654_v21  ;;  %v4744_v20 = vld [vmem:[#allocation7 + $0xc] ss:$16 sps:$4 sm:$0xff]   ;;  %v3678_v21 = vcombine.low %v5179_v18, %v5184_v19  ;;  %v4751_v18 = vld [vmem:[#allocation7 + $0x40] ss:$16 sps:$4 sm:$0xff]   ;;  %v4754_v19 = vld [vmem:[#allocation7 + $0x48] ss:$16 sps:$4 sm:$0xff]  }
  0xea   :  { %1842 = vmatprep.mubr.bf16.mxu0 %v3679_v22  ;;  %2014 = vmatprep.mubr.bf16.mxu1 %v3679_v22  ;;  %v4739_v22 = vld [vmem:[#allocation7] ss:$16 sps:$4 sm:$0xff]  }
  0xec   :  { %1813 = vmatpush1.bf16.msra.mxu0 %v4649_v14  ;;  %1985 = vmatpush1.bf16.msra.mxu1 %v4652_v15  ;;  %v4742_v14 = vld [vmem:[#allocation7 + $0x8] ss:$16 sps:$4 sm:$0xff]   ;;  %v4747_v15 = vld [vmem:[#allocation7 + $0x24] ss:$16 sps:$4 sm:$0xff]  }
  0xed   :  { %1814 = vmatprep.subr.bf16.mxu0 %v4657_v23  ;;  %1986 = vmatprep.subr.bf16.mxu1 %v4660_v24  ;;  %v4750_v23 = vld [vmem:[#allocation7 + $0x2c] ss:$16 sps:$4 sm:$0xff]   ;;  %v4745_v24 = vld [vmem:[#allocation7 + $0x20] ss:$16 sps:$4 sm:$0xff]  }
  0xf0   :  { %1815 = vmatpush1.bf16.msra.mxu0 %v4655_v25  ;;  %1987 = vmatpush1.bf16.msra.mxu1 %v4658_v26  ;;  %v4748_v25 = vld [vmem:[#allocation7 + $0x28] ss:$16 sps:$4 sm:$0xff]   ;;  %v4753_v26 = vld [vmem:[#allocation7 + $0x44] ss:$16 sps:$4 sm:$0xff]  }
  0xf1   :  { %1816 = vmatprep.subr.bf16.mxu0 %v4663_v27  ;;  %1988 = vmatprep.subr.bf16.mxu1 %v4666_v28  ;;  %v4756_v27 = vld [vmem:[#allocation7 + $0x4c] ss:$16 sps:$4 sm:$0xff]   ;;  %v4759_v28 = vld [vmem:[#allocation7 + $0x64] ss:$16 sps:$4 sm:$0xff]  }
  0xf4   :  { %1817 = vmatpush1.bf16.msra.mxu0 %v4661_v29  ;;  %1989 = vmatpush1.bf16.msra.mxu1 %v4664_v30  ;;  %v4762_v29 = vld [vmem:[#allocation7 + $0x6c] ss:$16 sps:$4 sm:$0xff]   ;;  %v4757_v30 = vld [vmem:[#allocation7 + $0x60] ss:$16 sps:$4 sm:$0xff]  }
  0xf5   :  { %1818 = vmatprep.subr.bf16.mxu0 %v4669_v31  ;;  %1990 = vmatprep.subr.bf16.mxu1 %v4672_v32  ;;  %v4760_v31 = vld [vmem:[#allocation7 + $0x68] ss:$16 sps:$4 sm:$0xff]   ;;  %v4765_v32 = vld [vmem:[#allocation7 + $0x84] ss:$16 sps:$4 sm:$0xff]  }
  0xf8   :  { %1819 = vmatpush1.bf16.msra.mxu0 %v4667_v33  ;;  %1991 = vmatpush1.bf16.msra.mxu1 %v4670_v34  ;;  %v4768_v33 = vld [vmem:[#allocation7 + $0x8c] ss:$16 sps:$4 sm:$0xff]   ;;  %v4763_v34 = vld [vmem:[#allocation7 + $0x80] ss:$16 sps:$4 sm:$0xff]  }
  0xf9   :  { %1820 = vmatprep.subr.bf16.mxu0 %v4675_v35  ;;  %1992 = vmatprep.subr.bf16.mxu1 %v4678_v36  ;;  %v4766_v35 = vld [vmem:[#allocation7 + $0x88] ss:$16 sps:$4 sm:$0xff]   ;;  %v4771_v36 = vld [vmem:[#allocation7 + $0xa4] ss:$16 sps:$4 sm:$0xff]  }
  0xfc   :  { %1821 = vmatpush1.bf16.msra.mxu0 %v4673_v37  ;;  %1993 = vmatpush1.bf16.msra.mxu1 %v4676_v38  ;;  %v4774_v37 = vld [vmem:[#allocation7 + $0xac] ss:$16 sps:$4 sm:$0xff]   ;;  %v4769_v38 = vld [vmem:[#allocation7 + $0xa0] ss:$16 sps:$4 sm:$0xff]  }
  0xfd   :  { %1822 = vmatprep.subr.bf16.mxu0 %v4681_v39  ;;  %1994 = vmatprep.subr.bf16.mxu1 %v4684_v40  ;;  %v4772_v39 = vld [vmem:[#allocation7 + $0xa8] ss:$16 sps:$4 sm:$0xff]   ;;  %v4777_v40 = vld [vmem:[#allocation7 + $0xc4] ss:$16 sps:$4 sm:$0xff]  }
 0x100   :  { %1823 = vmatpush1.bf16.msra.mxu0 %v4679_v41  ;;  %1995 = vmatpush1.bf16.msra.mxu1 %v4682_v42  ;;  %v4780_v41 = vld [vmem:[#allocation7 + $0xcc] ss:$16 sps:$4 sm:$0xff]   ;;  %v4775_v42 = vld [vmem:[#allocation7 + $0xc0] ss:$16 sps:$4 sm:$0xff]  }
 0x101   :  { %1824 = vmatprep.subr.bf16.mxu0 %v4687_v43  ;;  %1996 = vmatprep.subr.bf16.mxu1 %v4690_v44  ;;  %v4778_v43 = vld [vmem:[#allocation7 + $0xc8] ss:$16 sps:$4 sm:$0xff]   ;;  %v4783_v44 = vld [vmem:[#allocation7 + $0xe4] ss:$16 sps:$4 sm:$0xff]  }
 0x104   :  { %1825 = vmatpush1.bf16.msra.mxu0 %v4685_v45  ;;  %1997 = vmatpush1.bf16.msra.mxu1 %v4688_v46  ;;  %v4786_v45 = vld [vmem:[#allocation7 + $0xec] ss:$16 sps:$4 sm:$0xff]   ;;  %v4781_v46 = vld [vmem:[#allocation7 + $0xe0] ss:$16 sps:$4 sm:$0xff]  }
 0x105   :  { %1826 = vmatprep.subr.bf16.mxu0 %v4693_v47  ;;  %1998 = vmatprep.subr.bf16.mxu1 %v4696_v48  ;;  %v4784_v47 = vld [vmem:[#allocation7 + $0xe8] ss:$16 sps:$4 sm:$0xff]   ;;  %v4789_v48 = vld [vmem:[#allocation7 + $0x104] ss:$16 sps:$4 sm:$0xff]  }
 0x108   :  { %1827 = vmatpush1.bf16.msra.mxu0 %v4691_v49  ;;  %1999 = vmatpush1.bf16.msra.mxu1 %v4694_v50  ;;  %v4792_v49 = vld [vmem:[#allocation7 + $0x10c] ss:$16 sps:$4 sm:$0xff]   ;;  %v4787_v50 = vld [vmem:[#allocation7 + $0x100] ss:$16 sps:$4 sm:$0xff]  }
 0x109   :  { %1828 = vmatprep.subr.bf16.mxu0 %v4699_v51  ;;  %2000 = vmatprep.subr.bf16.mxu1 %v4702_v52  ;;  %v4790_v51 = vld [vmem:[#allocation7 + $0x108] ss:$16 sps:$4 sm:$0xff]   ;;  %v4795_v52 = vld [vmem:[#allocation7 + $0x124] ss:$16 sps:$4 sm:$0xff]  }
 0x10c   :  { %1829 = vmatpush1.bf16.msra.mxu0 %v4697_v53  ;;  %2001 = vmatpush1.bf16.msra.mxu1 %v4700_v54  ;;  %v4798_v53 = vld [vmem:[#allocation7 + $0x12c] ss:$16 sps:$4 sm:$0xff]   ;;  %v4793_v54 = vld [vmem:[#allocation7 + $0x120] ss:$16 sps:$4 sm:$0xff]  }
 0x10d   :  { %1830 = vmatprep.subr.bf16.mxu0 %v4705_v55  ;;  %2002 = vmatprep.subr.bf16.mxu1 %v4708_v56  ;;  %v4796_v55 = vld [vmem:[#allocation7 + $0x128] ss:$16 sps:$4 sm:$0xff]   ;;  %v4801_v56 = vld [vmem:[#allocation7 + $0x144] ss:$16 sps:$4 sm:$0xff]  }
 0x110   :  { %1831 = vmatpush1.bf16.msra.mxu0 %v4703_v57  ;;  %2003 = vmatpush1.bf16.msra.mxu1 %v4706_v58  ;;  %v4804_v57 = vld [vmem:[#allocation7 + $0x14c] ss:$16 sps:$4 sm:$0xff]   ;;  %v4799_v58 = vld [vmem:[#allocation7 + $0x140] ss:$16 sps:$4 sm:$0xff]  }
 0x111   :  { %1832 = vmatprep.subr.bf16.mxu0 %v4711_v59  ;;  %2004 = vmatprep.subr.bf16.mxu1 %v4714_v60  ;;  %v4802_v59 = vld [vmem:[#allocation7 + $0x148] ss:$16 sps:$4 sm:$0xff]   ;;  %v4807_v60 = vld [vmem:[#allocation7 + $0x164] ss:$16 sps:$4 sm:$0xff]  }
 0x114   :  { %1833 = vmatpush1.bf16.msra.mxu0 %v4709_v61  ;;  %2005 = vmatpush1.bf16.msra.mxu1 %v4712_v62  ;;  %v4810_v61 = vld [vmem:[#allocation7 + $0x16c] ss:$16 sps:$4 sm:$0xff]   ;;  %v4805_v62 = vld [vmem:[#allocation7 + $0x160] ss:$16 sps:$4 sm:$0xff]  }
 0x115   :  { %1834 = vmatprep.subr.bf16.mxu0 %v4717_v63  ;;  %2006 = vmatprep.subr.bf16.mxu1 %v4720_v0  ;;  %v4808_v63 = vld [vmem:[#allocation7 + $0x168] ss:$16 sps:$4 sm:$0xff]   ;;  %v4813_v0 = vld [vmem:[#allocation7 + $0x184] ss:$16 sps:$4 sm:$0xff]  }
 0x118   :  { %1835 = vmatpush1.bf16.msra.mxu0 %v4715_v1  ;;  %2007 = vmatpush1.bf16.msra.mxu1 %v4718_v2  ;;  %v4816_v1 = vld [vmem:[#allocation7 + $0x18c] ss:$16 sps:$4 sm:$0xff]   ;;  %v4811_v2 = vld [vmem:[#allocation7 + $0x180] ss:$16 sps:$4 sm:$0xff]  }
 0x119   :  { %1836 = vmatprep.subr.bf16.mxu0 %v4723_v3  ;;  %2008 = vmatprep.subr.bf16.mxu1 %v4726_v4  ;;  %v4814_v3 = vld [vmem:[#allocation7 + $0x188] ss:$16 sps:$4 sm:$0xff]   ;;  %v4819_v4 = vld [vmem:[#allocation7 + $0x1a4] ss:$16 sps:$4 sm:$0xff]  }
 0x11c   :  { %1837 = vmatpush1.bf16.msra.mxu0 %v4721_v5  ;;  %2009 = vmatpush1.bf16.msra.mxu1 %v4724_v6  ;;  %v4822_v5 = vld [vmem:[#allocation7 + $0x1ac] ss:$16 sps:$4 sm:$0xff]   ;;  %v4817_v6 = vld [vmem:[#allocation7 + $0x1a0] ss:$16 sps:$4 sm:$0xff]  }
 0x11d   :  { %1838 = vmatprep.subr.bf16.mxu0 %v4729_v7  ;;  %2010 = vmatprep.subr.bf16.mxu1 %v4732_v8  ;;  %v4820_v7 = vld [vmem:[#allocation7 + $0x1a8] ss:$16 sps:$4 sm:$0xff]   ;;  %v4825_v8 = vld [vmem:[#allocation7 + $0x1c4] ss:$16 sps:$4 sm:$0xff]  }
 0x120   :  { %1839 = vmatpush1.bf16.msra.mxu0 %v4727_v9  ;;  %2011 = vmatpush1.bf16.msra.mxu1 %v4730_v10  ;;  %v4828_v9 = vld [vmem:[#allocation7 + $0x1cc] ss:$16 sps:$4 sm:$0xff]   ;;  %v4823_v10 = vld [vmem:[#allocation7 + $0x1c0] ss:$16 sps:$4 sm:$0xff]  }
 0x121   :  { %1840 = vmatprep.subr.bf16.mxu0 %v4735_v11  ;;  %2012 = vmatprep.subr.bf16.mxu1 %v4738_v12  ;;  %v4826_v11 = vld [vmem:[#allocation7 + $0x1c8] ss:$16 sps:$4 sm:$0xff]   ;;  %v4831_v12 = vld [vmem:[#allocation7 + $0x1e4] ss:$16 sps:$4 sm:$0xff]  }
 0x124   :  { %1841 = vmatpush1.bf16.msra.mxu0 %v4733_v13  ;;  %2013 = vmatpush1.bf16.msra.mxu1 %v4736_v16  ;;  %v4834_v13 = vld [vmem:[#allocation7 + $0x1ec] ss:$16 sps:$4 sm:$0xff]   ;;  %v4829_v16 = vld [vmem:[#allocation7 + $0x1e0] ss:$16 sps:$4 sm:$0xff]  }
 0x125   :  { %2827 = vmatprep.subr.bf16.mxu0 %v4741_v17  ;;  %2913 = vmatprep.subr.bf16.mxu1 %v4744_v20  ;;  %v4832_v17 = vld [vmem:[#allocation7 + $0x1e8] ss:$16 sps:$4 sm:$0xff]   ;;  %v4837_v20 = vld [vmem:[#allocation7 + $0x204] ss:$16 sps:$4 sm:$0xff]  }
 0x127   :  { %1843 = vmatmul.mubr.bf16.vlgmr.msra.gmra.mrb[0].mxu0 %v3678_v21  ;;  %2015 = vmatmul.mubr.bf16.vlgmr.msra.gmra.mrb[0].mxu1 %v3678_v21  ;;  %v4840_v21 = vld [vmem:[#allocation7 + $0x20c] ss:$16 sps:$4 sm:$0xff]  }
 0x128   :  { %2828 = vmatpush1.bf16.msra.mxu0 %v4739_v22  ;;  %2914 = vmatpush1.bf16.msra.mxu1 %v4742_v14  ;;  %v341_v22 = vlaneseq }
 0x129   :  { %2829 = vmatprep.subr.bf16.mxu0 %v4747_v15  ;;  %2915 = vmatprep.subr.bf16.mxu1 %v4750_v23 }
 0x12a   :  { %v5191_v14 = vshrl.u32 %v341_v22, 7 }
 0x12c   :  { %2830 = vmatpush1.bf16.msra.mxu0 %v4745_v24  ;;  %2916 = vmatpush1.bf16.msra.mxu1 %v4748_v25  ;;  %v343_v15 = vsub.s32 0, %v5191_v14  ;;  %v351_v23 = vsub.s32 2, %v5191_v14  ;;  %v339_v24 = vld [vmem:[%s5583_s3] sm:$0xf]  ;;  %v347_v25 = vsub.s32 1, %v5191_v14 }
 0x12d   :  { %2831 = vmatprep.subr.bf16.mxu0 %v4753_v26  ;;  %2917 = vmatprep.subr.bf16.mxu1 %v4756_v27  ;;  %v355_v26 = vsub.s32 3, %v5191_v14 }
 0x12e   :  { %v344_v27 = vrot.slane %v339_v24, %v343_v15 }
 0x130   :  { %2832 = vmatpush1.bf16.msra.mxu0 %v4751_v18  ;;  %2918 = vmatpush1.bf16.msra.mxu1 %v4754_v19  ;;  %v352_v18 = vrot.slane %v339_v24, %v351_v23  ;;  %v348_v19 = vrot.slane %v339_v24, %v347_v25 }
 0x131   :  { %2833 = vmatprep.subr.bf16.mxu0 %v4759_v28  ;;  %2919 = vmatprep.subr.bf16.mxu1 %v4762_v29  ;;  %v356_v28 = vrot.slane %v339_v24, %v355_v26  ;;  %v4874_v24 = vld [vmem:[#allocation7 + $0x2c8] ss:$16 sps:$4 sm:$0xff]  }
 0x134   :  { %2834 = vmatpush1.bf16.msra.mxu0 %v4757_v30  ;;  %2920 = vmatpush1.bf16.msra.mxu1 %v4760_v31 }
 0x135   :  { %2835 = vmatprep.subr.bf16.mxu0 %v4765_v32  ;;  %2921 = vmatprep.subr.bf16.mxu1 %v4768_v33 }
 0x138   :  { %2836 = vmatpush1.bf16.msra.mxu0 %v4763_v34  ;;  %2922 = vmatpush1.bf16.msra.mxu1 %v4766_v35 }
 0x139   :  { %2837 = vmatprep.subr.bf16.mxu0 %v4771_v36  ;;  %2923 = vmatprep.subr.bf16.mxu1 %v4774_v37 }
 0x13c   :  { %2838 = vmatpush1.bf16.msra.mxu0 %v4769_v38  ;;  %2924 = vmatpush1.bf16.msra.mxu1 %v4772_v39 }
 0x13d   :  { %2839 = vmatprep.subr.bf16.mxu0 %v4777_v40  ;;  %2925 = vmatprep.subr.bf16.mxu1 %v4780_v41 }
 0x140   :  { %2840 = vmatpush1.bf16.msra.mxu0 %v4775_v42  ;;  %2926 = vmatpush1.bf16.msra.mxu1 %v4778_v43 }
 0x141   :  { %2841 = vmatprep.subr.bf16.mxu0 %v4783_v44  ;;  %2927 = vmatprep.subr.bf16.mxu1 %v4786_v45 }
 0x144   :  { %2842 = vmatpush1.bf16.msra.mxu0 %v4781_v46  ;;  %2928 = vmatpush1.bf16.msra.mxu1 %v4784_v47 }
 0x145   :  { %2843 = vmatprep.subr.bf16.mxu0 %v4789_v48  ;;  %2929 = vmatprep.subr.bf16.mxu1 %v4792_v49 }
 0x148   :  { %2844 = vmatpush1.bf16.msra.mxu0 %v4787_v50  ;;  %2930 = vmatpush1.bf16.msra.mxu1 %v4790_v51 }
 0x149   :  { %2845 = vmatprep.subr.bf16.mxu0 %v4795_v52  ;;  %2931 = vmatprep.subr.bf16.mxu1 %v4798_v53 }
 0x14c   :  { %2846 = vmatpush1.bf16.msra.mxu0 %v4793_v54  ;;  %2932 = vmatpush1.bf16.msra.mxu1 %v4796_v55 }
 0x14d   :  { %2847 = vmatprep.subr.bf16.mxu0 %v4801_v56  ;;  %2933 = vmatprep.subr.bf16.mxu1 %v4804_v57  ;;  %v4835_v57 = vld [vmem:[#allocation7 + $0x200] ss:$16 sps:$4 sm:$0xff]  }
 0x150   :  { %2848 = vmatpush1.bf16.msra.mxu0 %v4799_v58  ;;  %2934 = vmatpush1.bf16.msra.mxu1 %v4802_v59  ;;  %v4838_v58 = vld [vmem:[#allocation7 + $0x208] ss:$16 sps:$4 sm:$0xff]   ;;  %v4843_v59 = vld [vmem:[#allocation7 + $0x224] ss:$16 sps:$4 sm:$0xff]  }
 0x151   :  { %2849 = vmatprep.subr.bf16.mxu0 %v4807_v60  ;;  %2935 = vmatprep.subr.bf16.mxu1 %v4810_v61  ;;  %v4846_v60 = vld [vmem:[#allocation7 + $0x22c] ss:$16 sps:$4 sm:$0xff]   ;;  %v4841_v61 = vld [vmem:[#allocation7 + $0x220] ss:$16 sps:$4 sm:$0xff]  }
 0x154   :  { %2850 = vmatpush1.bf16.msra.mxu0 %v4805_v62  ;;  %2936 = vmatpush1.bf16.msra.mxu1 %v4808_v63  ;;  %v4844_v62 = vld [vmem:[#allocation7 + $0x228] ss:$16 sps:$4 sm:$0xff]   ;;  %v4849_v63 = vld [vmem:[#allocation7 + $0x244] ss:$16 sps:$4 sm:$0xff]  }
 0x155   :  { %2851 = vmatprep.subr.bf16.mxu0 %v4813_v0  ;;  %2937 = vmatprep.subr.bf16.mxu1 %v4816_v1  ;;  %v4852_v0 = vld [vmem:[#allocation7 + $0x24c] ss:$16 sps:$4 sm:$0xff]   ;;  %v4847_v1 = vld [vmem:[#allocation7 + $0x240] ss:$16 sps:$4 sm:$0xff]  }
 0x158   :  { %2852 = vmatpush1.bf16.msra.mxu0 %v4811_v2  ;;  %2938 = vmatpush1.bf16.msra.mxu1 %v4814_v3  ;;  %v4850_v2 = vld [vmem:[#allocation7 + $0x248] ss:$16 sps:$4 sm:$0xff]   ;;  %v4855_v3 = vld [vmem:[#allocation7 + $0x264] ss:$16 sps:$4 sm:$0xff]  }
 0x159   :  { %2853 = vmatprep.subr.bf16.mxu0 %v4819_v4  ;;  %2939 = vmatprep.subr.bf16.mxu1 %v4822_v5  ;;  %v4858_v4 = vld [vmem:[#allocation7 + $0x26c] ss:$16 sps:$4 sm:$0xff]   ;;  %v4853_v5 = vld [vmem:[#allocation7 + $0x260] ss:$16 sps:$4 sm:$0xff]  }
 0x15c   :  { %2854 = vmatpush1.bf16.msra.mxu0 %v4817_v6  ;;  %2940 = vmatpush1.bf16.msra.mxu1 %v4820_v7  ;;  %v4856_v6 = vld [vmem:[#allocation7 + $0x268] ss:$16 sps:$4 sm:$0xff]   ;;  %v4861_v7 = vld [vmem:[#allocation7 + $0x284] ss:$16 sps:$4 sm:$0xff]  }
 0x15d   :  { %2855 = vmatprep.subr.bf16.mxu0 %v4825_v8  ;;  %2941 = vmatprep.subr.bf16.mxu1 %v4828_v9  ;;  %v4864_v8 = vld [vmem:[#allocation7 + $0x28c] ss:$16 sps:$4 sm:$0xff]   ;;  %v4859_v9 = vld [vmem:[#allocation7 + $0x280] ss:$16 sps:$4 sm:$0xff]  }
 0x160   :  { %2856 = vmatpush1.bf16.msra.mxu0 %v4823_v10  ;;  %2942 = vmatpush1.bf16.msra.mxu1 %v4826_v11  ;;  %v4862_v10 = vld [vmem:[#allocation7 + $0x288] ss:$16 sps:$4 sm:$0xff]   ;;  %v4867_v11 = vld [vmem:[#allocation7 + $0x2a4] ss:$16 sps:$4 sm:$0xff]  }
 0x161   :  { %2857 = vmatprep.subr.bf16.mxu0 %v4831_v12  ;;  %2943 = vmatprep.subr.bf16.mxu1 %v4834_v13  ;;  %v4870_v12 = vld [vmem:[#allocation7 + $0x2ac] ss:$16 sps:$4 sm:$0xff]   ;;  %v4865_v13 = vld [vmem:[#allocation7 + $0x2a0] ss:$16 sps:$4 sm:$0xff]  }
 0x164   :  { %2858 = vmatpush1.bf16.msra.mxu0 %v4829_v16  ;;  %2944 = vmatpush1.bf16.msra.mxu1 %v4832_v17  ;;  %v4868_v16 = vld [vmem:[#allocation7 + $0x2a8] ss:$16 sps:$4 sm:$0xff]   ;;  %v4873_v17 = vld [vmem:[#allocation7 + $0x2c4] ss:$16 sps:$4 sm:$0xff]  }
 0x165   :  { %2870 = vmatprep.subr.bf16.mxu0 %v4837_v20  ;;  %2956 = vmatprep.subr.bf16.mxu1 %v4840_v21  ;;  %v4876_v20 = vld [vmem:[#allocation7 + $0x2cc] ss:$16 sps:$4 sm:$0xff]   ;;  %v4871_v21 = vld [vmem:[#allocation7 + $0x2c0] ss:$16 sps:$4 sm:$0xff]  }
 0x1fa   :  { %v1844_v29 = vpop.f32.mrb[0].mxu0  ;;  %v2016_v30 = vpop.f32.mrb[0].mxu1 }
 0x1fb   :  { %v4287_v31 = vadd.f32 %v1844_v29, %v344_v27  ;;  %v4291_v32 = vadd.f32 %v2016_v30, %v352_v18  ;;  %v1846_v33 = vpop.f32.mrb[1].mxu0  ;;  %v2018_v34 = vpop.f32.mrb[1].mxu1  ;;  %v4885_v29 = vld [vmem:[#allocation7 + $0x304] ss:$16 sps:$4 sm:$0xff]   ;;  %v4888_v30 = vld [vmem:[#allocation7 + $0x30c] ss:$16 sps:$4 sm:$0xff]  }
 0x1fc   :  { %v4288_v35 = vadd.f32 %v1846_v33, %v348_v19  ;;  %v4292_v36 = vadd.f32 %v2018_v34, %v356_v28  ;;  %v1848_v37 = vpop.f32.mrb[2].mxu0  ;;  %v2020_v38 = vpop.f32.mrb[2].mxu1  ;;  %v4891_v33 = vld [vmem:[#allocation7 + $0x324] ss:$16 sps:$4 sm:$0xff]   ;;  %v4894_v34 = vld [vmem:[#allocation7 + $0x32c] ss:$16 sps:$4 sm:$0xff]  }
 0x1fd   :  { %v4289_v39 = vadd.f32 %v1848_v37, %v344_v27  ;;  %v4293_v40 = vadd.f32 %v2020_v38, %v352_v18  ;;  %v1850_v41 = vpop.f32.mrb[3].mxu0  ;;  %v2022_v42 = vpop.f32.mrb[3].mxu1  ;;  %v2025_v45 = vmax.f32 %v4287_v31, 0.0  ;;  %v2027_v46 = vmax.f32 %v4291_v32, 0.0  ;;  %v4879_v27 = vld [vmem:[#allocation7 + $0x2e4] ss:$16 sps:$4 sm:$0xff]  }
 0x1fe   :  { %v4290_v43 = vadd.f32 %v1850_v41, %v348_v19  ;;  %v4294_v44 = vadd.f32 %v2022_v42, %v356_v28  ;;  %v2026_v49 = vmax.f32 %v4288_v35, 0.0  ;;  %v2028_v50 = vmax.f32 %v4292_v36, 0.0  ;;  %v4882_v18 = vld [vmem:[#allocation7 + $0x2ec] ss:$16 sps:$4 sm:$0xff]   ;;  %v4877_v19 = vld [vmem:[#allocation7 + $0x2e0] ss:$16 sps:$4 sm:$0xff]  }
 0x1ff   :  { %v2029_v47 = vmax.f32 %v4289_v39, 0.0  ;;  %v2031_v48 = vmax.f32 %v4293_v40, 0.0  ;;  %v4880_v28 = vld [vmem:[#allocation7 + $0x2e8] ss:$16 sps:$4 sm:$0xff]   ;;  %v4883_v31 = vld [vmem:[#allocation7 + $0x300] ss:$16 sps:$4 sm:$0xff]  }
 0x200   :  { %v2030_v51 = vmax.f32 %v4290_v43, 0.0  ;;  %v2032_v52 = vmax.f32 %v4294_v44, 0.0  ;;  %v4886_v32 = vld [vmem:[#allocation7 + $0x308] ss:$16 sps:$4 sm:$0xff]   ;;  %v4889_v35 = vld [vmem:[#allocation7 + $0x320] ss:$16 sps:$4 sm:$0xff]  }
 0x201   :  { %v5208_v53 = vpack.c.bf16 %v2029_v47, %v2025_v45  ;;  %v5210_v54 = vpack.c.bf16 %v2031_v48, %v2027_v46  ;;  %v4892_v36 = vld [vmem:[#allocation7 + $0x328] ss:$16 sps:$4 sm:$0xff]   ;;  %v4897_v37 = vld [vmem:[#allocation7 + $0x344] ss:$16 sps:$4 sm:$0xff]   ;;  %v4900_v38 = vld [vmem:[#allocation7 + $0x34c] ss:$16 sps:$4 sm:$0xff]  }
 0x202   :  { %v5212_v55 = vpack.c.bf16 %v2030_v51, %v2026_v49  ;;  %v5214_v56 = vpack.c.bf16 %v2032_v52, %v2028_v50  ;;  %v4895_v39 = vld [vmem:[#allocation7 + $0x340] ss:$16 sps:$4 sm:$0xff]   ;;  %v4898_v40 = vld [vmem:[#allocation7 + $0x348] ss:$16 sps:$4 sm:$0xff]   ;;  %v4903_v41 = vld [vmem:[#allocation7 + $0x364] ss:$16 sps:$4 sm:$0xff]  }
 0x203   :  { %v4906_v42 = vld [vmem:[#allocation7 + $0x36c] ss:$16 sps:$4 sm:$0xff]   ;;  %v4901_v43 = vld [vmem:[#allocation7 + $0x360] ss:$16 sps:$4 sm:$0xff]   ;;  %v4904_v44 = vld [vmem:[#allocation7 + $0x368] ss:$16 sps:$4 sm:$0xff]  }
 0x204   :  { %2859 = vmatprep.mubr.bf16.mxu0 %v5212_v55  ;;  %2945 = vmatprep.mubr.bf16.mxu1 %v5212_v55  ;;  %v4909_v45 = vld [vmem:[#allocation7 + $0x384] ss:$16 sps:$4 sm:$0xff]   ;;  %v4912_v46 = vld [vmem:[#allocation7 + $0x38c] ss:$16 sps:$4 sm:$0xff]   ;;  %v4907_v47 = vld [vmem:[#allocation7 + $0x380] ss:$16 sps:$4 sm:$0xff]  }
 0x205   :  { %2860 = vmatmul.mubr.bf16.vlgmr.msra.gmra.mrb[4].mxu0 %v5208_v53  ;;  %2946 = vmatmul.mubr.bf16.vlgmr.msra.gmra.mrb[4].mxu1 %v5208_v53  ;;  %v4910_v48 = vld [vmem:[#allocation7 + $0x388] ss:$16 sps:$4 sm:$0xff]   ;;  %v4915_v49 = vld [vmem:[#allocation7 + $0x3a4] ss:$16 sps:$4 sm:$0xff]   ;;  %v4918_v50 = vld [vmem:[#allocation7 + $0x3ac] ss:$16 sps:$4 sm:$0xff]  }
 0x206   :  { %2871 = vmatpush1.bf16.msra.mxu0 %v4835_v57  ;;  %2957 = vmatpush1.bf16.msra.mxu1 %v4838_v58  ;;  %v4913_v51 = vld [vmem:[#allocation7 + $0x3a0] ss:$16 sps:$4 sm:$0xff]   ;;  %v4916_v52 = vld [vmem:[#allocation7 + $0x3a8] ss:$16 sps:$4 sm:$0xff]   ;;  %v4921_v57 = vld [vmem:[#allocation7 + $0x3c4] ss:$16 sps:$4 sm:$0xff]  }
 0x207   :  { %2902 = vmatprep.mubr.bf16.mxu0 %v5214_v56  ;;  %2988 = vmatprep.mubr.bf16.mxu1 %v5214_v56  ;;  %v4924_v58 = vld [vmem:[#allocation7 + $0x3cc] ss:$16 sps:$4 sm:$0xff]  }
 0x208   :  { %2872 = vmatprep.subr.bf16.mxu0 %v4843_v59  ;;  %2958 = vmatprep.subr.bf16.mxu1 %v4846_v60  ;;  %v4919_v59 = vld [vmem:[#allocation7 + $0x3c0] ss:$16 sps:$4 sm:$0xff]   ;;  %v4922_v60 = vld [vmem:[#allocation7 + $0x3c8] ss:$16 sps:$4 sm:$0xff]  }
 0x20a   :  { %2873 = vmatpush1.bf16.msra.mxu0 %v4841_v61  ;;  %2959 = vmatpush1.bf16.msra.mxu1 %v4844_v62  ;;  %v4927_v61 = vld [vmem:[#allocation7 + $0x3e4] ss:$16 sps:$4 sm:$0xff]   ;;  %v4930_v62 = vld [vmem:[#allocation7 + $0x3ec] ss:$16 sps:$4 sm:$0xff]  }
 0x20b   :  { %2874 = vmatprep.subr.bf16.mxu0 %v4849_v63  ;;  %2960 = vmatprep.subr.bf16.mxu1 %v4852_v0  ;;  %v4925_v63 = vld [vmem:[#allocation7 + $0x3e0] ss:$16 sps:$4 sm:$0xff]   ;;  %v4928_v0 = vld [vmem:[#allocation7 + $0x3e8] ss:$16 sps:$4 sm:$0xff]  }
 0x20e   :  { %2875 = vmatpush1.bf16.msra.mxu0 %v4847_v1  ;;  %2961 = vmatpush1.bf16.msra.mxu1 %v4850_v2  ;;  %v3047_v1 = vld [vmem:[%s5586_s6 + $0x80] sm:$0xff]  ;;  %v3048_v2 = vld [vmem:[%s5586_s6 + $0x88] sm:$0xff] }
 0x20f   :  { %2876 = vmatprep.subr.bf16.mxu0 %v4855_v3  ;;  %2962 = vmatprep.subr.bf16.mxu1 %v4858_v4  ;;  %v4191_v3 = vpack.c.bf16 %v3048_v2, %v3047_v1 }
 0x212   :  { %2877 = vmatpush1.bf16.msra.mxu0 %v4853_v5  ;;  %2963 = vmatpush1.bf16.msra.mxu1 %v4856_v6  ;;  %v3050_v5 = vld [vmem:[%s5586_s6 + $0x98] sm:$0xff] }
 0x213   :  { %2878 = vmatprep.subr.bf16.mxu0 %v4861_v7  ;;  %2964 = vmatprep.subr.bf16.mxu1 %v4864_v8  ;;  %v3033_v7 = vld [vmem:[%s5586_s6 + $0x10] sm:$0xff]  ;;  %v3034_v8 = vld [vmem:[%s5586_s6 + $0x18] sm:$0xff] }
 0x216   :  { %2879 = vmatpush1.bf16.msra.mxu0 %v4859_v9  ;;  %2965 = vmatpush1.bf16.msra.mxu1 %v4862_v10  ;;  %v4197_v9 = vpack.c.bf16 %v3034_v8, %v3033_v7  ;;  %v3051_v10 = vld [vmem:[%s5586_s6 + $0xa0] sm:$0xff] }
 0x217   :  { %2880 = vmatprep.subr.bf16.mxu0 %v4867_v11  ;;  %2966 = vmatprep.subr.bf16.mxu1 %v4870_v12  ;;  %v3052_v11 = vld [vmem:[%s5586_s6 + $0xa8] sm:$0xff] }
 0x218   :  { %v4199_v12 = vpack.c.bf16 %v3052_v11, %v3051_v10 }
 0x21a   :  { %2881 = vmatpush1.bf16.msra.mxu0 %v4865_v13  ;;  %2967 = vmatpush1.bf16.msra.mxu1 %v4868_v16  ;;  %v3035_v13 = vld [vmem:[%s5586_s6 + $0x20] sm:$0xff]  ;;  %v3036_v16 = vld [vmem:[%s5586_s6 + $0x28] sm:$0xff] }
 0x21b   :  { %2882 = vmatprep.subr.bf16.mxu0 %v4873_v17  ;;  %2968 = vmatprep.subr.bf16.mxu1 %v4876_v20  ;;  %v4201_v17 = vpack.c.bf16 %v3036_v16, %v3035_v13  ;;  %v3053_v20 = vld [vmem:[%s5586_s6 + $0xb0] sm:$0xff] }
 0x21e   :  { %2883 = vmatpush1.bf16.msra.mxu0 %v4871_v21  ;;  %2969 = vmatpush1.bf16.msra.mxu1 %v4874_v24  ;;  %v3054_v21 = vld [vmem:[%s5586_s6 + $0xb8] sm:$0xff] }
 0x21f   :  { %2884 = vmatprep.subr.bf16.mxu0 %v4879_v27  ;;  %2970 = vmatprep.subr.bf16.mxu1 %v4882_v18  ;;  %v4203_v24 = vpack.c.bf16 %v3054_v21, %v3053_v20  ;;  %v3037_v27 = vld [vmem:[%s5586_s6 + $0x30] sm:$0xff]  ;;  %v3038_v18 = vld [vmem:[%s5586_s6 + $0x38] sm:$0xff] }
 0x222   :  { %2885 = vmatpush1.bf16.msra.mxu0 %v4877_v19  ;;  %2971 = vmatpush1.bf16.msra.mxu1 %v4880_v28  ;;  %v4205_v19 = vpack.c.bf16 %v3038_v18, %v3037_v27  ;;  %v3055_v28 = vld [vmem:[%s5586_s6 + $0xc0] sm:$0xff] }
 0x223   :  { %2886 = vmatprep.subr.bf16.mxu0 %v4885_v29  ;;  %2972 = vmatprep.subr.bf16.mxu1 %v4888_v30  ;;  %v3056_v29 = vld [vmem:[%s5586_s6 + $0xc8] sm:$0xff] }
 0x224   :  { %v4207_v30 = vpack.c.bf16 %v3056_v29, %v3055_v28 }
 0x226   :  { %2887 = vmatpush1.bf16.msra.mxu0 %v4883_v31  ;;  %2973 = vmatpush1.bf16.msra.mxu1 %v4886_v32  ;;  %v3039_v31 = vld [vmem:[%s5586_s6 + $0x40] sm:$0xff]  ;;  %v3040_v32 = vld [vmem:[%s5586_s6 + $0x48] sm:$0xff] }
 0x227   :  { %2888 = vmatprep.subr.bf16.mxu0 %v4891_v33  ;;  %2974 = vmatprep.subr.bf16.mxu1 %v4894_v34  ;;  %v4209_v33 = vpack.c.bf16 %v3040_v32, %v3039_v31  ;;  %v3057_v34 = vld [vmem:[%s5586_s6 + $0xd0] sm:$0xff] }
 0x22a   :  { %2889 = vmatpush1.bf16.msra.mxu0 %v4889_v35  ;;  %2975 = vmatpush1.bf16.msra.mxu1 %v4892_v36  ;;  %v3058_v35 = vld [vmem:[%s5586_s6 + $0xd8] sm:$0xff] }
 0x22b   :  { %2890 = vmatprep.subr.bf16.mxu0 %v4897_v37  ;;  %2976 = vmatprep.subr.bf16.mxu1 %v4900_v38  ;;  %v4211_v36 = vpack.c.bf16 %v3058_v35, %v3057_v34  ;;  %v3041_v37 = vld [vmem:[%s5586_s6 + $0x50] sm:$0xff]  ;;  %v3042_v38 = vld [vmem:[%s5586_s6 + $0x58] sm:$0xff] }
 0x22e   :  { %2891 = vmatpush1.bf16.msra.mxu0 %v4895_v39  ;;  %2977 = vmatpush1.bf16.msra.mxu1 %v4898_v40  ;;  %v4213_v39 = vpack.c.bf16 %v3042_v38, %v3041_v37  ;;  %v3059_v40 = vld [vmem:[%s5586_s6 + $0xe0] sm:$0xff] }
 0x22f   :  { %2892 = vmatprep.subr.bf16.mxu0 %v4903_v41  ;;  %2978 = vmatprep.subr.bf16.mxu1 %v4906_v42  ;;  %v3060_v41 = vld [vmem:[%s5586_s6 + $0xe8] sm:$0xff]  ;;  %v3043_v42 = vld [vmem:[%s5586_s6 + $0x60] sm:$0xff] }
 0x230   :  { %v4068_v37 = vld [vmem:[%s5587_s7] ss:$0 sm:$0xff] }
 0x232   :  { %2893 = vmatpush1.bf16.msra.mxu0 %v4901_v43  ;;  %2979 = vmatpush1.bf16.msra.mxu1 %v4904_v44  ;;  %v4215_v43 = vpack.c.bf16 %v3060_v41, %v3059_v40  ;;  %v3044_v44 = vld [vmem:[%s5586_s6 + $0x68] sm:$0xff] }
 0x233   :  { %2894 = vmatprep.subr.bf16.mxu0 %v4909_v45  ;;  %2980 = vmatprep.subr.bf16.mxu1 %v4912_v46  ;;  %v3061_v45 = vld [vmem:[%s5586_s6 + $0xf0] sm:$0xff]  ;;  %v3062_v46 = vld [vmem:[%s5586_s6 + $0xf8] sm:$0xff] }
 0x236   :  { %2895 = vmatpush1.bf16.msra.mxu0 %v4907_v47  ;;  %2981 = vmatpush1.bf16.msra.mxu1 %v4910_v48  ;;  %v4217_v47 = vpack.c.bf16 %v3044_v44, %v3043_v42  ;;  %v4219_v48 = vpack.c.bf16 %v3062_v46, %v3061_v45 }
 0x237   :  { %2896 = vmatprep.subr.bf16.mxu0 %v4915_v49  ;;  %2982 = vmatprep.subr.bf16.mxu1 %v4918_v50  ;;  %v3045_v49 = vld [vmem:[%s5586_s6 + $0x70] sm:$0xff]  ;;  %v3046_v50 = vld [vmem:[%s5586_s6 + $0x78] sm:$0xff] }
 0x23a   :  { %2897 = vmatpush1.bf16.msra.mxu0 %v4913_v51  ;;  %2983 = vmatpush1.bf16.msra.mxu1 %v4916_v52  ;;  %v4221_v51 = vpack.c.bf16 %v3046_v50, %v3045_v49  ;;  %v2165_v52 = vld [vmem:[%s5585_s5] sm:$0xf]  ;;  %s5057_s5 = smov [#allocation9]  }
 0x23b   :  { %2898 = vmatprep.subr.bf16.mxu0 %v4921_v57  ;;  %2984 = vmatprep.subr.bf16.mxu1 %v4924_v58  ;;  %v2178_v57 = vrot.slane %v2165_v52, %v351_v23  ;;  %v2182_v58 = vrot.slane %v2165_v52, %v355_v26  ;;  %v2170_v26 = vrot.slane %v2165_v52, %v343_v15 }
 0x23c   :  { %v2174_v7 = vrot.slane %v2165_v52, %v347_v25  ;;  %v3145_v52 = vld [vmem:[%s5581_s1] sm:$0xff] }
 0x23e   :  { %2899 = vmatpush1.bf16.msra.mxu0 %v4919_v59  ;;  %2985 = vmatpush1.bf16.msra.mxu1 %v4922_v60 }
 0x23f   :  { %2900 = vmatprep.subr.bf16.mxu0 %v4927_v61  ;;  %2986 = vmatprep.subr.bf16.mxu1 %v4930_v62 }
 0x242   :  { %2901 = vmatpush1.bf16.msra.mxu0 %v4925_v63  ;;  %2987 = vmatpush1.bf16.msra.mxu1 %v4928_v0 }
 0x243   :  { %3231 = vmatprep.subr.bf16.mxu1 %v5212_v55  ;;  %4192 = vmatprep.subr.bf16.mxu0 %v4191_v3  ;;  %v3031_v55 = vld [vmem:[%s5586_s6] sm:$0xff] }
 0x245   :  { %2903 = vmatmul.mubr.bf16.vlgmr.msra.gmra.mrb[4].mxu0 %v5210_v54  ;;  %2989 = vmatmul.mubr.bf16.vlgmr.msra.gmra.mrb[4].mxu1 %v5210_v54 }
 0x246   :  { %3232 = vmatpush1.bf16.msra.mxu1 %v5208_v53  ;;  %v3032_v53 = vld [vmem:[%s5586_s6 + $0x8] sm:$0xff] }
 0x247   :  { %3272 = vmatprep.subr.bf16.mxu1 %v5214_v56  ;;  %v4193_v4 = vpack.c.bf16 %v3032_v53, %v3031_v55  ;;  %v3049_v56 = vld [vmem:[%s5586_s6 + $0x90] sm:$0xff]  ;;  %s3660_s6 = sshll.u32 %s5057_s5, 4  ;;  %s3661_s6 = int_to_ptr.vmem [resolvable:$true] %s3660_s6 }
 0x248   :  { %v4195_v6 = vpack.c.bf16 %v3050_v5, %v3049_v56  ;;  %p5022_p3 = scmp.lt.s32.totalorder %s3661_s6, %s3661_s6 }
 0x249   :  { %4194 = vmatpush3.bf16.msra.mxu0 %v4193_v4 }
 0x24a   :  { %4196 = vmatprep.subr.bf16.mxu0 %v4195_v6 }
 0x24d   :  { %4198 = vmatpush3.bf16.msra.mxu0 %v4197_v9 }
 0x24e   :  { %4200 = vmatprep.subr.bf16.mxu0 %v4199_v12 }
 0x251   :  { %4202 = vmatpush3.bf16.msra.mxu0 %v4201_v17 }
 0x252   :  { %4204 = vmatprep.subr.bf16.mxu0 %v4203_v24 }
 0x255   :  { %4206 = vmatpush3.bf16.msra.mxu0 %v4205_v19 }
 0x256   :  { %4208 = vmatprep.subr.bf16.mxu0 %v4207_v30 }
 0x259   :  { %4210 = vmatpush3.bf16.msra.mxu0 %v4209_v33 }
 0x25a   :  { %4212 = vmatprep.subr.bf16.mxu0 %v4211_v36 }
 0x25d   :  { %4214 = vmatpush3.bf16.msra.mxu0 %v4213_v39 }
 0x25e   :  { %4216 = vmatprep.subr.bf16.mxu0 %v4215_v43 }
 0x261   :  { %4218 = vmatpush3.bf16.msra.mxu0 %v4217_v47 }
 0x262   :  { %4220 = vmatprep.subr.bf16.mxu0 %v4219_v48 }
 0x265   :  { %4222 = vmatpush3.bf16.msra.mxu0 %v4221_v51  ;;  %v5050_v51 = vmov 0  }
 0x266   :  { %4348 = vset.pattern.permute.xlu1 %v5050_v51  ;;  %3263 = vmatprep.mubr.bf16.mxu1 %v5050_v51 }
 0x267   :  { %4354 = vset.pattern.permute.xlu0 %v5050_v51 }
 0x318   :  { %v2904_v59 = vpop.f32.mrb[4].mxu0  ;;  %v2990_v60 = vpop.f32.mrb[4].mxu1 }
 0x319   :  { %v4299_v61 = vadd.f32 %v2990_v60, %v2178_v57  ;;  %v2906_v62 = vpop.f32.mrb[5].mxu0  ;;  %v2992_v63 = vpop.f32.mrb[5].mxu1  ;;  %v4295_v8 = vadd.f32 %v2904_v59, %v2170_v26  ;;  %v3146_v59 = vld [vmem:[%s5581_s1 + $0x8] sm:$0xff] }
 0x31a   :  { %v4300_v0 = vadd.f32 %v2992_v63, %v2182_v58  ;;  %v2908_v1 = vpop.f32.mrb[6].mxu0  ;;  %v2994_v2 = vpop.f32.mrb[6].mxu1  ;;  %v4296_v9 = vadd.f32 %v2906_v62, %v2174_v7 }
 0x31b   :  { %v4064_v3 = vmul.f32 -1.442695, %v4299_v61  ;;  %v4301_v55 = vadd.f32 %v2994_v2, %v2178_v57  ;;  %v2910_v53 = vpop.f32.mrb[7].mxu0  ;;  %v2996_v4 = vpop.f32.mrb[7].mxu1  ;;  %v4297_v13 = vadd.f32 %v2908_v1, %v2170_v26 }
 0x31c   :  { %v4065_v56 = vmul.f32 -1.442695, %v4300_v0  ;;  %v4302_v5 = vadd.f32 %v2996_v4, %v2182_v58  ;;  %v4298_v20 = vadd.f32 %v2910_v53, %v2174_v7 }
 0x31d   :  { %4931 = vpow2.f32 %v4064_v3  ;;  %v4066_v6 = vmul.f32 -1.442695, %v4301_v55 }
 0x31e   :  { %4933 = vpow2.f32 %v4065_v56  ;;  %v4067_v23 = vmul.f32 -1.442695, %v4302_v5 }
 0x31f   :  { %4935 = vpow2.f32 %v4066_v6  ;;  %v5051_v6 = vmov 0.0  }
 0x320   :  { %4937 = vpow2.f32 %v4067_v23  ;;  %74 = vst.msk [vmem:[#allocation3] sm:$0x3] %vm73_vm1, %v5051_v6  ;;  %v3188_v23 = vand.u32 127, %v341_v22 }
 0x321   :  { %4939 = vtanh.f32 %v4295_v8  ;;  %v3183_v8 = vadd.s32 8, %v5191_v14 }
 0x322   :  { %4941 = vtanh.f32 %v4296_v9  ;;  %v3189_v26 = vmul.u32 8, %v3188_v23 }
 0x324   :  { %v3192_v7 = vadd.s32 8, %v3189_v26  ;;  %vm3190_vm2 = vcmp.ge.s32.totalorder %v5191_v14, %v3189_v26  ;;  %vm3191_vm4 = vcmp.ge.s32.totalorder %v3183_v8, %v3189_v26 }
 0x326   :  { %vm3193_vm3 = vcmp.lt.s32.totalorder %v5191_v14, %v3192_v7  ;;  %vm3194_vm5 = vcmp.lt.s32.totalorder %v3183_v8, %v3192_v7 }
 0x327   :  { %v4932_v10 = vpop.eup %4931  ;;  %vm3195_vm6 = vmand %vm3190_vm2, %vm3193_vm3  ;;  %v3337_v7 = vld [vmem:[#allocation3] sm:$0x3] }
 0x328   :  { %v4934_v11 = vpop.eup %4933  ;;  %v3015_v12 = vadd.f32 1.0, %v4932_v10  ;;  %vm3196_vm7 = vmand %vm3191_vm4, %vm3194_vm5 }
 0x329   :  { %v3016_v16 = vadd.f32 1.0, %v4934_v11  ;;  %v4936_v17 = vpop.eup %4935 }
 0x32a   :  { %4943 = vrcp.f32 %v3015_v12  ;;  %v3017_v21 = vadd.f32 1.0, %v4936_v17  ;;  %v4938_v15 = vpop.eup %4937  ;;  %v5052_v17 = vmov 1065369472  }
 0x32b   :  { %4945 = vrcp.f32 %v3016_v16  ;;  %v3018_v24 = vadd.f32 1.0, %v4938_v15  ;;  %v4940_v25 = vpop.eup %4939 }
 0x32c   :  { %4947 = vtanh.f32 %v4297_v13  ;;  %v4942_v27 = vpop.eup %4941 }
 0x32d   :  { %4949 = vrcp.f32 %v3017_v21  ;;  %v3417_v21 = vld [vmem:[%s5588_s8 + $0x88] sm:$0xff] }
 0x32e   :  { %4951 = vtanh.f32 %v4298_v20  ;;  %v3416_v20 = vld [vmem:[%s5588_s8 + $0x80] sm:$0xff] }
 0x32f   :  { %4953 = vrcp.f32 %v3018_v24  ;;  %v4223_v15 = vpack.c.bf16 %v3417_v21, %v3416_v20  ;;  %v3401_v24 = vld [vmem:[%s5588_s8 + $0x8] sm:$0xff]  ;;  %v3406_v20 = vld [vmem:[%s5588_s8 + $0x30] sm:$0xff]  ;;  %v3407_v21 = vld [vmem:[%s5588_s8 + $0x38] sm:$0xff] }
 0x334   :  { %v4944_v18 = vpop.eup %4943 }
 0x335   :  { %v4946_v19 = vpop.eup %4945  ;;  %v3027_v28 = vmul.f32 %v4944_v18, %v4940_v25  ;;  %v3448_v25 = vld [vmem:[%s5588_s8 + $0x180] sm:$0xff] }
 0x336   :  { %v4948_v29 = vpop.eup %4947  ;;  %v3028_v30 = vmul.f32 %v4946_v19, %v4942_v27  ;;  %v3449_v27 = vld [vmem:[%s5588_s8 + $0x188] sm:$0xff] }
 0x337   :  { %v4950_v31 = vpop.eup %4949  ;;  %v4255_v19 = vpack.c.bf16 %v3449_v27, %v3448_v25  ;;  %v3438_v25 = vld [vmem:[%s5588_s8 + $0x130] sm:$0xff] }
 0x338   :  { %v4952_v32 = vpop.eup %4951  ;;  %3134 = vmatprep.mubr.f32.mxu0 %v3028_v30  ;;  %v3029_v33 = vmul.f32 %v4950_v31, %v4948_v29  ;;  %v3433_v29 = vld [vmem:[%s5588_s8 + $0x108] sm:$0xff]  ;;  %v3418_v30 = vld [vmem:[%s5588_s8 + $0x90] sm:$0xff] }
 0x339   :  { %v4954_v34 = vpop.eup %4953  ;;  %3135 = vmatmul.mubr.f32.vlgmr.msra.gmra.mrb[8].mxu0 %v3027_v28  ;;  %v3432_v28 = vld [vmem:[%s5588_s8 + $0x100] sm:$0xff]  ;;  %4256 = vmatprep.subr.bf16.mxu0 %v4255_v19 }
 0x33a   :  { %v3030_v35 = vmul.f32 %v4954_v34, %v4952_v32  ;;  %v4257_v31 = vpack.c.bf16 %v3433_v29, %v3432_v28  ;;  %v3419_v32 = vld [vmem:[%s5588_s8 + $0x98] sm:$0xff]  ;;  %v3424_v19 = vld [vmem:[%s5588_s8 + $0xc0] sm:$0xff]  ;;  %v3425_v28 = vld [vmem:[%s5588_s8 + $0xc8] sm:$0xff] }
 0x33b   :  { %v3403_v34 = vld [vmem:[%s5588_s8 + $0x18] sm:$0xff] }
 0x33c   :  { %3139 = vmatprep.mubr.f32.mxu0 %v3030_v35  ;;  %v4227_v35 = vpack.c.bf16 %v3419_v32, %v3418_v30  ;;  %4258 = vmatpush3.bf16.msra.mxu0 %v4257_v31  ;;  %v4239_v30 = vpack.c.bf16 %v3425_v28, %v3424_v19  ;;  %v3408_v31 = vld [vmem:[%s5588_s8 + $0x40] sm:$0xff]  ;;  %v3409_v32 = vld [vmem:[%s5588_s8 + $0x48] sm:$0xff] }
 0x33d   :  { %3140 = vmatmul.mubr.f32.gmra.mrb[10].mxu0 %v3029_v33  ;;  %v3402_v33 = vld [vmem:[%s5588_s8 + $0x10] sm:$0xff] }
 0x40c   :  { %v4107_v36 = vpop.f32.mrb[8].mxu0 }
 0x40d   :  { %v4108_v38 = vpop.f32.mrb[9].mxu0 }
 0x40e   :  { %v4109_v39 = vadd.f32 %v4108_v38, %v4107_v36  ;;  %v4229_v36 = vpack.c.bf16 %v3403_v34, %v3402_v33  ;;  %v3451_v38 = vld [vmem:[%s5588_s8 + $0x198] sm:$0xff]  ;;  %v3456_v33 = vld [vmem:[%s5588_s8 + $0x1c0] sm:$0xff]  ;;  %v4241_v34 = vpack.c.bf16 %v3409_v32, %v3408_v31 }
 0x410   :  { %v3137_v40 = vadd.f32 %v4109_v39, %v4068_v37  ;;  %v4110_v41 = vpop.f32.mrb[10].mxu0  ;;  %v3434_v39 = vld [vmem:[%s5588_s8 + $0x110] sm:$0xff] }
 0x411   :  { %v4111_v42 = vpop.f32.mrb[11].mxu0 }
 0x412   :  { %v3147_v43 = vmul.f32 0.5, %v3137_v40  ;;  %v4112_v44 = vadd.f32 %v4111_v42, %v4110_v41  ;;  %v3435_v41 = vld [vmem:[%s5588_s8 + $0x118] sm:$0xff]  ;;  %v3420_v42 = vld [vmem:[%s5588_s8 + $0xa0] sm:$0xff] }
 0x414   :  { %v3149_v45 = vmul.f32 1.442695, %v3147_v43  ;;  %v3142_v46 = vadd.f32 %v4112_v44, %v4068_v37  ;;  %v3450_v37 = vld [vmem:[%s5588_s8 + $0x190] sm:$0xff]  ;;  %v3421_v43 = vld [vmem:[%s5588_s8 + $0xa8] sm:$0xff]  ;;  %v4261_v44 = vpack.c.bf16 %v3435_v41, %v3434_v39  ;;  %v3427_v41 = vld [vmem:[%s5588_s8 + $0xd8] sm:$0xff] }
 0x416   :  { %4955 = vpow2.f32 %v3149_v45  ;;  %v3148_v47 = vmul.f32 0.5, %v3142_v46  ;;  %v4231_v45 = vpack.c.bf16 %v3421_v43, %v3420_v42  ;;  %v3410_v42 = vld [vmem:[%s5588_s8 + $0x50] sm:$0xff] }
 0x418   :  { %v3151_v48 = vmul.f32 1.442695, %v3148_v47  ;;  %v3405_v47 = vld [vmem:[%s5588_s8 + $0x28] sm:$0xff] }
 0x41a   :  { %4957 = vpow2.f32 %v3151_v48  ;;  %v3452_v48 = vld [vmem:[%s5588_s8 + $0x1a0] sm:$0xff] }
 0x420   :  { %v4956_v49 = vpop.eup %4955 }
 0x421   :  { %3155 = vrot.lane.b32.xlu0 %v4956_v49, %s5049_s19  ;;  %v3453_v49 = vld [vmem:[%s5588_s8 + $0x1a8] sm:$0xff] }
 0x424   :  { %v4958_v50 = vpop.eup %4957 }
 0x425   :  { %3157 = vrot.lane.b32.xlu0 %v4958_v50, %s5049_s19  ;;  %v3436_v50 = vld [vmem:[%s5588_s8 + $0x120] sm:$0xff]  ;;  %s5017_s19 = scalar_lea.vmem %s3661_s6, 32 }
 0x426   :  { %p5018_p2 = scmp.ne.s32.totalorder %s3661_s6, %s5017_s19  ;;  %p5023_p4 = scmp.lt.s32.totalorder %s5017_s19, %s5017_s19 }
 0x428   :  { %p5024_p5 = por %p5023_p4, %p5022_p3 }
 0x42a   :  { %p5025_p6 = pnand %p5024_p5, %p5018_p2 }
 0x493   :  { %v3156_v57 = vpop.permute.xlu0 %3155 }
 0x494   :  { %v3161_v58 = vmul.f32 %v3156_v57, %v3145_v52  ;;  %v4263_v57 = vpack.c.bf16 %v3453_v49, %v3452_v48  ;;  %v3442_v49 = vld [vmem:[%s5588_s8 + $0x150] sm:$0xff] }
 0x496   :  { %v3163_v60 = vadd.f32 %v3161_v58, %v3137_v40  ;;  %v4259_v40 = vpack.c.bf16 %v3451_v38, %v3450_v37  ;;  %v3441_v37 = vld [vmem:[%s5588_s8 + $0x148] sm:$0xff] }
 0x497   :  { %v3158_v61 = vpop.permute.xlu0 %3157 }
 0x498   :  { %v4069_v62 = vmul.f32 -1.442695, %v3163_v60  ;;  %v3162_v63 = vmul.f32 %v3158_v61, %v3146_v59  ;;  %4260 = vmatprep.subr.bf16.mxu0 %v4259_v40  ;;  %v5054_v60 = vmov 1983009808   ;;  %v3426_v40 = vld [vmem:[%s5588_s8 + $0xd0] sm:$0xff] }
 0x499   :  { %4262 = vmatpush3.bf16.msra.mxu0 %v4261_v44  ;;  %v3320_v61 = vunpack.c.l.s4 %v5054_v60  ;;  %v4243_v43 = vpack.c.bf16 %v3427_v41, %v3426_v40  ;;  %v3411_v44 = vld [vmem:[%s5588_s8 + $0x58] sm:$0xff] }
 0x49a   :  { %4959 = vpow2.f32 %v4069_v62  ;;  %v3164_v0 = vadd.f32 %v3162_v63, %v3142_v46  ;;  %v3404_v46 = vld [vmem:[%s5588_s8 + $0x20] sm:$0xff]  ;;  %4264 = vmatprep.subr.bf16.mxu0 %v4263_v57 }
 0x49b   :  { %v4233_v52 = vpack.c.bf16 %v3405_v47, %v3404_v46  ;;  %v3459_v46 = vld [vmem:[%s5588_s8 + $0x1d8] sm:$0xff]  ;;  %v4245_v47 = vpack.c.bf16 %v3411_v44, %v3410_v42  ;;  %v3412_v57 = vld [vmem:[%s5588_s8 + $0x60] sm:$0xff] }
 0x49c   :  { %v4070_v1 = vmul.f32 -1.442695, %v3164_v0 }
 0x49e   :  { %4961 = vpow2.f32 %v4070_v1 }
 0x4a4   :  { %v4960_v2 = vpop.eup %4959 }
 0x4a5   :  { %v3171_v3 = vadd.f32 1.0, %v4960_v2  ;;  %v3321_v2 = vunpack.c.0.s8 %v3320_v61  ;;  %v3460_v61 = vld [vmem:[%s5588_s8 + $0x1e0] sm:$0xff] }
 0x4a7   :  { %4963 = vrcp.f32 %v3171_v3  ;;  %v5428_v3 = vsub.s32 %v3321_v2, %v5191_v14  ;;  %v3430_v2 = vld [vmem:[%s5588_s8 + $0xf0] sm:$0xff] }
 0x4a8   :  { %v4962_v55 = vpop.eup %4961 }
 0x4a9   :  { %v3172_v53 = vadd.f32 1.0, %v4962_v55 }
 0x4ab   :  { %4965 = vrcp.f32 %v3172_v53 }
 0x4b1   :  { %v4964_v4 = vpop.eup %4963 }
 0x4b2   :  { %3178 = vst.msk [vmem:[%s5590_s10] sm:$0xff] %vm3177_vm0, %v4964_v4 }
 0x4b5   :  { %v4966_v56 = vpop.eup %4965 }
 0x4b6   :  { %3179 = vst.msk [vmem:[%s5590_s10 + $0x8] sm:$0xff] %vm3177_vm0, %v4966_v56  ;;  %v4349_v5 = vpack.i.bf16 %v4966_v56, %v4964_v4 }
 0x4b8   :  { %4350 = vperm.xlu1 %4348, %v4349_v5  }
 0x537   :  { %v4351_v9 = vpop.permute.xlu1 %4350 }
 0x538   :  { %v4353_v10 = vunpack.i.h.bf16 %v4351_v9  ;;  %v4352_v11 = vunpack.i.l.bf16 %v4351_v9 }
 0x53a   :  { %v3208_v12 = vsel %vm3196_vm7, %v4353_v10, 0.0  ;;  %v3207_v13 = vsel %vm3195_vm6, %v4352_v11, 0.0 }
 0x53b   :  { %v3209_v16 = vpack.c.bf16 %v3208_v12, %v3207_v13 }
 0x53d   :  { %3211 = vxpose.xlu1.c.b16.start.end [1/1] (short) (narrow) %v3209_v16, 16  ;;  %v3422_v16 = vld [vmem:[%s5588_s8 + $0xb0] sm:$0xff] }
 0x5a3   :  { %v3219_v22 = vpop.trf.xlu1 }
 0x5a4   :  { %4071 = vmatmul.mubr.msk.bf16.vlgmr.msra.gmra.mrb[8].mxu1 %vm3227_vm8, %v3219_v22 }
 0x5a5   :  { %3273 = vmatpush1.bf16.msra.mxu1 %v5210_v54  ;;  %3304 = vmatprep.mubr.bf16.mxu1 %v5050_v51  ;;  %v3400_v54 = vld [vmem:[%s5588_s8] sm:$0xff]  ;;  %v3437_v51 = vld [vmem:[%s5588_s8 + $0x128] sm:$0xff] }
 0x5a6   :  { %4185 = vmatprep.subr.bf16.mxu1 %v5051_v6  ;;  %v4225_v18 = vpack.c.bf16 %v3401_v24, %v3400_v54  ;;  %v4265_v58 = vpack.c.bf16 %v3437_v51, %v3436_v50  ;;  %v4237_v54 = vpack.c.bf16 %v3407_v21, %v3406_v20  ;;  %v3455_v24 = vld [vmem:[%s5588_s8 + $0x1b8] sm:$0xff]  ;;  %v3428_v51 = vld [vmem:[%s5588_s8 + $0xe0] sm:$0xff] }
 0x5a7   :  { %v3443_v50 = vld [vmem:[%s5588_s8 + $0x158] sm:$0xff] }
 0x5a8   :  { %4266 = vmatpush3.bf16.msra.mxu0 %v4265_v58  ;;  %v3413_v58 = vld [vmem:[%s5588_s8 + $0x68] sm:$0xff] }
 0x5ac   :  { %4072 = vmatmul.mubr.msk.bf16.vlgmr.msra.gmra.mrb[12].mxu1 %vm3227_vm8, %v3219_v22 }
 0x5ad   :  { %4186 = vmatpush3.bf16.msra.mxu1 %v5052_v17  ;;  %4187 = vmatprep.mubr.msk.bf16.mxu1 %vm5053_vm9, %v5051_v6 }
 0x5ae   :  { %4224 = vmatprep.subr.bf16.mxu1 %v4223_v15  ;;  %v3454_v15 = vld [vmem:[%s5588_s8 + $0x1b0] sm:$0xff] }
 0x5af   :  { %v4267_v27 = vpack.c.bf16 %v3455_v24, %v3454_v15 }
 0x5b1   :  { %4268 = vmatprep.subr.bf16.mxu0 %v4267_v27 }
 0x5b4   :  { %4188 = vmatmul.mubr.msk.bf16.vlgmr.msra.gmra.mrb[16].mxu1 %vm3227_vm8, %v3219_v22  ;;  %v3423_v22 = vld [vmem:[%s5588_s8 + $0xb8] sm:$0xff] }
 0x5b5   :  { %4226 = vmatpush3.bf16.msra.mxu1 %v4225_v18  ;;  %v4235_v17 = vpack.c.bf16 %v3423_v22, %v3422_v16  ;;  %v3439_v18 = vld [vmem:[%s5588_s8 + $0x138] sm:$0xff]  ;;  %v5055_v22 = vmov 269488144  }
 0x5b6   :  { %4228 = vmatprep.subr.bf16.mxu1 %v4227_v35  ;;  %v4269_v29 = vpack.c.bf16 %v3439_v18, %v3438_v25  ;;  %v3457_v35 = vld [vmem:[%s5588_s8 + $0x1c8] sm:$0xff] }
 0x5b7   :  { %v4271_v38 = vpack.c.bf16 %v3457_v35, %v3456_v33 }
 0x5b8   :  { %4270 = vmatpush3.bf16.msra.mxu0 %v4269_v29 }
 0x5b9   :  { %4230 = vmatpush3.bf16.msra.mxu1 %v4229_v36  ;;  %v3440_v36 = vld [vmem:[%s5588_s8 + $0x140] sm:$0xff]  ;;  %4272 = vmatprep.subr.bf16.mxu0 %v4271_v38 }
 0x5ba   :  { %4232 = vmatprep.subr.bf16.mxu1 %v4231_v45  ;;  %v4273_v39 = vpack.c.bf16 %v3441_v37, %v3440_v36  ;;  %v3458_v45 = vld [vmem:[%s5588_s8 + $0x1d0] sm:$0xff] }
 0x5bb   :  { %v4275_v48 = vpack.c.bf16 %v3459_v46, %v3458_v45 }
 0x5bc   :  { %4274 = vmatpush3.bf16.msra.mxu0 %v4273_v39 }
 0x5bd   :  { %4234 = vmatpush3.bf16.msra.mxu1 %v4233_v52  ;;  %v3429_v52 = vld [vmem:[%s5588_s8 + $0xe8] sm:$0xff]  ;;  %4276 = vmatprep.subr.bf16.mxu0 %v4275_v48 }
 0x5be   :  { %4236 = vmatprep.subr.bf16.mxu1 %v4235_v17  ;;  %v4247_v60 = vpack.c.bf16 %v3429_v52, %v3428_v51  ;;  %v3391_v17 = vunpack.c.l.s4 %v5055_v22 }
 0x5c0   :  { %v3392_v20 = vunpack.c.0.s8 %v3391_v17 }
 0x5c1   :  { %4238 = vmatpush3.bf16.msra.mxu1 %v4237_v54 }
 0x5c2   :  { %4240 = vmatprep.subr.bf16.mxu1 %v4239_v30  ;;  %v3395_v21 = vsub.s32 %v3392_v20, %v5191_v14  ;;  %v4074_v30 = vld [vmem:[%s5589_s9] ss:$0 sm:$0xff]  ;;  %s5056_s9 = smov 2  }
 0x5c5   :  { %4242 = vmatpush3.bf16.msra.mxu1 %v4241_v34 }
 0x5c6   :  { %4244 = vmatprep.subr.bf16.mxu1 %v4243_v43 }
 0x5c9   :  { %4246 = vmatpush3.bf16.msra.mxu1 %v4245_v47 }
 0x5ca   :  { %4248 = vmatprep.subr.bf16.mxu1 %v4247_v60 }
 0x677   :  { %v3265_v59 = vpop.f32.mrb[8].mxu1 }
 0x678   :  { %v3267_v62 = vpop.f32.mrb[9].mxu1 }
 0x679   :  { %v3317_v63 = vcombine.low %v3265_v59, %v3267_v62  ;;  %v3269_v0 = vpop.f32.mrb[10].mxu1  ;;  %v4277_v59 = vpack.c.bf16 %v3443_v50, %v3442_v49  ;;  %v3461_v62 = vld [vmem:[%s5588_s8 + $0x1e8] sm:$0xff] }
 0x67a   :  { %v3270_v1 = vpop.f32.mrb[11].mxu1  ;;  %v4279_v0 = vpack.c.bf16 %v3461_v62, %v3460_v61 }
 0x67b   :  { %v5431_v6 = vrot.slane %v3317_v63, %v5428_v3  ;;  %v3444_v63 = vld [vmem:[%s5588_s8 + $0x160] sm:$0xff]  ;;  %v3445_v1 = vld [vmem:[%s5588_s8 + $0x168] sm:$0xff]  ;;  %4278 = vmatpush3.bf16.msra.mxu0 %v4277_v59 }
 0x67c   :  { %4280 = vmatprep.subr.bf16.mxu0 %v4279_v0 }
 0x67f   :  { %v3306_v55 = vpop.f32.mrb[12].mxu1 }
 0x680   :  { %v3308_v53 = vpop.f32.mrb[13].mxu1 }
 0x681   :  { %v3318_v4 = vcombine.low %v3306_v55, %v3308_v53  ;;  %v3310_v56 = vpop.f32.mrb[14].mxu1  ;;  %v3431_v55 = vld [vmem:[%s5588_s8 + $0xf8] sm:$0xff]  ;;  %v4249_v53 = vpack.c.bf16 %v3413_v58, %v3412_v57 }
 0x682   :  { %v3311_v5 = vpop.f32.mrb[15].mxu1  ;;  %v4251_v56 = vpack.c.bf16 %v3431_v55, %v3430_v2 }
 0x683   :  { %v5434_v23 = vrot.slane %v3318_v4, %v5428_v3  ;;  %v3462_v4 = vld [vmem:[%s5588_s8 + $0x1f0] sm:$0xff]  ;;  %4250 = vmatpush3.bf16.msra.mxu1 %v4249_v53 }
 0x684   :  { %v3414_v5 = vld [vmem:[%s5588_s8 + $0x70] sm:$0xff]  ;;  %4252 = vmatprep.subr.bf16.mxu1 %v4251_v56 }
 0x685   :  { %v3333_v26 = vcombine.low %v5431_v6, %v5434_v23 }
 0x687   :  { %v3372_v8 = vpop.f32.mrb[16].mxu1 }
 0x688   :  { %v3378_v9 = vadd.f32 %v3372_v8, %v3337_v7  ;;  %v4189_v10 = vpop.f32.mrb[17].mxu1  ;;  %v3415_v7 = vld [vmem:[%s5588_s8 + $0x78] sm:$0xff] }
 0x689   :  { %v3375_v11 = vpop.f32.mrb[18].mxu1  ;;  %v3463_v8 = vld [vmem:[%s5588_s8 + $0x1f8] sm:$0xff] }
 0x68a   :  { %3380 = vst.msk [vmem:[#allocation3] sm:$0x3] %vm73_vm1, %v3378_v9  ;;  %v4190_v12 = vpop.f32.mrb[19].mxu1  ;;  %v4281_v9 = vpack.c.bf16 %v3445_v1, %v3444_v63  ;;  %v4283_v10 = vpack.c.bf16 %v3463_v8, %v3462_v4  ;;  %v4253_v11 = vpack.c.bf16 %v3415_v7, %v3414_v5 }
 0x68b   :  { %v3446_v12 = vld [vmem:[%s5588_s8 + $0x170] sm:$0xff] }
 0x68c   :  { %4282 = vmatpush3.bf16.msra.mxu0 %v4281_v9  ;;  %4254 = vmatpush3.bf16.msra.mxu1 %v4253_v11 }
 0x68d   :  { %4284 = vmatprep.subr.bf16.mxu0 %v4283_v10 }
 0x691   :  { %v3385_v13 = vld [vmem:[#allocation3] sm:$0x3] }
 0x692   :  { %3388 = vperm.xlu0 %4354, %v3385_v13   ;;  %v3447_v13 = vld [vmem:[%s5588_s8 + $0x178] sm:$0xff] }
 0x693   :  { %v4285_v16 = vpack.c.bf16 %v3447_v13, %v3446_v12 }
 0x695   :  { %4286 = vmatpush3.bf16.msra.mxu0 %v4285_v16 }
 0x711   :  { %v3389_v54 = vpop.permute.xlu0 %3388 }
 0x712   :  { %v3396_v15 = vrot.slane %v3389_v54, %v3395_v21 }
 0x714   :  { %4967 = vrcp.f32 %v3396_v15 }
 0x71e   :  { %v4968_v24 = vpop.eup %4967 }
 0x71f   :  { %v3399_v25 = vmul.f32 %v4968_v24, %v3333_v26 }
 0x721   :  { %v3479_v27 = vrot.slane %v3399_v25, %v5428_v3  ;;  %v3472_v18 = vcombine.high %v3399_v25, %v3399_v25 }
 0x723   :  { %v3487_v19 = vcombine.high %v3479_v27, %v3479_v27  ;;  %v3486_v28 = vrot.slane %v3472_v18, %v5428_v3 }
 0x725   :  { %3557 = vmatprep.mubr.f32.mxu1 %v3487_v19  ;;  %v3488_v29 = vcombine.high %v3486_v28, %v3486_v28 }
 0x726   :  { %3558 = vmatmul.mubr.f32.vlgmr.msra.gmra.mrb[20].mxu1 %v3479_v27 }
 0x727   :  { %3627 = vmatprep.mubr.f32.mxu0 %v3488_v29 }
 0x728   :  { %3628 = vmatmul.mubr.f32.vlgmr.msra.gmra.mrb[12].mxu0 %v3486_v28 }
 0x7f9   :  { %v4147_v14 = vpop.f32.mrb[20].mxu1 }
 0x7fa   :  { %v4148_v31 = vpop.f32.mrb[21].mxu1 }
 0x7fb   :  { %v4149_v32 = vadd.f32 %v4148_v31, %v4147_v14  ;;  %v4182_v6 = vpop.f32.mrb[12].mxu0 }
 0x7fc   :  { %v4183_v23 = vpop.f32.mrb[13].mxu0 }
 0x7fd   :  { %v3560_v26 = vadd.f32 %v4149_v32, %v4074_v30  ;;  %v4184_v33 = vadd.f32 %v4183_v23, %v4182_v6 }
 0x7ff   :  { %v3630_v34 = vadd.f32 %v4184_v33, %v3560_v26 }
 0x801   :  { %v3635_v35 = vsel %vm3633_vm10, %v3630_v34, -inf  ;;  %3634 = vst.msk [vmem:[#allocation9] sm:$0x3] %vm3633_vm10, %v3630_v34 }
 0x802   :  { %3636 = vmax.xlane.f32.xlu0 %v3635_v35 }
 0x88f   :  { %v3637_v3 = vpop.xlane.xlu0 %3636 }
 0x890   :  { %v3638_v36 = vsub.f32 %v3630_v34, %v3637_v3 }
 0x892   :  { %v3639_v37 = vmul.f32 1.442695, %v3638_v36 }
 0x894   :  { %4969 = vpow2.f32 %v3639_v37 }
 0x89e   :  { %v4970_v38 = vpop.eup %4969 }
 0x89f   :  { %v3641_v39 = vsel %vm3633_vm10, %v4970_v38, 0.0 }
 0x8a0   :  { %3642 = vadd.xlane.f32.xlu1 %v3641_v39 }
 0x92d   :  { %v3643_v40 = vpop.xlane.xlu1 %3642 }
 0x92e   :  { %4971 = vrcp.f32 %v3643_v40 }
 0x938   :  { %v4972_v41 = vpop.eup %4971 }
 0x939   :  { %v3645_v42 = vmul.f32 %v4972_v41, %v4970_v38 }
 0x93b   :  { %3647 = vrot.lane.b32.xlu0 %v3645_v42, %s5056_s9 }
 0x9ad   :  { %v3648_v43 = vpop.permute.xlu0 %3647 }
 0x9ae   :  { %3651 = vst.msk [vmem:[#allocation9] sm:$0x3] %vm3650_vm11, %v3648_v43 }
 0x9af   :  { %5028 = shalt.err (!%p5025_p6)
}
 0x9b0   :  { %s5029_s20 = scalar_lea.hbm %s5591_s11, 32 }
 0x9b1   :  { %p5030_p7 = scmp.ne.s32.totalorder %s5591_s11, %s5029_s20  ;;  %p5033_p8 = scmp.lt.u32.totalorder %s5029_s20, %s5591_s11 }
 0x9b3   :  { %p5035_p9 = pnand %p5033_p8, %p5030_p7 }
 0x9b5   :  { %5038 = shalt.err (!%p5035_p9)
}
 0x9b6   :  { %3663 = dma.vmem_to_hbm [thread:$0]  %s3661_s6, 32, %s5591_s11, [#allocation6]  }
 0x9b7   :  { %5043 = dma.done.wait [#allocation6], 32  }
 0x9b8   :  { %5044 = vsyncadd [#allocation6], 4294967264 }
 0x9b9   :  { %3669 = vsyncpa [#allocation5], 1 }
 0x9ba   :  { %3670 = vsyncpa [#allocation8], 1 }
 0x9bb   :  { %3671 = vsyncpa [#allocation6], 1 }

// kernel: tpu_custom_call.1
= control target key start
LH: loop header
LB: loop body
LE: loop exit
PB: predicated region body
PF: predicated region fallthrough
CT: control target
= control target key end

     0   :  { %17 = vsyncpa [#allocation5], 0  ;;  %s5580_s0 = inlined_call_operand.vmem [shape: bf16[16,1024], index: 0, kind: input, shape index: {}]   ;;  %s5581_s1 = inlined_call_operand.vmem [shape: f32[16,1], index: 1, kind: input, shape index: {}]   ;;  %s5582_s2 = inlined_call_operand.hbm [shape: bf16[1024,512], index: 2, kind: input, shape index: {}]   ;;  %s5583_s3 = inlined_call_operand.vmem [shape: f32[1,512], index: 3, kind: input, shape index: {}]   ;;  %s5584_s4 = inlined_call_operand.hbm [shape: bf16[512,512], index: 4, kind: input, shape index: {}]   ;;  %s5585_s5 = inlined_call_operand.vmem [shape: f32[1,512], index: 5, kind: input, shape index: {}]   ;;  %s5586_s6 = inlined_call_operand.vmem [shape: f32[256,2], index: 6, kind: input, shape index: {}]   ;;  %s5587_s7 = inlined_call_operand.vmem [shape: f32[1,2], index: 7, kind: input, shape index: {}]   ;;  %s5588_s8 = inlined_call_operand.vmem [shape: f32[512,2], index: 8, kind: input, shape index: {}]   ;;  %s5589_s9 = inlined_call_operand.vmem [shape: f32[1,2], index: 9, kind: input, shape index: {}]   ;;  %s5590_s10 = inlined_call_operand.vmem [shape: f32[16,1], index: 10, kind: output, shape index: {0}]   ;;  %s5591_s11 = inlined_call_operand.hbm [shape: f32[2,4], index: 11, kind: output, shape index: {1}]  }
   0x1   :  { %18 = vsyncpa [#allocation8], 0 }
   0x2   :  { %19 = vsyncpa [#allocation6], 0  ;;  %s5045_s17 = smov [#allocation4]   ;;  %s4973_s21 = scalar_lea.hbm %s5582_s2, 32768 }
   0x3   :  { %s29_s18 = sshll.u32 %s5045_s17, 4  ;;  %p4974_p0 = scmp.ne.s32.totalorder %s5582_s2, %s4973_s21  ;;  %s30_s18 = int_to_ptr.vmem [resolvable:$true] %s29_s18 }
   0x4   :  { %p4977_p1 = scmp.lt.u32.totalorder %s4973_s21, %s5582_s2 }
   0x6   :  { %p4979_p2 = pnand %p4977_p1, %p4974_p0 }
   0x8   :  { %4982 = shalt.err (!%p4979_p2)
}
   0x9   :  { %s4983_s26 = scalar_lea.vmem %s30_s18, 32768  ;;  %p4988_p4 = scmp.lt.s32.totalorder %s30_s18, %s30_s18 }
   0xa   :  { %p4984_p3 = scmp.ne.s32.totalorder %s30_s18, %s4983_s26  ;;  %p4989_p5 = scmp.lt.s32.totalorder %s4983_s26, %s4983_s26 }
   0xc   :  { %p4990_p6 = por %p4989_p5, %p4988_p4 }
   0xe   :  { %p4991_p7 = pnand %p4990_p6, %p4984_p3 }
  0x10   :  { %4994 = shalt.err (!%p4991_p7)
}
  0x11   :  { %s5046_s27 = smov 256   ;;  %s5047_s28 = smov 16  }
  0x12   :  { %35 = dma.hbm_to_vmem [thread:$0]  %s5582_s2, 32768, %s30_s18, [#allocation5], %s5046_s27, %s5046_s27, %s5047_s28  }
  0x13   :  { %s5048_s12 = smov [#allocation7]   ;;  %s4995_s16 = scalar_lea.hbm %s5584_s4, 16384 }
  0x14   :  { %s43_s13 = sshll.u32 %s5048_s12, 4  ;;  %p4996_p8 = scmp.ne.s32.totalorder %s5584_s4, %s4995_s16  ;;  %s44_s13 = int_to_ptr.vmem [resolvable:$true] %s43_s13 }
  0x15   :  { %p4999_p9 = scmp.lt.u32.totalorder %s4995_s16, %s5584_s4 }
  0x17   :  { %p5001_p10 = pnand %p4999_p9, %p4996_p8 }
  0x19   :  { %5004 = shalt.err (!%p5001_p10)
}
  0x1a   :  { %s5005_s22 = scalar_lea.vmem %s44_s13, 16384  ;;  %p5010_p12 = scmp.lt.s32.totalorder %s44_s13, %s44_s13 }
  0x1b   :  { %p5006_p11 = scmp.ne.s32.totalorder %s44_s13, %s5005_s22  ;;  %p5011_p13 = scmp.lt.s32.totalorder %s5005_s22, %s5005_s22 }
  0x1d   :  { %p5012_p0 = por %p5011_p13, %p5010_p12 }
  0x1f   :  { %p5013_p1 = pnand %p5012_p0, %p5006_p11 }
  0x21   :  { %5016 = shalt.err (!%p5013_p1)
}
  0x22   :  { %49 = dma.hbm_to_vmem [thread:$0]  %s5584_s4, 16384, %s44_s13, [#allocation8], %s5046_s27, %s5046_s27, %s5047_s28  }
  0x23   :  { %5039 = dma.done.wait [#allocation5], 32768  }
  0x24   :  { %5040 = vsyncadd [#allocation5], 4294934528 }
  0x25   :  { %5041 = dma.done.wait [#allocation8], 16384  }
  0x26   :  { %5042 = vsyncadd [#allocation8], 4294950912  ;;  %v4355_v0 = vld [vmem:[#allocation4 + $0x4] ss:$16 sps:$4 sm:$0xff]   ;;  %v4357_v1 = vld [vmem:[#allocation4 + $0xc] ss:$16 sps:$4 sm:$0xff]  }
  0x27   :  { %1681 = vmatprep.subr.bf16.mxu0 %v4355_v0  ;;  %v4359_v2 = vld [vmem:[#allocation4] ss:$16 sps:$4 sm:$0xff]   ;;  %v4360_v3 = vld [vmem:[#allocation4 + $0x8] ss:$16 sps:$4 sm:$0xff]   ;;  %1853 = vmatprep.subr.bf16.mxu1 %v4357_v1  ;;  %v4361_v4 = vld [vmem:[#allocation4 + $0x24] ss:$16 sps:$4 sm:$0xff]  }
  0x28   :  { %1682 = vmatpush1.bf16.msra.mxu0 %v4359_v2  ;;  %1854 = vmatpush1.bf16.msra.mxu1 %v4360_v3  ;;  %v4363_v5 = vld [vmem:[#allocation4 + $0x2c] ss:$16 sps:$4 sm:$0xff]   ;;  %v4365_v6 = vld [vmem:[#allocation4 + $0x20] ss:$16 sps:$4 sm:$0xff]   ;;  %v4366_v7 = vld [vmem:[#allocation4 + $0x28] ss:$16 sps:$4 sm:$0xff]  }
  0x29   :  { %1683 = vmatprep.subr.bf16.mxu0 %v4361_v4  ;;  %1855 = vmatprep.subr.bf16.mxu1 %v4363_v5  ;;  %v4367_v8 = vld [vmem:[#allocation4 + $0x44] ss:$16 sps:$4 sm:$0xff]   ;;  %v4369_v9 = vld [vmem:[#allocation4 + $0x4c] ss:$16 sps:$4 sm:$0xff]   ;;  %v4371_v10 = vld [vmem:[#allocation4 + $0x40] ss:$16 sps:$4 sm:$0xff]  }
  0x2a   :  { %v4372_v11 = vld [vmem:[#allocation4 + $0x48] ss:$16 sps:$4 sm:$0xff]   ;;  %v4373_v12 = vld [vmem:[#allocation4 + $0x64] ss:$16 sps:$4 sm:$0xff]   ;;  %v4375_v13 = vld [vmem:[#allocation4 + $0x6c] ss:$16 sps:$4 sm:$0xff]  }
  0x2b   :  { %v4377_v14 = vld [vmem:[#allocation4 + $0x60] ss:$16 sps:$4 sm:$0xff]   ;;  %v4378_v15 = vld [vmem:[#allocation4 + $0x68] ss:$16 sps:$4 sm:$0xff]   ;;  %v4379_v16 = vld [vmem:[#allocation4 + $0x84] ss:$16 sps:$4 sm:$0xff]  }
  0x2c   :  { %1684 = vmatpush1.bf16.msra.mxu0 %v4365_v6  ;;  %1856 = vmatpush1.bf16.msra.mxu1 %v4366_v7  ;;  %v4381_v17 = vld [vmem:[#allocation4 + $0x8c] ss:$16 sps:$4 sm:$0xff]   ;;  %v4383_v18 = vld [vmem:[#allocation4 + $0x80] ss:$16 sps:$4 sm:$0xff]   ;;  %v4384_v19 = vld [vmem:[#allocation4 + $0x88] ss:$16 sps:$4 sm:$0xff]  }
  0x2d   :  { %1685 = vmatprep.subr.bf16.mxu0 %v4367_v8  ;;  %1857 = vmatprep.subr.bf16.mxu1 %v4369_v9  ;;  %v4385_v20 = vld [vmem:[#allocation4 + $0xa4] ss:$16 sps:$4 sm:$0xff]   ;;  %v4387_v21 = vld [vmem:[#allocation4 + $0xac] ss:$16 sps:$4 sm:$0xff]   ;;  %v4389_v22 = vld [vmem:[#allocation4 + $0xa0] ss:$16 sps:$4 sm:$0xff]  }
  0x2e   :  { %v4390_v23 = vld [vmem:[#allocation4 + $0xa8] ss:$16 sps:$4 sm:$0xff]   ;;  %v4391_v24 = vld [vmem:[#allocation4 + $0xc4] ss:$16 sps:$4 sm:$0xff]   ;;  %v4393_v25 = vld [vmem:[#allocation4 + $0xcc] ss:$16 sps:$4 sm:$0xff]  }
  0x2f   :  { %v4395_v26 = vld [vmem:[#allocation4 + $0xc0] ss:$16 sps:$4 sm:$0xff]   ;;  %v4396_v27 = vld [vmem:[#allocation4 + $0xc8] ss:$16 sps:$4 sm:$0xff]   ;;  %v4397_v28 = vld [vmem:[#allocation4 + $0xe4] ss:$16 sps:$4 sm:$0xff]  }
  0x30   :  { %1686 = vmatpush1.bf16.msra.mxu0 %v4371_v10  ;;  %1858 = vmatpush1.bf16.msra.mxu1 %v4372_v11  ;;  %v4399_v29 = vld [vmem:[#allocation4 + $0xec] ss:$16 sps:$4 sm:$0xff]   ;;  %v4401_v30 = vld [vmem:[#allocation4 + $0xe0] ss:$16 sps:$4 sm:$0xff]   ;;  %v4402_v31 = vld [vmem:[#allocation4 + $0xe8] ss:$16 sps:$4 sm:$0xff]  }
  0x31   :  { %1687 = vmatprep.subr.bf16.mxu0 %v4373_v12  ;;  %1859 = vmatprep.subr.bf16.mxu1 %v4375_v13  ;;  %v4403_v32 = vld [vmem:[#allocation4 + $0x104] ss:$16 sps:$4 sm:$0xff]   ;;  %v4405_v33 = vld [vmem:[#allocation4 + $0x10c] ss:$16 sps:$4 sm:$0xff]   ;;  %v4407_v34 = vld [vmem:[#allocation4 + $0x100] ss:$16 sps:$4 sm:$0xff]  }
  0x32   :  { %v4408_v35 = vld [vmem:[#allocation4 + $0x108] ss:$16 sps:$4 sm:$0xff]   ;;  %v4409_v36 = vld [vmem:[#allocation4 + $0x124] ss:$16 sps:$4 sm:$0xff]   ;;  %v4411_v37 = vld [vmem:[#allocation4 + $0x12c] ss:$16 sps:$4 sm:$0xff]  }
  0x33   :  { %v4413_v38 = vld [vmem:[#allocation4 + $0x120] ss:$16 sps:$4 sm:$0xff]   ;;  %v4414_v39 = vld [vmem:[#allocation4 + $0x128] ss:$16 sps:$4 sm:$0xff]   ;;  %v4415_v40 = vld [vmem:[#allocation4 + $0x144] ss:$16 sps:$4 sm:$0xff]  }
  0x34   :  { %1688 = vmatpush1.bf16.msra.mxu0 %v4377_v14  ;;  %1860 = vmatpush1.bf16.msra.mxu1 %v4378_v15  ;;  %v4417_v41 = vld [vmem:[#allocation4 + $0x14c] ss:$16 sps:$4 sm:$0xff]   ;;  %v4419_v42 = vld [vmem:[#allocation4 + $0x140] ss:$16 sps:$4 sm:$0xff]   ;;  %v4420_v43 = vld [vmem:[#allocation4 + $0x148] ss:$16 sps:$4 sm:$0xff]  }
  0x35   :  { %1689 = vmatprep.subr.bf16.mxu0 %v4379_v16  ;;  %1861 = vmatprep.subr.bf16.mxu1 %v4381_v17  ;;  %v4421_v44 = vld [vmem:[#allocation4 + $0x164] ss:$16 sps:$4 sm:$0xff]   ;;  %v4423_v45 = vld [vmem:[#allocation4 + $0x16c] ss:$16 sps:$4 sm:$0xff]   ;;  %v4425_v48 = vld [vmem:[#allocation4 + $0x160] ss:$16 sps:$4 sm:$0xff]  }
  0x36   :  { %v75_v46 = vld [vmem:[%s5580_s0] sm:$0xff]  ;;  %v4426_v49 = vld [vmem:[#allocation4 + $0x168] ss:$16 sps:$4 sm:$0xff]   ;;  %s5049_s19 = smov 127   ;;  %vm3177_vm0 = vcmask 7168   ;;  %vm73_vm1 = vcmask 1024  }
  0x37   :  { %v79_v47 = vld [vmem:[%s5580_s0 + $0x20] sm:$0xff]  ;;  %v4432_v54 = vld [vmem:[#allocation4 + $0x188] ss:$16 sps:$4 sm:$0xff]   ;;  %vm3227_vm8 = vcmask 130048   ;;  %vm5053_vm9 = vmmov 0   ;;  %vm3633_vm10 = vcmask 9216  }
  0x38   :  { %1690 = vmatpush1.bf16.msra.mxu0 %v4383_v18  ;;  %1862 = vmatpush1.bf16.msra.mxu1 %v4384_v19  ;;  %v3673_v50 = vcombine.high %v75_v46, %v79_v47  ;;  %v4427_v51 = vld [vmem:[#allocation4 + $0x184] ss:$16 sps:$4 sm:$0xff]   ;;  %v4429_v52 = vld [vmem:[#allocation4 + $0x18c] ss:$16 sps:$4 sm:$0xff]   ;;  %v4431_v53 = vld [vmem:[#allocation4 + $0x180] ss:$16 sps:$4 sm:$0xff]   ;;  %v3672_v5 = vcombine.low %v75_v46, %v79_v47 }
  0x39   :  { %1691 = vmatprep.subr.bf16.mxu0 %v4385_v20  ;;  %1863 = vmatprep.subr.bf16.mxu1 %v4387_v21  ;;  %v4433_v55 = vld [vmem:[#allocation4 + $0x1a4] ss:$16 sps:$4 sm:$0xff]   ;;  %v4435_v56 = vld [vmem:[#allocation4 + $0x1ac] ss:$16 sps:$4 sm:$0xff]   ;;  %v4437_v57 = vld [vmem:[#allocation4 + $0x1a0] ss:$16 sps:$4 sm:$0xff]  }
  0x3a   :  { %1713 = vmatprep.mubr.bf16.mxu0 %v3673_v50  ;;  %1885 = vmatprep.mubr.bf16.mxu1 %v3673_v50  ;;  %v4438_v58 = vld [vmem:[#allocation4 + $0x1a8] ss:$16 sps:$4 sm:$0xff]   ;;  %v4439_v59 = vld [vmem:[#allocation4 + $0x1c4] ss:$16 sps:$4 sm:$0xff]   ;;  %v4441_v60 = vld [vmem:[#allocation4 + $0x1cc] ss:$16 sps:$4 sm:$0xff]  }
  0x3b   :  { %v4443_v61 = vld [vmem:[#allocation4 + $0x1c0] ss:$16 sps:$4 sm:$0xff]   ;;  %v4444_v62 = vld [vmem:[#allocation4 + $0x1c8] ss:$16 sps:$4 sm:$0xff]   ;;  %v4445_v63 = vld [vmem:[#allocation4 + $0x1e4] ss:$16 sps:$4 sm:$0xff]  }
  0x3c   :  { %1692 = vmatpush1.bf16.msra.mxu0 %v4389_v22  ;;  %1864 = vmatpush1.bf16.msra.mxu1 %v4390_v23  ;;  %v4447_v0 = vld [vmem:[#allocation4 + $0x1ec] ss:$16 sps:$4 sm:$0xff]   ;;  %v4449_v1 = vld [vmem:[#allocation4 + $0x1e0] ss:$16 sps:$4 sm:$0xff]   ;;  %v4450_v2 = vld [vmem:[#allocation4 + $0x1e8] ss:$16 sps:$4 sm:$0xff]  }
  0x3d   :  { %1693 = vmatprep.subr.bf16.mxu0 %v4391_v24  ;;  %1865 = vmatprep.subr.bf16.mxu1 %v4393_v25  ;;  %v4453_v3 = vld [vmem:[#allocation4 + $0x204] ss:$16 sps:$4 sm:$0xff]   ;;  %v4456_v4 = vld [vmem:[#allocation4 + $0x20c] ss:$16 sps:$4 sm:$0xff]   ;;  %v4451_v6 = vld [vmem:[#allocation4 + $0x200] ss:$16 sps:$4 sm:$0xff]  }
  0x3e   :  { %v4454_v7 = vld [vmem:[#allocation4 + $0x208] ss:$16 sps:$4 sm:$0xff]   ;;  %v4459_v8 = vld [vmem:[#allocation4 + $0x224] ss:$16 sps:$4 sm:$0xff]   ;;  %v4462_v9 = vld [vmem:[#allocation4 + $0x22c] ss:$16 sps:$4 sm:$0xff]  }
  0x3f   :  { %v4457_v10 = vld [vmem:[#allocation4 + $0x220] ss:$16 sps:$4 sm:$0xff]   ;;  %v4460_v11 = vld [vmem:[#allocation4 + $0x228] ss:$16 sps:$4 sm:$0xff]   ;;  %v4465_v12 = vld [vmem:[#allocation4 + $0x244] ss:$16 sps:$4 sm:$0xff]  }
  0x40   :  { %1694 = vmatpush1.bf16.msra.mxu0 %v4395_v26  ;;  %1866 = vmatpush1.bf16.msra.mxu1 %v4396_v27  ;;  %v4468_v13 = vld [vmem:[#allocation4 + $0x24c] ss:$16 sps:$4 sm:$0xff]   ;;  %v4463_v14 = vld [vmem:[#allocation4 + $0x240] ss:$16 sps:$4 sm:$0xff]   ;;  %v4466_v15 = vld [vmem:[#allocation4 + $0x248] ss:$16 sps:$4 sm:$0xff]  }
  0x41   :  { %1695 = vmatprep.subr.bf16.mxu0 %v4397_v28  ;;  %1867 = vmatprep.subr.bf16.mxu1 %v4399_v29  ;;  %v4471_v16 = vld [vmem:[#allocation4 + $0x264] ss:$16 sps:$4 sm:$0xff]   ;;  %v4474_v17 = vld [vmem:[#allocation4 + $0x26c] ss:$16 sps:$4 sm:$0xff]   ;;  %v4469_v18 = vld [vmem:[#allocation4 + $0x260] ss:$16 sps:$4 sm:$0xff]  }
  0x42   :  { %v4472_v19 = vld [vmem:[#allocation4 + $0x268] ss:$16 sps:$4 sm:$0xff]   ;;  %v4477_v20 = vld [vmem:[#allocation4 + $0x284] ss:$16 sps:$4 sm:$0xff]   ;;  %v4480_v21 = vld [vmem:[#allocation4 + $0x28c] ss:$16 sps:$4 sm:$0xff]  }
  0x43   :  { %v4475_v22 = vld [vmem:[#allocation4 + $0x280] ss:$16 sps:$4 sm:$0xff]   ;;  %v4478_v23 = vld [vmem:[#allocation4 + $0x288] ss:$16 sps:$4 sm:$0xff]   ;;  %v4483_v24 = vld [vmem:[#allocation4 + $0x2a4] ss:$16 sps:$4 sm:$0xff]  }
  0x44   :  { %1696 = vmatpush1.bf16.msra.mxu0 %v4401_v30  ;;  %1868 = vmatpush1.bf16.msra.mxu1 %v4402_v31  ;;  %v4486_v25 = vld [vmem:[#allocation4 + $0x2ac] ss:$16 sps:$4 sm:$0xff]   ;;  %v4481_v26 = vld [vmem:[#allocation4 + $0x2a0] ss:$16 sps:$4 sm:$0xff]   ;;  %v4484_v27 = vld [vmem:[#allocation4 + $0x2a8] ss:$16 sps:$4 sm:$0xff]  }
  0x45   :  { %1697 = vmatprep.subr.bf16.mxu0 %v4403_v32  ;;  %1869 = vmatprep.subr.bf16.mxu1 %v4405_v33  ;;  %v4489_v28 = vld [vmem:[#allocation4 + $0x2c4] ss:$16 sps:$4 sm:$0xff]   ;;  %v4492_v29 = vld [vmem:[#allocation4 + $0x2cc] ss:$16 sps:$4 sm:$0xff]   ;;  %v4487_v32 = vld [vmem:[#allocation4 + $0x2c0] ss:$16 sps:$4 sm:$0xff]  }
  0x46   :  { %v5151_v30 = vld [vmem:[%s5580_s0 + $0x8] sm:$0xff]  ;;  %vm3650_vm11 = vcmask 25616  }
  0x47   :  { %v5156_v31 = vld [vmem:[%s5580_s0 + $0x28] sm:$0xff] }
  0x48   :  { %1698 = vmatpush1.bf16.msra.mxu0 %v4407_v34  ;;  %1870 = vmatpush1.bf16.msra.mxu1 %v4408_v35  ;;  %v4490_v33 = vld [vmem:[#allocation4 + $0x2c8] ss:$16 sps:$4 sm:$0xff]   ;;  %v3675_v34 = vcombine.high %v5151_v30, %v5156_v31  ;;  %v4495_v35 = vld [vmem:[#allocation4 + $0x2e4] ss:$16 sps:$4 sm:$0xff]  }
  0x49   :  { %1699 = vmatprep.subr.bf16.mxu0 %v4409_v36  ;;  %1871 = vmatprep.subr.bf16.mxu1 %v4411_v37  ;;  %v4498_v36 = vld [vmem:[#allocation4 + $0x2ec] ss:$16 sps:$4 sm:$0xff]   ;;  %v4493_v37 = vld [vmem:[#allocation4 + $0x2e0] ss:$16 sps:$4 sm:$0xff]   ;;  %v4508_v46 = vld [vmem:[#allocation4 + $0x328] ss:$16 sps:$4 sm:$0xff]  }
  0x4a   :  { %v4513_v47 = vld [vmem:[#allocation4 + $0x344] ss:$16 sps:$4 sm:$0xff]   ;;  %v4514_v50 = vld [vmem:[#allocation4 + $0x348] ss:$16 sps:$4 sm:$0xff]  }
  0x4c   :  { %1700 = vmatpush1.bf16.msra.mxu0 %v4413_v38  ;;  %1872 = vmatpush1.bf16.msra.mxu1 %v4414_v39  ;;  %v4496_v38 = vld [vmem:[#allocation4 + $0x2e8] ss:$16 sps:$4 sm:$0xff]   ;;  %v4501_v39 = vld [vmem:[#allocation4 + $0x304] ss:$16 sps:$4 sm:$0xff]  }
  0x4d   :  { %1701 = vmatprep.subr.bf16.mxu0 %v4415_v40  ;;  %1873 = vmatprep.subr.bf16.mxu1 %v4417_v41  ;;  %v4504_v40 = vld [vmem:[#allocation4 + $0x30c] ss:$16 sps:$4 sm:$0xff]   ;;  %v4499_v41 = vld [vmem:[#allocation4 + $0x300] ss:$16 sps:$4 sm:$0xff]  }
  0x50   :  { %1702 = vmatpush1.bf16.msra.mxu0 %v4419_v42  ;;  %1874 = vmatpush1.bf16.msra.mxu1 %v4420_v43  ;;  %v4502_v42 = vld [vmem:[#allocation4 + $0x308] ss:$16 sps:$4 sm:$0xff]   ;;  %v4507_v43 = vld [vmem:[#allocation4 + $0x324] ss:$16 sps:$4 sm:$0xff]  }
  0x51   :  { %1703 = vmatprep.subr.bf16.mxu0 %v4421_v44  ;;  %1875 = vmatprep.subr.bf16.mxu1 %v4423_v45  ;;  %v4510_v44 = vld [vmem:[#allocation4 + $0x32c] ss:$16 sps:$4 sm:$0xff]   ;;  %v4505_v45 = vld [vmem:[#allocation4 + $0x320] ss:$16 sps:$4 sm:$0xff]  }
  0x54   :  { %1704 = vmatpush1.bf16.msra.mxu0 %v4425_v48  ;;  %1876 = vmatpush1.bf16.msra.mxu1 %v4426_v49  ;;  %v4516_v48 = vld [vmem:[#allocation4 + $0x34c] ss:$16 sps:$4 sm:$0xff]   ;;  %v4511_v49 = vld [vmem:[#allocation4 + $0x340] ss:$16 sps:$4 sm:$0xff]  }
  0x55   :  { %1705 = vmatprep.subr.bf16.mxu0 %v4427_v51  ;;  %1877 = vmatprep.subr.bf16.mxu1 %v4429_v52  ;;  %v4519_v51 = vld [vmem:[#allocation4 + $0x364] ss:$16 sps:$4 sm:$0xff]   ;;  %v4522_v52 = vld [vmem:[#allocation4 + $0x36c] ss:$16 sps:$4 sm:$0xff]  }
  0x58   :  { %1706 = vmatpush1.bf16.msra.mxu0 %v4431_v53  ;;  %1878 = vmatpush1.bf16.msra.mxu1 %v4432_v54  ;;  %v4517_v53 = vld [vmem:[#allocation4 + $0x360] ss:$16 sps:$4 sm:$0xff]   ;;  %v4520_v54 = vld [vmem:[#allocation4 + $0x368] ss:$16 sps:$4 sm:$0xff]  }
  0x59   :  { %1707 = vmatprep.subr.bf16.mxu0 %v4433_v55  ;;  %1879 = vmatprep.subr.bf16.mxu1 %v4435_v56  ;;  %v4525_v55 = vld [vmem:[#allocation4 + $0x384] ss:$16 sps:$4 sm:$0xff]   ;;  %v4528_v56 = vld [vmem:[#allocation4 + $0x38c] ss:$16 sps:$4 sm:$0xff]  }
  0x5c   :  { %1708 = vmatpush1.bf16.msra.mxu0 %v4437_v57  ;;  %1880 = vmatpush1.bf16.msra.mxu1 %v4438_v58  ;;  %v4523_v57 = vld [vmem:[#allocation4 + $0x380] ss:$16 sps:$4 sm:$0xff]   ;;  %v4526_v58 = vld [vmem:[#allocation4 + $0x388] ss:$16 sps:$4 sm:$0xff]  }
  0x5d   :  { %1709 = vmatprep.subr.bf16.mxu0 %v4439_v59  ;;  %1881 = vmatprep.subr.bf16.mxu1 %v4441_v60  ;;  %v4531_v59 = vld [vmem:[#allocation4 + $0x3a4] ss:$16 sps:$4 sm:$0xff]   ;;  %v4534_v60 = vld [vmem:[#allocation4 + $0x3ac] ss:$16 sps:$4 sm:$0xff]  }
  0x60   :  { %1710 = vmatpush1.bf16.msra.mxu0 %v4443_v61  ;;  %1882 = vmatpush1.bf16.msra.mxu1 %v4444_v62  ;;  %v4529_v61 = vld [vmem:[#allocation4 + $0x3a0] ss:$16 sps:$4 sm:$0xff]   ;;  %v4532_v62 = vld [vmem:[#allocation4 + $0x3a8] ss:$16 sps:$4 sm:$0xff]  }
  0x61   :  { %1711 = vmatprep.subr.bf16.mxu0 %v4445_v63  ;;  %1883 = vmatprep.subr.bf16.mxu1 %v4447_v0  ;;  %v4537_v63 = vld [vmem:[#allocation4 + $0x3c4] ss:$16 sps:$4 sm:$0xff]   ;;  %v4540_v0 = vld [vmem:[#allocation4 + $0x3cc] ss:$16 sps:$4 sm:$0xff]  }
  0x64   :  { %1712 = vmatpush1.bf16.msra.mxu0 %v4449_v1  ;;  %1884 = vmatpush1.bf16.msra.mxu1 %v4450_v2  ;;  %v4535_v1 = vld [vmem:[#allocation4 + $0x3c0] ss:$16 sps:$4 sm:$0xff]   ;;  %v4538_v2 = vld [vmem:[#allocation4 + $0x3c8] ss:$16 sps:$4 sm:$0xff]  }
  0x65   :  { %1724 = vmatprep.subr.bf16.mxu0 %v4453_v3  ;;  %1896 = vmatprep.subr.bf16.mxu1 %v4456_v4  ;;  %v4543_v3 = vld [vmem:[#allocation4 + $0x3e4] ss:$16 sps:$4 sm:$0xff]   ;;  %v4546_v4 = vld [vmem:[#allocation4 + $0x3ec] ss:$16 sps:$4 sm:$0xff]  }
  0x67   :  { %1714 = vmatmul.mubr.bf16.vlgmr.msra.gmra.mrb[0].mxu0 %v3672_v5  ;;  %1886 = vmatmul.mubr.bf16.vlgmr.msra.gmra.mrb[0].mxu1 %v3672_v5  ;;  %v4541_v5 = vld [vmem:[#allocation4 + $0x3e0] ss:$16 sps:$4 sm:$0xff]  }
  0x68   :  { %1725 = vmatpush1.bf16.msra.mxu0 %v4451_v6  ;;  %1897 = vmatpush1.bf16.msra.mxu1 %v4454_v7  ;;  %v4544_v6 = vld [vmem:[#allocation4 + $0x3e8] ss:$16 sps:$4 sm:$0xff]   ;;  %v4549_v7 = vld [vmem:[#allocation4 + $0x404] ss:$16 sps:$4 sm:$0xff]  }
  0x69   :  { %1726 = vmatprep.subr.bf16.mxu0 %v4459_v8  ;;  %1898 = vmatprep.subr.bf16.mxu1 %v4462_v9  ;;  %v4552_v8 = vld [vmem:[#allocation4 + $0x40c] ss:$16 sps:$4 sm:$0xff]   ;;  %v3674_v9 = vcombine.low %v5151_v30, %v5156_v31  ;;  %v4574_v30 = vld [vmem:[#allocation4 + $0x488] ss:$16 sps:$4 sm:$0xff]   ;;  %v4579_v31 = vld [vmem:[#allocation4 + $0x4a4] ss:$16 sps:$4 sm:$0xff]  }
  0x6a   :  { %1756 = vmatprep.mubr.bf16.mxu0 %v3675_v34  ;;  %1928 = vmatprep.mubr.bf16.mxu1 %v3675_v34  ;;  %v4580_v34 = vld [vmem:[#allocation4 + $0x4a8] ss:$16 sps:$4 sm:$0xff]  }
  0x6c   :  { %1727 = vmatpush1.bf16.msra.mxu0 %v4457_v10  ;;  %1899 = vmatpush1.bf16.msra.mxu1 %v4460_v11  ;;  %v4547_v10 = vld [vmem:[#allocation4 + $0x400] ss:$16 sps:$4 sm:$0xff]   ;;  %v4550_v11 = vld [vmem:[#allocation4 + $0x408] ss:$16 sps:$4 sm:$0xff]  }
  0x6d   :  { %1728 = vmatprep.subr.bf16.mxu0 %v4465_v12  ;;  %1900 = vmatprep.subr.bf16.mxu1 %v4468_v13  ;;  %v4555_v12 = vld [vmem:[#allocation4 + $0x424] ss:$16 sps:$4 sm:$0xff]   ;;  %v4558_v13 = vld [vmem:[#allocation4 + $0x42c] ss:$16 sps:$4 sm:$0xff]  }
  0x70   :  { %1729 = vmatpush1.bf16.msra.mxu0 %v4463_v14  ;;  %1901 = vmatpush1.bf16.msra.mxu1 %v4466_v15  ;;  %v5165_v14 = vld [vmem:[%s5580_s0 + $0x10] sm:$0xff] }
  0x71   :  { %1730 = vmatprep.subr.bf16.mxu0 %v4471_v16  ;;  %1902 = vmatprep.subr.bf16.mxu1 %v4474_v17  ;;  %v5170_v15 = vld [vmem:[%s5580_s0 + $0x30] sm:$0xff] }
  0x72   :  { %v3677_v16 = vcombine.high %v5165_v14, %v5170_v15  ;;  %v4553_v17 = vld [vmem:[#allocation4 + $0x420] ss:$16 sps:$4 sm:$0xff]  }
  0x74   :  { %1731 = vmatpush1.bf16.msra.mxu0 %v4469_v18  ;;  %1903 = vmatpush1.bf16.msra.mxu1 %v4472_v19  ;;  %v4556_v18 = vld [vmem:[#allocation4 + $0x428] ss:$16 sps:$4 sm:$0xff]   ;;  %v4561_v19 = vld [vmem:[#allocation4 + $0x444] ss:$16 sps:$4 sm:$0xff]  }
  0x75   :  { %1732 = vmatprep.subr.bf16.mxu0 %v4477_v20  ;;  %1904 = vmatprep.subr.bf16.mxu1 %v4480_v21  ;;  %v4564_v20 = vld [vmem:[#allocation4 + $0x44c] ss:$16 sps:$4 sm:$0xff]   ;;  %v4559_v21 = vld [vmem:[#allocation4 + $0x440] ss:$16 sps:$4 sm:$0xff]  }
  0x78   :  { %1733 = vmatpush1.bf16.msra.mxu0 %v4475_v22  ;;  %1905 = vmatpush1.bf16.msra.mxu1 %v4478_v23  ;;  %v4562_v22 = vld [vmem:[#allocation4 + $0x448] ss:$16 sps:$4 sm:$0xff]   ;;  %v4567_v23 = vld [vmem:[#allocation4 + $0x464] ss:$16 sps:$4 sm:$0xff]  }
  0x79   :  { %1734 = vmatprep.subr.bf16.mxu0 %v4483_v24  ;;  %1906 = vmatprep.subr.bf16.mxu1 %v4486_v25  ;;  %v4570_v24 = vld [vmem:[#allocation4 + $0x46c] ss:$16 sps:$4 sm:$0xff]   ;;  %v4565_v25 = vld [vmem:[#allocation4 + $0x460] ss:$16 sps:$4 sm:$0xff]  }
  0x7c   :  { %1735 = vmatpush1.bf16.msra.mxu0 %v4481_v26  ;;  %1907 = vmatpush1.bf16.msra.mxu1 %v4484_v27  ;;  %v4568_v26 = vld [vmem:[#allocation4 + $0x468] ss:$16 sps:$4 sm:$0xff]   ;;  %v4573_v27 = vld [vmem:[#allocation4 + $0x484] ss:$16 sps:$4 sm:$0xff]  }
  0x7d   :  { %1736 = vmatprep.subr.bf16.mxu0 %v4489_v28  ;;  %1908 = vmatprep.subr.bf16.mxu1 %v4492_v29  ;;  %v4576_v28 = vld [vmem:[#allocation4 + $0x48c] ss:$16 sps:$4 sm:$0xff]   ;;  %v4571_v29 = vld [vmem:[#allocation4 + $0x480] ss:$16 sps:$4 sm:$0xff]  }
  0x80   :  { %1737 = vmatpush1.bf16.msra.mxu0 %v4487_v32  ;;  %1909 = vmatpush1.bf16.msra.mxu1 %v4490_v33  ;;  %v4582_v32 = vld [vmem:[#allocation4 + $0x4ac] ss:$16 sps:$4 sm:$0xff]   ;;  %v4577_v33 = vld [vmem:[#allocation4 + $0x4a0] ss:$16 sps:$4 sm:$0xff]  }
  0x81   :  { %1738 = vmatprep.subr.bf16.mxu0 %v4495_v35  ;;  %1910 = vmatprep.subr.bf16.mxu1 %v4498_v36  ;;  %v4585_v35 = vld [vmem:[#allocation4 + $0x4c4] ss:$16 sps:$4 sm:$0xff]   ;;  %v4588_v36 = vld [vmem:[#allocation4 + $0x4cc] ss:$16 sps:$4 sm:$0xff]  }
  0x84   :  { %1739 = vmatpush1.bf16.msra.mxu0 %v4493_v37  ;;  %1911 = vmatpush1.bf16.msra.mxu1 %v4496_v38  ;;  %v4583_v37 = vld [vmem:[#allocation4 + $0x4c0] ss:$16 sps:$4 sm:$0xff]   ;;  %v4586_v38 = vld [vmem:[#allocation4 + $0x4c8] ss:$16 sps:$4 sm:$0xff]  }
  0x85   :  { %1740 = vmatprep.subr.bf16.mxu0 %v4501_v39  ;;  %1912 = vmatprep.subr.bf16.mxu1 %v4504_v40  ;;  %v4591_v39 = vld [vmem:[#allocation4 + $0x4e4] ss:$16 sps:$4 sm:$0xff]   ;;  %v4594_v40 = vld [vmem:[#allocation4 + $0x4ec] ss:$16 sps:$4 sm:$0xff]  }
  0x88   :  { %1741 = vmatpush1.bf16.msra.mxu0 %v4499_v41  ;;  %1913 = vmatpush1.bf16.msra.mxu1 %v4502_v42  ;;  %v4589_v41 = vld [vmem:[#allocation4 + $0x4e0] ss:$16 sps:$4 sm:$0xff]   ;;  %v4592_v42 = vld [vmem:[#allocation4 + $0x4e8] ss:$16 sps:$4 sm:$0xff]  }
  0x89   :  { %1742 = vmatprep.subr.bf16.mxu0 %v4507_v43  ;;  %1914 = vmatprep.subr.bf16.mxu1 %v4510_v44  ;;  %v4597_v43 = vld [vmem:[#allocation4 + $0x504] ss:$16 sps:$4 sm:$0xff]   ;;  %v4600_v44 = vld [vmem:[#allocation4 + $0x50c] ss:$16 sps:$4 sm:$0xff]  }
  0x8c   :  { %1743 = vmatpush1.bf16.msra.mxu0 %v4505_v45  ;;  %1915 = vmatpush1.bf16.msra.mxu1 %v4508_v46  ;;  %v4595_v45 = vld [vmem:[#allocation4 + $0x500] ss:$16 sps:$4 sm:$0xff]   ;;  %v4598_v46 = vld [vmem:[#allocation4 + $0x508] ss:$16 sps:$4 sm:$0xff]  }
  0x8d   :  { %1744 = vmatprep.subr.bf16.mxu0 %v4513_v47  ;;  %1916 = vmatprep.subr.bf16.mxu1 %v4516_v48  ;;  %v4603_v47 = vld [vmem:[#allocation4 + $0x524] ss:$16 sps:$4 sm:$0xff]   ;;  %v4606_v48 = vld [vmem:[#allocation4 + $0x52c] ss:$16 sps:$4 sm:$0xff]  }
  0x90   :  { %1745 = vmatpush1.bf16.msra.mxu0 %v4511_v49  ;;  %1917 = vmatpush1.bf16.msra.mxu1 %v4514_v50  ;;  %v4601_v49 = vld [vmem:[#allocation4 + $0x520] ss:$16 sps:$4 sm:$0xff]   ;;  %v4604_v50 = vld [vmem:[#allocation4 + $0x528] ss:$16 sps:$4 sm:$0xff]  }
  0x91   :  { %1746 = vmatprep.subr.bf16.mxu0 %v4519_v51  ;;  %1918 = vmatprep.subr.bf16.mxu1 %v4522_v52  ;;  %v4609_v51 = vld [vmem:[#allocation4 + $0x544] ss:$16 sps:$4 sm:$0xff]   ;;  %v4612_v52 = vld [vmem:[#allocation4 + $0x54c] ss:$16 sps:$4 sm:$0xff]  }
  0x94   :  { %1747 = vmatpush1.bf16.msra.mxu0 %v4517_v53  ;;  %1919 = vmatpush1.bf16.msra.mxu1 %v4520_v54  ;;  %v4607_v53 = vld [vmem:[#allocation4 + $0x540] ss:$16 sps:$4 sm:$0xff]   ;;  %v4610_v54 = vld [vmem:[#allocation4 + $0x548] ss:$16 sps:$4 sm:$0xff]  }
  0x95   :  { %1748 = vmatprep.subr.bf16.mxu0 %v4525_v55  ;;  %1920 = vmatprep.subr.bf16.mxu1 %v4528_v56  ;;  %v4615_v55 = vld [vmem:[#allocation4 + $0x564] ss:$16 sps:$4 sm:$0xff]   ;;  %v4618_v56 = vld [vmem:[#allocation4 + $0x56c] ss:$16 sps:$4 sm:$0xff]  }
  0x98   :  { %1749 = vmatpush1.bf16.msra.mxu0 %v4523_v57  ;;  %1921 = vmatpush1.bf16.msra.mxu1 %v4526_v58  ;;  %v4613_v57 = vld [vmem:[#allocation4 + $0x560] ss:$16 sps:$4 sm:$0xff]   ;;  %v4616_v58 = vld [vmem:[#allocation4 + $0x568] ss:$16 sps:$4 sm:$0xff]  }
  0x99   :  { %1750 = vmatprep.subr.bf16.mxu0 %v4531_v59  ;;  %1922 = vmatprep.subr.bf16.mxu1 %v4534_v60  ;;  %v4621_v59 = vld [vmem:[#allocation4 + $0x584] ss:$16 sps:$4 sm:$0xff]   ;;  %v4624_v60 = vld [vmem:[#allocation4 + $0x58c] ss:$16 sps:$4 sm:$0xff]  }
  0x9c   :  { %1751 = vmatpush1.bf16.msra.mxu0 %v4529_v61  ;;  %1923 = vmatpush1.bf16.msra.mxu1 %v4532_v62  ;;  %v4619_v61 = vld [vmem:[#allocation4 + $0x580] ss:$16 sps:$4 sm:$0xff]   ;;  %v4622_v62 = vld [vmem:[#allocation4 + $0x588] ss:$16 sps:$4 sm:$0xff]  }
  0x9d   :  { %1752 = vmatprep.subr.bf16.mxu0 %v4537_v63  ;;  %1924 = vmatprep.subr.bf16.mxu1 %v4540_v0  ;;  %v4627_v63 = vld [vmem:[#allocation4 + $0x5a4] ss:$16 sps:$4 sm:$0xff]   ;;  %v4630_v0 = vld [vmem:[#allocation4 + $0x5ac] ss:$16 sps:$4 sm:$0xff]  }
  0xa0   :  { %1753 = vmatpush1.bf16.msra.mxu0 %v4535_v1  ;;  %1925 = vmatpush1.bf16.msra.mxu1 %v4538_v2  ;;  %v4625_v1 = vld [vmem:[#allocation4 + $0x5a0] ss:$16 sps:$4 sm:$0xff]   ;;  %v4628_v2 = vld [vmem:[#allocation4 + $0x5a8] ss:$16 sps:$4 sm:$0xff]  }
  0xa1   :  { %1754 = vmatprep.subr.bf16.mxu0 %v4543_v3  ;;  %1926 = vmatprep.subr.bf16.mxu1 %v4546_v4  ;;  %v4633_v3 = vld [vmem:[#allocation4 + $0x5c4] ss:$16 sps:$4 sm:$0xff]   ;;  %v4636_v4 = vld [vmem:[#allocation4 + $0x5cc] ss:$16 sps:$4 sm:$0xff]  }
  0xa4   :  { %1755 = vmatpush1.bf16.msra.mxu0 %v4541_v5  ;;  %1927 = vmatpush1.bf16.msra.mxu1 %v4544_v6  ;;  %v4631_v5 = vld [vmem:[#allocation4 + $0x5c0] ss:$16 sps:$4 sm:$0xff]   ;;  %v4634_v6 = vld [vmem:[#allocation4 + $0x5c8] ss:$16 sps:$4 sm:$0xff]  }
  0xa5   :  { %1767 = vmatprep.subr.bf16.mxu0 %v4549_v7  ;;  %1939 = vmatprep.subr.bf16.mxu1 %v4552_v8  ;;  %v4639_v7 = vld [vmem:[#allocation4 + $0x5e4] ss:$16 sps:$4 sm:$0xff]   ;;  %v4642_v8 = vld [vmem:[#allocation4 + $0x5ec] ss:$16 sps:$4 sm:$0xff]  }
  0xa7   :  { %1757 = vmatmul.mubr.bf16.vlgmr.msra.gmra.mrb[0].mxu0 %v3674_v9  ;;  %1929 = vmatmul.mubr.bf16.vlgmr.msra.gmra.mrb[0].mxu1 %v3674_v9  ;;  %v4637_v9 = vld [vmem:[#allocation4 + $0x5e0] ss:$16 sps:$4 sm:$0xff]  }
  0xa8   :  { %1768 = vmatpush1.bf16.msra.mxu0 %v4547_v10  ;;  %1940 = vmatpush1.bf16.msra.mxu1 %v4550_v11  ;;  %v4640_v10 = vld [vmem:[#allocation4 + $0x5e8] ss:$16 sps:$4 sm:$0xff]   ;;  %v4645_v11 = vld [vmem:[#allocation4 + $0x604] ss:$16 sps:$4 sm:$0xff]  }
  0xa9   :  { %1769 = vmatprep.subr.bf16.mxu0 %v4555_v12  ;;  %1941 = vmatprep.subr.bf16.mxu1 %v4558_v13  ;;  %v4648_v12 = vld [vmem:[#allocation4 + $0x60c] ss:$16 sps:$4 sm:$0xff]   ;;  %v4643_v13 = vld [vmem:[#allocation4 + $0x600] ss:$16 sps:$4 sm:$0xff]  }
  0xaa   :  { %1799 = vmatprep.mubr.bf16.mxu0 %v3677_v16  ;;  %1971 = vmatprep.mubr.bf16.mxu1 %v3677_v16  ;;  %v4646_v16 = vld [vmem:[#allocation4 + $0x608] ss:$16 sps:$4 sm:$0xff]  }
  0xac   :  { %1770 = vmatpush1.bf16.msra.mxu0 %v4553_v17  ;;  %1942 = vmatpush1.bf16.msra.mxu1 %v4556_v18  ;;  %v3676_v17 = vcombine.low %v5165_v14, %v5170_v15  ;;  %v5179_v18 = vld [vmem:[%s5580_s0 + $0x18] sm:$0xff]  ;;  %v4649_v14 = vld [vmem:[#allocation4 + $0x620] ss:$16 sps:$4 sm:$0xff]  }
  0xad   :  { %1771 = vmatprep.subr.bf16.mxu0 %v4561_v19  ;;  %1943 = vmatprep.subr.bf16.mxu1 %v4564_v20  ;;  %v5184_v19 = vld [vmem:[%s5580_s0 + $0x38] sm:$0xff] }
  0xae   :  { %v4651_v20 = vld [vmem:[#allocation4 + $0x624] ss:$16 sps:$4 sm:$0xff]   ;;  %v4652_v15 = vld [vmem:[#allocation4 + $0x628] ss:$16 sps:$4 sm:$0xff]  }
  0xb0   :  { %1772 = vmatpush1.bf16.msra.mxu0 %v4559_v21  ;;  %1944 = vmatpush1.bf16.msra.mxu1 %v4562_v22  ;;  %v4654_v21 = vld [vmem:[#allocation4 + $0x62c] ss:$16 sps:$4 sm:$0xff]   ;;  %v3679_v22 = vcombine.high %v5179_v18, %v5184_v19 }
  0xb1   :  { %1773 = vmatprep.subr.bf16.mxu0 %v4567_v23  ;;  %1945 = vmatprep.subr.bf16.mxu1 %v4570_v24  ;;  %v4657_v23 = vld [vmem:[#allocation4 + $0x644] ss:$16 sps:$4 sm:$0xff]   ;;  %v4660_v24 = vld [vmem:[#allocation4 + $0x64c] ss:$16 sps:$4 sm:$0xff]  }
  0xb4   :  { %1774 = vmatpush1.bf16.msra.mxu0 %v4565_v25  ;;  %1946 = vmatpush1.bf16.msra.mxu1 %v4568_v26  ;;  %v4655_v25 = vld [vmem:[#allocation4 + $0x640] ss:$16 sps:$4 sm:$0xff]   ;;  %v4658_v26 = vld [vmem:[#allocation4 + $0x648] ss:$16 sps:$4 sm:$0xff]  }
  0xb5   :  { %1775 = vmatprep.subr.bf16.mxu0 %v4573_v27  ;;  %1947 = vmatprep.subr.bf16.mxu1 %v4576_v28  ;;  %v4663_v27 = vld [vmem:[#allocation4 + $0x664] ss:$16 sps:$4 sm:$0xff]   ;;  %v4666_v28 = vld [vmem:[#allocation4 + $0x66c] ss:$16 sps:$4 sm:$0xff]  }
  0xb8   :  { %1776 = vmatpush1.bf16.msra.mxu0 %v4571_v29  ;;  %1948 = vmatpush1.bf16.msra.mxu1 %v4574_v30  ;;  %v4661_v29 = vld [vmem:[#allocation4 + $0x660] ss:$16 sps:$4 sm:$0xff]   ;;  %v4664_v30 = vld [vmem:[#allocation4 + $0x668] ss:$16 sps:$4 sm:$0xff]  }
  0xb9   :  { %1777 = vmatprep.subr.bf16.mxu0 %v4579_v31  ;;  %1949 = vmatprep.subr.bf16.mxu1 %v4582_v32  ;;  %v4669_v31 = vld [vmem:[#allocation4 + $0x684] ss:$16 sps:$4 sm:$0xff]   ;;  %v4672_v32 = vld [vmem:[#allocation4 + $0x68c] ss:$16 sps:$4 sm:$0xff]  }
  0xbc   :  { %1778 = vmatpush1.bf16.msra.mxu0 %v4577_v33  ;;  %1950 = vmatpush1.bf16.msra.mxu1 %v4580_v34  ;;  %v4667_v33 = vld [vmem:[#allocation4 + $0x680] ss:$16 sps:$4 sm:$0xff]   ;;  %v4670_v34 = vld [vmem:[#allocation4 + $0x688] ss:$16 sps:$4 sm:$0xff]  }
  0xbd   :  { %1779 = vmatprep.subr.bf16.mxu0 %v4585_v35  ;;  %1951 = vmatprep.subr.bf16.mxu1 %v4588_v36  ;;  %v4675_v35 = vld [vmem:[#allocation4 + $0x6a4] ss:$16 sps:$4 sm:$0xff]   ;;  %v4678_v36 = vld [vmem:[#allocation4 + $0x6ac] ss:$16 sps:$4 sm:$0xff]  }
  0xc0   :  { %1780 = vmatpush1.bf16.msra.mxu0 %v4583_v37  ;;  %1952 = vmatpush1.bf16.msra.mxu1 %v4586_v38  ;;  %v4673_v37 = vld [vmem:[#allocation4 + $0x6a0] ss:$16 sps:$4 sm:$0xff]   ;;  %v4676_v38 = vld [vmem:[#allocation4 + $0x6a8] ss:$16 sps:$4 sm:$0xff]  }
  0xc1   :  { %1781 = vmatprep.subr.bf16.mxu0 %v4591_v39  ;;  %1953 = vmatprep.subr.bf16.mxu1 %v4594_v40  ;;  %v4681_v39 = vld [vmem:[#allocation4 + $0x6c4] ss:$16 sps:$4 sm:$0xff]   ;;  %v4684_v40 = vld [vmem:[#allocation4 + $0x6cc] ss:$16 sps:$4 sm:$0xff]  }
  0xc4   :  { %1782 = vmatpush1.bf16.msra.mxu0 %v4589_v41  ;;  %1954 = vmatpush1.bf16.msra.mxu1 %v4592_v42  ;;  %v4679_v41 = vld [vmem:[#allocation4 + $0x6c0] ss:$16 sps:$4 sm:$0xff]   ;;  %v4682_v42 = vld [vmem:[#allocation4 + $0x6c8] ss:$16 sps:$4 sm:$0xff]  }
  0xc5   :  { %1783 = vmatprep.subr.bf16.mxu0 %v4597_v43  ;;  %1955 = vmatprep.subr.bf16.mxu1 %v4600_v44  ;;  %v4687_v43 = vld [vmem:[#allocation4 + $0x6e4] ss:$16 sps:$4 sm:$0xff]   ;;  %v4690_v44 = vld [vmem:[#allocation4 + $0x6ec] ss:$16 sps:$4 sm:$0xff]  }
  0xc8   :  { %1784 = vmatpush1.bf16.msra.mxu0 %v4595_v45  ;;  %1956 = vmatpush1.bf16.msra.mxu1 %v4598_v46  ;;  %v4685_v45 = vld [vmem:[#allocation4 + $0x6e0] ss:$16 sps:$4 sm:$0xff]   ;;  %v4688_v46 = vld [vmem:[#allocation4 + $0x6e8] ss:$16 sps:$4 sm:$0xff]  }
  0xc9   :  { %1785 = vmatprep.subr.bf16.mxu0 %v4603_v47  ;;  %1957 = vmatprep.subr.bf16.mxu1 %v4606_v48  ;;  %v4693_v47 = vld [vmem:[#allocation4 + $0x704] ss:$16 sps:$4 sm:$0xff]   ;;  %v4696_v48 = vld [vmem:[#allocation4 + $0x70c] ss:$16 sps:$4 sm:$0xff]  }
  0xcc   :  { %1786 = vmatpush1.bf16.msra.mxu0 %v4601_v49  ;;  %1958 = vmatpush1.bf16.msra.mxu1 %v4604_v50  ;;  %v4691_v49 = vld [vmem:[#allocation4 + $0x700] ss:$16 sps:$4 sm:$0xff]   ;;  %v4694_v50 = vld [vmem:[#allocation4 + $0x708] ss:$16 sps:$4 sm:$0xff]  }
  0xcd   :  { %1787 = vmatprep.subr.bf16.mxu0 %v4609_v51  ;;  %1959 = vmatprep.subr.bf16.mxu1 %v4612_v52  ;;  %v4699_v51 = vld [vmem:[#allocation4 + $0x724] ss:$16 sps:$4 sm:$0xff]   ;;  %v4702_v52 = vld [vmem:[#allocation4 + $0x72c] ss:$16 sps:$4 sm:$0xff]  }
  0xd0   :  { %1788 = vmatpush1.bf16.msra.mxu0 %v4607_v53  ;;  %1960 = vmatpush1.bf16.msra.mxu1 %v4610_v54  ;;  %v4697_v53 = vld [vmem:[#allocation4 + $0x720] ss:$16 sps:$4 sm:$0xff]   ;;  %v4700_v54 = vld [vmem:[#allocation4 + $0x728] ss:$16 sps:$4 sm:$0xff]  }
  0xd1   :  { %1789 = vmatprep.subr.bf16.mxu0 %v4615_v55  ;;  %1961 = vmatprep.subr.bf16.mxu1 %v4618_v56  ;;  %v4705_v55 = vld [vmem:[#allocation4 + $0x744] ss:$16 sps:$4 sm:$0xff]   ;;  %v4708_v56 = vld [vmem:[#allocation4 + $0x74c] ss:$16 sps:$4 sm:$0xff]  }
  0xd4   :  { %1790 = vmatpush1.bf16.msra.mxu0 %v4613_v57  ;;  %1962 = vmatpush1.bf16.msra.mxu1 %v4616_v58  ;;  %v4703_v57 = vld [vmem:[#allocation4 + $0x740] ss:$16 sps:$4 sm:$0xff]   ;;  %v4706_v58 = vld [vmem:[#allocation4 + $0x748] ss:$16 sps:$4 sm:$0xff]  }
  0xd5   :  { %1791 = vmatprep.subr.bf16.mxu0 %v4621_v59  ;;  %1963 = vmatprep.subr.bf16.mxu1 %v4624_v60  ;;  %v4711_v59 = vld [vmem:[#allocation4 + $0x764] ss:$16 sps:$4 sm:$0xff]   ;;  %v4714_v60 = vld [vmem:[#allocation4 + $0x76c] ss:$16 sps:$4 sm:$0xff]  }
  0xd8   :  { %1792 = vmatpush1.bf16.msra.mxu0 %v4619_v61  ;;  %1964 = vmatpush1.bf16.msra.mxu1 %v4622_v62  ;;  %v4709_v61 = vld [vmem:[#allocation4 + $0x760] ss:$16 sps:$4 sm:$0xff]   ;;  %v4712_v62 = vld [vmem:[#allocation4 + $0x768] ss:$16 sps:$4 sm:$0xff]  }
  0xd9   :  { %1793 = vmatprep.subr.bf16.mxu0 %v4627_v63  ;;  %1965 = vmatprep.subr.bf16.mxu1 %v4630_v0  ;;  %v4717_v63 = vld [vmem:[#allocation4 + $0x784] ss:$16 sps:$4 sm:$0xff]   ;;  %v4720_v0 = vld [vmem:[#allocation4 + $0x78c] ss:$16 sps:$4 sm:$0xff]  }
  0xdc   :  { %1794 = vmatpush1.bf16.msra.mxu0 %v4625_v1  ;;  %1966 = vmatpush1.bf16.msra.mxu1 %v4628_v2  ;;  %v4715_v1 = vld [vmem:[#allocation4 + $0x780] ss:$16 sps:$4 sm:$0xff]   ;;  %v4718_v2 = vld [vmem:[#allocation4 + $0x788] ss:$16 sps:$4 sm:$0xff]  }
  0xdd   :  { %1795 = vmatprep.subr.bf16.mxu0 %v4633_v3  ;;  %1967 = vmatprep.subr.bf16.mxu1 %v4636_v4  ;;  %v4723_v3 = vld [vmem:[#allocation4 + $0x7a4] ss:$16 sps:$4 sm:$0xff]   ;;  %v4726_v4 = vld [vmem:[#allocation4 + $0x7ac] ss:$16 sps:$4 sm:$0xff]  }
  0xe0   :  { %1796 = vmatpush1.bf16.msra.mxu0 %v4631_v5  ;;  %1968 = vmatpush1.bf16.msra.mxu1 %v4634_v6  ;;  %v4721_v5 = vld [vmem:[#allocation4 + $0x7a0] ss:$16 sps:$4 sm:$0xff]   ;;  %v4724_v6 = vld [vmem:[#allocation4 + $0x7a8] ss:$16 sps:$4 sm:$0xff]  }
  0xe1   :  { %1797 = vmatprep.subr.bf16.mxu0 %v4639_v7  ;;  %1969 = vmatprep.subr.bf16.mxu1 %v4642_v8  ;;  %v4729_v7 = vld [vmem:[#allocation4 + $0x7c4] ss:$16 sps:$4 sm:$0xff]   ;;  %v4732_v8 = vld [vmem:[#allocation4 + $0x7cc] ss:$16 sps:$4 sm:$0xff]  }
  0xe4   :  { %1798 = vmatpush1.bf16.msra.mxu0 %v4637_v9  ;;  %1970 = vmatpush1.bf16.msra.mxu1 %v4640_v10  ;;  %v4727_v9 = vld [vmem:[#allocation4 + $0x7c0] ss:$16 sps:$4 sm:$0xff]   ;;  %v4730_v10 = vld [vmem:[#allocation4 + $0x7c8] ss:$16 sps:$4 sm:$0xff]  }
  0xe5   :  { %1810 = vmatprep.subr.bf16.mxu0 %v4645_v11  ;;  %1982 = vmatprep.subr.bf16.mxu1 %v4648_v12  ;;  %v4735_v11 = vld [vmem:[#allocation4 + $0x7e4] ss:$16 sps:$4 sm:$0xff]   ;;  %v4738_v12 = vld [vmem:[#allocation4 + $0x7ec] ss:$16 sps:$4 sm:$0xff]  }
  0xe7   :  { %1800 = vmatmul.mubr.bf16.vlgmr.msra.gmra.mrb[0].mxu0 %v3676_v17  ;;  %1972 = vmatmul.mubr.bf16.vlgmr.msra.gmra.mrb[0].mxu1 %v3676_v17  ;;  %v4741_v17 = vld [vmem:[#allocation7 + $0x4] ss:$16 sps:$4 sm:$0xff]  }
  0xe8   :  { %1811 = vmatpush1.bf16.msra.mxu0 %v4643_v13  ;;  %1983 = vmatpush1.bf16.msra.mxu1 %v4646_v16  ;;  %v4733_v13 = vld [vmem:[#allocation4 + $0x7e0] ss:$16 sps:$4 sm:$0xff]   ;;  %v4736_v16 = vld [vmem:[#allocation4 + $0x7e8] ss:$16 sps:$4 sm:$0xff]  }
  0xe9   :  { %1812 = vmatprep.subr.bf16.mxu0 %v4651_v20  ;;  %1984 = vmatprep.subr.bf16.mxu1 %v4654_v21  ;;  %v4744_v20 = vld [vmem:[#allocation7 + $0xc] ss:$16 sps:$4 sm:$0xff]   ;;  %v3678_v21 = vcombine.low %v5179_v18, %v5184_v19  ;;  %v4751_v18 = vld [vmem:[#allocation7 + $0x40] ss:$16 sps:$4 sm:$0xff]   ;;  %v4754_v19 = vld [vmem:[#allocation7 + $0x48] ss:$16 sps:$4 sm:$0xff]  }
  0xea   :  { %1842 = vmatprep.mubr.bf16.mxu0 %v3679_v22  ;;  %2014 = vmatprep.mubr.bf16.mxu1 %v3679_v22  ;;  %v4739_v22 = vld [vmem:[#allocation7] ss:$16 sps:$4 sm:$0xff]  }
  0xec   :  { %1813 = vmatpush1.bf16.msra.mxu0 %v4649_v14  ;;  %1985 = vmatpush1.bf16.msra.mxu1 %v4652_v15  ;;  %v4742_v14 = vld [vmem:[#allocation7 + $0x8] ss:$16 sps:$4 sm:$0xff]   ;;  %v4747_v15 = vld [vmem:[#allocation7 + $0x24] ss:$16 sps:$4 sm:$0xff]  }
  0xed   :  { %1814 = vmatprep.subr.bf16.mxu0 %v4657_v23  ;;  %1986 = vmatprep.subr.bf16.mxu1 %v4660_v24  ;;  %v4750_v23 = vld [vmem:[#allocation7 + $0x2c] ss:$16 sps:$4 sm:$0xff]   ;;  %v4745_v24 = vld [vmem:[#allocation7 + $0x20] ss:$16 sps:$4 sm:$0xff]  }
  0xf0   :  { %1815 = vmatpush1.bf16.msra.mxu0 %v4655_v25  ;;  %1987 = vmatpush1.bf16.msra.mxu1 %v4658_v26  ;;  %v4748_v25 = vld [vmem:[#allocation7 + $0x28] ss:$16 sps:$4 sm:$0xff]   ;;  %v4753_v26 = vld [vmem:[#allocation7 + $0x44] ss:$16 sps:$4 sm:$0xff]  }
  0xf1   :  { %1816 = vmatprep.subr.bf16.mxu0 %v4663_v27  ;;  %1988 = vmatprep.subr.bf16.mxu1 %v4666_v28  ;;  %v4756_v27 = vld [vmem:[#allocation7 + $0x4c] ss:$16 sps:$4 sm:$0xff]   ;;  %v4759_v28 = vld [vmem:[#allocation7 + $0x64] ss:$16 sps:$4 sm:$0xff]  }
  0xf4   :  { %1817 = vmatpush1.bf16.msra.mxu0 %v4661_v29  ;;  %1989 = vmatpush1.bf16.msra.mxu1 %v4664_v30  ;;  %v4762_v29 = vld [vmem:[#allocation7 + $0x6c] ss:$16 sps:$4 sm:$0xff]   ;;  %v4757_v30 = vld [vmem:[#allocation7 + $0x60] ss:$16 sps:$4 sm:$0xff]  }
  0xf5   :  { %1818 = vmatprep.subr.bf16.mxu0 %v4669_v31  ;;  %1990 = vmatprep.subr.bf16.mxu1 %v4672_v32  ;;  %v4760_v31 = vld [vmem:[#allocation7 + $0x68] ss:$16 sps:$4 sm:$0xff]   ;;  %v4765_v32 = vld [vmem:[#allocation7 + $0x84] ss:$16 sps:$4 sm:$0xff]  }
  0xf8   :  { %1819 = vmatpush1.bf16.msra.mxu0 %v4667_v33  ;;  %1991 = vmatpush1.bf16.msra.mxu1 %v4670_v34  ;;  %v4768_v33 = vld [vmem:[#allocation7 + $0x8c] ss:$16 sps:$4 sm:$0xff]   ;;  %v4763_v34 = vld [vmem:[#allocation7 + $0x80] ss:$16 sps:$4 sm:$0xff]  }
  0xf9   :  { %1820 = vmatprep.subr.bf16.mxu0 %v4675_v35  ;;  %1992 = vmatprep.subr.bf16.mxu1 %v4678_v36  ;;  %v4766_v35 = vld [vmem:[#allocation7 + $0x88] ss:$16 sps:$4 sm:$0xff]   ;;  %v4771_v36 = vld [vmem:[#allocation7 + $0xa4] ss:$16 sps:$4 sm:$0xff]  }
  0xfc   :  { %1821 = vmatpush1.bf16.msra.mxu0 %v4673_v37  ;;  %1993 = vmatpush1.bf16.msra.mxu1 %v4676_v38  ;;  %v4774_v37 = vld [vmem:[#allocation7 + $0xac] ss:$16 sps:$4 sm:$0xff]   ;;  %v4769_v38 = vld [vmem:[#allocation7 + $0xa0] ss:$16 sps:$4 sm:$0xff]  }
  0xfd   :  { %1822 = vmatprep.subr.bf16.mxu0 %v4681_v39  ;;  %1994 = vmatprep.subr.bf16.mxu1 %v4684_v40  ;;  %v4772_v39 = vld [vmem:[#allocation7 + $0xa8] ss:$16 sps:$4 sm:$0xff]   ;;  %v4777_v40 = vld [vmem:[#allocation7 + $0xc4] ss:$16 sps:$4 sm:$0xff]  }
 0x100   :  { %1823 = vmatpush1.bf16.msra.mxu0 %v4679_v41  ;;  %1995 = vmatpush1.bf16.msra.mxu1 %v4682_v42  ;;  %v4780_v41 = vld [vmem:[#allocation7 + $0xcc] ss:$16 sps:$4 sm:$0xff]   ;;  %v4775_v42 = vld [vmem:[#allocation7 + $0xc0] ss:$16 sps:$4 sm:$0xff]  }
 0x101   :  { %1824 = vmatprep.subr.bf16.mxu0 %v4687_v43  ;;  %1996 = vmatprep.subr.bf16.mxu1 %v4690_v44  ;;  %v4778_v43 = vld [vmem:[#allocation7 + $0xc8] ss:$16 sps:$4 sm:$0xff]   ;;  %v4783_v44 = vld [vmem:[#allocation7 + $0xe4] ss:$16 sps:$4 sm:$0xff]  }
 0x104   :  { %1825 = vmatpush1.bf16.msra.mxu0 %v4685_v45  ;;  %1997 = vmatpush1.bf16.msra.mxu1 %v4688_v46  ;;  %v4786_v45 = vld [vmem:[#allocation7 + $0xec] ss:$16 sps:$4 sm:$0xff]   ;;  %v4781_v46 = vld [vmem:[#allocation7 + $0xe0] ss:$16 sps:$4 sm:$0xff]  }
 0x105   :  { %1826 = vmatprep.subr.bf16.mxu0 %v4693_v47  ;;  %1998 = vmatprep.subr.bf16.mxu1 %v4696_v48  ;;  %v4784_v47 = vld [vmem:[#allocation7 + $0xe8] ss:$16 sps:$4 sm:$0xff]   ;;  %v4789_v48 = vld [vmem:[#allocation7 + $0x104] ss:$16 sps:$4 sm:$0xff]  }
 0x108   :  { %1827 = vmatpush1.bf16.msra.mxu0 %v4691_v49  ;;  %1999 = vmatpush1.bf16.msra.mxu1 %v4694_v50  ;;  %v4792_v49 = vld [vmem:[#allocation7 + $0x10c] ss:$16 sps:$4 sm:$0xff]   ;;  %v4787_v50 = vld [vmem:[#allocation7 + $0x100] ss:$16 sps:$4 sm:$0xff]  }
 0x109   :  { %1828 = vmatprep.subr.bf16.mxu0 %v4699_v51  ;;  %2000 = vmatprep.subr.bf16.mxu1 %v4702_v52  ;;  %v4790_v51 = vld [vmem:[#allocation7 + $0x108] ss:$16 sps:$4 sm:$0xff]   ;;  %v4795_v52 = vld [vmem:[#allocation7 + $0x124] ss:$16 sps:$4 sm:$0xff]  }
 0x10c   :  { %1829 = vmatpush1.bf16.msra.mxu0 %v4697_v53  ;;  %2001 = vmatpush1.bf16.msra.mxu1 %v4700_v54  ;;  %v4798_v53 = vld [vmem:[#allocation7 + $0x12c] ss:$16 sps:$4 sm:$0xff]   ;;  %v4793_v54 = vld [vmem:[#allocation7 + $0x120] ss:$16 sps:$4 sm:$0xff]  }
 0x10d   :  { %1830 = vmatprep.subr.bf16.mxu0 %v4705_v55  ;;  %2002 = vmatprep.subr.bf16.mxu1 %v4708_v56  ;;  %v4796_v55 = vld [vmem:[#allocation7 + $0x128] ss:$16 sps:$4 sm:$0xff]   ;;  %v4801_v56 = vld [vmem:[#allocation7 + $0x144] ss:$16 sps:$4 sm:$0xff]  }
 0x110   :  { %1831 = vmatpush1.bf16.msra.mxu0 %v4703_v57  ;;  %2003 = vmatpush1.bf16.msra.mxu1 %v4706_v58  ;;  %v4804_v57 = vld [vmem:[#allocation7 + $0x14c] ss:$16 sps:$4 sm:$0xff]   ;;  %v4799_v58 = vld [vmem:[#allocation7 + $0x140] ss:$16 sps:$4 sm:$0xff]  }
 0x111   :  { %1832 = vmatprep.subr.bf16.mxu0 %v4711_v59  ;;  %2004 = vmatprep.subr.bf16.mxu1 %v4714_v60  ;;  %v4802_v59 = vld [vmem:[#allocation7 + $0x148] ss:$16 sps:$4 sm:$0xff]   ;;  %v4807_v60 = vld [vmem:[#allocation7 + $0x164] ss:$16 sps:$4 sm:$0xff]  }
 0x114   :  { %1833 = vmatpush1.bf16.msra.mxu0 %v4709_v61  ;;  %2005 = vmatpush1.bf16.msra.mxu1 %v4712_v62  ;;  %v4810_v61 = vld [vmem:[#allocation7 + $0x16c] ss:$16 sps:$4 sm:$0xff]   ;;  %v4805_v62 = vld [vmem:[#allocation7 + $0x160] ss:$16 sps:$4 sm:$0xff]  }
 0x115   :  { %1834 = vmatprep.subr.bf16.mxu0 %v4717_v63  ;;  %2006 = vmatprep.subr.bf16.mxu1 %v4720_v0  ;;  %v4808_v63 = vld [vmem:[#allocation7 + $0x168] ss:$16 sps:$4 sm:$0xff]   ;;  %v4813_v0 = vld [vmem:[#allocation7 + $0x184] ss:$16 sps:$4 sm:$0xff]  }
 0x118   :  { %1835 = vmatpush1.bf16.msra.mxu0 %v4715_v1  ;;  %2007 = vmatpush1.bf16.msra.mxu1 %v4718_v2  ;;  %v4816_v1 = vld [vmem:[#allocation7 + $0x18c] ss:$16 sps:$4 sm:$0xff]   ;;  %v4811_v2 = vld [vmem:[#allocation7 + $0x180] ss:$16 sps:$4 sm:$0xff]  }
 0x119   :  { %1836 = vmatprep.subr.bf16.mxu0 %v4723_v3  ;;  %2008 = vmatprep.subr.bf16.mxu1 %v4726_v4  ;;  %v4814_v3 = vld [vmem:[#allocation7 + $0x188] ss:$16 sps:$4 sm:$0xff]   ;;  %v4819_v4 = vld [vmem:[#allocation7 + $0x1a4] ss:$16 sps:$4 sm:$0xff]  }
 0x11c   :  { %1837 = vmatpush1.bf16.msra.mxu0 %v4721_v5  ;;  %2009 = vmatpush1.bf16.msra.mxu1 %v4724_v6  ;;  %v4822_v5 = vld [vmem:[#allocation7 + $0x1ac] ss:$16 sps:$4 sm:$0xff]   ;;  %v4817_v6 = vld [vmem:[#allocation7 + $0x1a0] ss:$16 sps:$4 sm:$0xff]  }
 0x11d   :  { %1838 = vmatprep.subr.bf16.mxu0 %v4729_v7  ;;  %2010 = vmatprep.subr.bf16.mxu1 %v4732_v8  ;;  %v4820_v7 = vld [vmem:[#allocation7 + $0x1a8] ss:$16 sps:$4 sm:$0xff]   ;;  %v4825_v8 = vld [vmem:[#allocation7 + $0x1c4] ss:$16 sps:$4 sm:$0xff]  }
 0x120   :  { %1839 = vmatpush1.bf16.msra.mxu0 %v4727_v9  ;;  %2011 = vmatpush1.bf16.msra.mxu1 %v4730_v10  ;;  %v4828_v9 = vld [vmem:[#allocation7 + $0x1cc] ss:$16 sps:$4 sm:$0xff]   ;;  %v4823_v10 = vld [vmem:[#allocation7 + $0x1c0] ss:$16 sps:$4 sm:$0xff]  }
 0x121   :  { %1840 = vmatprep.subr.bf16.mxu0 %v4735_v11  ;;  %2012 = vmatprep.subr.bf16.mxu1 %v4738_v12  ;;  %v4826_v11 = vld [vmem:[#allocation7 + $0x1c8] ss:$16 sps:$4 sm:$0xff]   ;;  %v4831_v12 = vld [vmem:[#allocation7 + $0x1e4] ss:$16 sps:$4 sm:$0xff]  }
 0x124   :  { %1841 = vmatpush1.bf16.msra.mxu0 %v4733_v13  ;;  %2013 = vmatpush1.bf16.msra.mxu1 %v4736_v16  ;;  %v4834_v13 = vld [vmem:[#allocation7 + $0x1ec] ss:$16 sps:$4 sm:$0xff]   ;;  %v4829_v16 = vld [vmem:[#allocation7 + $0x1e0] ss:$16 sps:$4 sm:$0xff]  }
 0x125   :  { %2827 = vmatprep.subr.bf16.mxu0 %v4741_v17  ;;  %2913 = vmatprep.subr.bf16.mxu1 %v4744_v20  ;;  %v4832_v17 = vld [vmem:[#allocation7 + $0x1e8] ss:$16 sps:$4 sm:$0xff]   ;;  %v4837_v20 = vld [vmem:[#allocation7 + $0x204] ss:$16 sps:$4 sm:$0xff]  }
 0x127   :  { %1843 = vmatmul.mubr.bf16.vlgmr.msra.gmra.mrb[0].mxu0 %v3678_v21  ;;  %2015 = vmatmul.mubr.bf16.vlgmr.msra.gmra.mrb[0].mxu1 %v3678_v21  ;;  %v4840_v21 = vld [vmem:[#allocation7 + $0x20c] ss:$16 sps:$4 sm:$0xff]  }
 0x128   :  { %2828 = vmatpush1.bf16.msra.mxu0 %v4739_v22  ;;  %2914 = vmatpush1.bf16.msra.mxu1 %v4742_v14  ;;  %v341_v22 = vlaneseq }
 0x129   :  { %2829 = vmatprep.subr.bf16.mxu0 %v4747_v15  ;;  %2915 = vmatprep.subr.bf16.mxu1 %v4750_v23 }
 0x12a   :  { %v5191_v14 = vshrl.u32 %v341_v22, 7 }
 0x12c   :  { %2830 = vmatpush1.bf16.msra.mxu0 %v4745_v24  ;;  %2916 = vmatpush1.bf16.msra.mxu1 %v4748_v25  ;;  %v343_v15 = vsub.s32 0, %v5191_v14  ;;  %v351_v23 = vsub.s32 2, %v5191_v14  ;;  %v339_v24 = vld [vmem:[%s5583_s3] sm:$0xf]  ;;  %v347_v25 = vsub.s32 1, %v5191_v14 }
 0x12d   :  { %2831 = vmatprep.subr.bf16.mxu0 %v4753_v26  ;;  %2917 = vmatprep.subr.bf16.mxu1 %v4756_v27  ;;  %v355_v26 = vsub.s32 3, %v5191_v14 }
 0x12e   :  { %v344_v27 = vrot.slane %v339_v24, %v343_v15 }
 0x130   :  { %2832 = vmatpush1.bf16.msra.mxu0 %v4751_v18  ;;  %2918 = vmatpush1.bf16.msra.mxu1 %v4754_v19  ;;  %v352_v18 = vrot.slane %v339_v24, %v351_v23  ;;  %v348_v19 = vrot.slane %v339_v24, %v347_v25 }
 0x131   :  { %2833 = vmatprep.subr.bf16.mxu0 %v4759_v28  ;;  %2919 = vmatprep.subr.bf16.mxu1 %v4762_v29  ;;  %v356_v28 = vrot.slane %v339_v24, %v355_v26  ;;  %v4874_v24 = vld [vmem:[#allocation7 + $0x2c8] ss:$16 sps:$4 sm:$0xff]  }
 0x134   :  { %2834 = vmatpush1.bf16.msra.mxu0 %v4757_v30  ;;  %2920 = vmatpush1.bf16.msra.mxu1 %v4760_v31 }
 0x135   :  { %2835 = vmatprep.subr.bf16.mxu0 %v4765_v32  ;;  %2921 = vmatprep.subr.bf16.mxu1 %v4768_v33 }
 0x138   :  { %2836 = vmatpush1.bf16.msra.mxu0 %v4763_v34  ;;  %2922 = vmatpush1.bf16.msra.mxu1 %v4766_v35 }
 0x139   :  { %2837 = vmatprep.subr.bf16.mxu0 %v4771_v36  ;;  %2923 = vmatprep.subr.bf16.mxu1 %v4774_v37 }
 0x13c   :  { %2838 = vmatpush1.bf16.msra.mxu0 %v4769_v38  ;;  %2924 = vmatpush1.bf16.msra.mxu1 %v4772_v39 }
 0x13d   :  { %2839 = vmatprep.subr.bf16.mxu0 %v4777_v40  ;;  %2925 = vmatprep.subr.bf16.mxu1 %v4780_v41 }
 0x140   :  { %2840 = vmatpush1.bf16.msra.mxu0 %v4775_v42  ;;  %2926 = vmatpush1.bf16.msra.mxu1 %v4778_v43 }
 0x141   :  { %2841 = vmatprep.subr.bf16.mxu0 %v4783_v44  ;;  %2927 = vmatprep.subr.bf16.mxu1 %v4786_v45 }
 0x144   :  { %2842 = vmatpush1.bf16.msra.mxu0 %v4781_v46  ;;  %2928 = vmatpush1.bf16.msra.mxu1 %v4784_v47 }
 0x145   :  { %2843 = vmatprep.subr.bf16.mxu0 %v4789_v48  ;;  %2929 = vmatprep.subr.bf16.mxu1 %v4792_v49 }
 0x148   :  { %2844 = vmatpush1.bf16.msra.mxu0 %v4787_v50  ;;  %2930 = vmatpush1.bf16.msra.mxu1 %v4790_v51 }
 0x149   :  { %2845 = vmatprep.subr.bf16.mxu0 %v4795_v52  ;;  %2931 = vmatprep.subr.bf16.mxu1 %v4798_v53 }
 0x14c   :  { %2846 = vmatpush1.bf16.msra.mxu0 %v4793_v54  ;;  %2932 = vmatpush1.bf16.msra.mxu1 %v4796_v55 }
 0x14d   :  { %2847 = vmatprep.subr.bf16.mxu0 %v4801_v56  ;;  %2933 = vmatprep.subr.bf16.mxu1 %v4804_v57  ;;  %v4835_v57 = vld [vmem:[#allocation7 + $0x200] ss:$16 sps:$4 sm:$0xff]  }
 0x150   :  { %2848 = vmatpush1.bf16.msra.mxu0 %v4799_v58  ;;  %2934 = vmatpush1.bf16.msra.mxu1 %v4802_v59  ;;  %v4838_v58 = vld [vmem:[#allocation7 + $0x208] ss:$16 sps:$4 sm:$0xff]   ;;  %v4843_v59 = vld [vmem:[#allocation7 + $0x224] ss:$16 sps:$4 sm:$0xff]  }
 0x151   :  { %2849 = vmatprep.subr.bf16.mxu0 %v4807_v60  ;;  %2935 = vmatprep.subr.bf16.mxu1 %v4810_v61  ;;  %v4846_v60 = vld [vmem:[#allocation7 + $0x22c] ss:$16 sps:$4 sm:$0xff]   ;;  %v4841_v61 = vld [vmem:[#allocation7 + $0x220] ss:$16 sps:$4 sm:$0xff]  }
 0x154   :  { %2850 = vmatpush1.bf16.msra.mxu0 %v4805_v62  ;;  %2936 = vmatpush1.bf16.msra.mxu1 %v4808_v63  ;;  %v4844_v62 = vld [vmem:[#allocation7 + $0x228] ss:$16 sps:$4 sm:$0xff]   ;;  %v4849_v63 = vld [vmem:[#allocation7 + $0x244] ss:$16 sps:$4 sm:$0xff]  }
 0x155   :  { %2851 = vmatprep.subr.bf16.mxu0 %v4813_v0  ;;  %2937 = vmatprep.subr.bf16.mxu1 %v4816_v1  ;;  %v4852_v0 = vld [vmem:[#allocation7 + $0x24c] ss:$16 sps:$4 sm:$0xff]   ;;  %v4847_v1 = vld [vmem:[#allocation7 + $0x240] ss:$16 sps:$4 sm:$0xff]  }
 0x158   :  { %2852 = vmatpush1.bf16.msra.mxu0 %v4811_v2  ;;  %2938 = vmatpush1.bf16.msra.mxu1 %v4814_v3  ;;  %v4850_v2 = vld [vmem:[#allocation7 + $0x248] ss:$16 sps:$4 sm:$0xff]   ;;  %v4855_v3 = vld [vmem:[#allocation7 + $0x264] ss:$16 sps:$4 sm:$0xff]  }
 0x159   :  { %2853 = vmatprep.subr.bf16.mxu0 %v4819_v4  ;;  %2939 = vmatprep.subr.bf16.mxu1 %v4822_v5  ;;  %v4858_v4 = vld [vmem:[#allocation7 + $0x26c] ss:$16 sps:$4 sm:$0xff]   ;;  %v4853_v5 = vld [vmem:[#allocation7 + $0x260] ss:$16 sps:$4 sm:$0xff]  }
 0x15c   :  { %2854 = vmatpush1.bf16.msra.mxu0 %v4817_v6  ;;  %2940 = vmatpush1.bf16.msra.mxu1 %v4820_v7  ;;  %v4856_v6 = vld [vmem:[#allocation7 + $0x268] ss:$16 sps:$4 sm:$0xff]   ;;  %v4861_v7 = vld [vmem:[#allocation7 + $0x284] ss:$16 sps:$4 sm:$0xff]  }
 0x15d   :  { %2855 = vmatprep.subr.bf16.mxu0 %v4825_v8  ;;  %2941 = vmatprep.subr.bf16.mxu1 %v4828_v9  ;;  %v4864_v8 = vld [vmem:[#allocation7 + $0x28c] ss:$16 sps:$4 sm:$0xff]   ;;  %v4859_v9 = vld [vmem:[#allocation7 + $0x280] ss:$16 sps:$4 sm:$0xff]  }
 0x160   :  { %2856 = vmatpush1.bf16.msra.mxu0 %v4823_v10  ;;  %2942 = vmatpush1.bf16.msra.mxu1 %v4826_v11  ;;  %v4862_v10 = vld [vmem:[#allocation7 + $0x288] ss:$16 sps:$4 sm:$0xff]   ;;  %v4867_v11 = vld [vmem:[#allocation7 + $0x2a4] ss:$16 sps:$4 sm:$0xff]  }
 0x161   :  { %2857 = vmatprep.subr.bf16.mxu0 %v4831_v12  ;;  %2943 = vmatprep.subr.bf16.mxu1 %v4834_v13  ;;  %v4870_v12 = vld [vmem:[#allocation7 + $0x2ac] ss:$16 sps:$4 sm:$0xff]   ;;  %v4865_v13 = vld [vmem:[#allocation7 + $0x2a0] ss:$16 sps:$4 sm:$0xff]  }
 0x164   :  { %2858 = vmatpush1.bf16.msra.mxu0 %v4829_v16  ;;  %2944 = vmatpush1.bf16.msra.mxu1 %v4832_v17  ;;  %v4868_v16 = vld [vmem:[#allocation7 + $0x2a8] ss:$16 sps:$4 sm:$0xff]   ;;  %v4873_v17 = vld [vmem:[#allocation7 + $0x2c4] ss:$16 sps:$4 sm:$0xff]  }
 0x165   :  { %2870 = vmatprep.subr.bf16.mxu0 %v4837_v20  ;;  %2956 = vmatprep.subr.bf16.mxu1 %v4840_v21  ;;  %v4876_v20 = vld [vmem:[#allocation7 + $0x2cc] ss:$16 sps:$4 sm:$0xff]   ;;  %v4871_v21 = vld [vmem:[#allocation7 + $0x2c0] ss:$16 sps:$4 sm:$0xff]  }
 0x1fa   :  { %v1844_v29 = vpop.f32.mrb[0].mxu0  ;;  %v2016_v30 = vpop.f32.mrb[0].mxu1 }
 0x1fb   :  { %v4287_v31 = vadd.f32 %v1844_v29, %v344_v27  ;;  %v4291_v32 = vadd.f32 %v2016_v30, %v352_v18  ;;  %v1846_v33 = vpop.f32.mrb[1].mxu0  ;;  %v2018_v34 = vpop.f32.mrb[1].mxu1  ;;  %v4885_v29 = vld [vmem:[#allocation7 + $0x304] ss:$16 sps:$4 sm:$0xff]   ;;  %v4888_v30 = vld [vmem:[#allocation7 + $0x30c] ss:$16 sps:$4 sm:$0xff]  }
 0x1fc   :  { %v4288_v35 = vadd.f32 %v1846_v33, %v348_v19  ;;  %v4292_v36 = vadd.f32 %v2018_v34, %v356_v28  ;;  %v1848_v37 = vpop.f32.mrb[2].mxu0  ;;  %v2020_v38 = vpop.f32.mrb[2].mxu1  ;;  %v4891_v33 = vld [vmem:[#allocation7 + $0x324] ss:$16 sps:$4 sm:$0xff]   ;;  %v4894_v34 = vld [vmem:[#allocation7 + $0x32c] ss:$16 sps:$4 sm:$0xff]  }
 0x1fd   :  { %v4289_v39 = vadd.f32 %v1848_v37, %v344_v27  ;;  %v4293_v40 = vadd.f32 %v2020_v38, %v352_v18  ;;  %v1850_v41 = vpop.f32.mrb[3].mxu0  ;;  %v2022_v42 = vpop.f32.mrb[3].mxu1  ;;  %v2025_v45 = vmax.f32 %v4287_v31, 0.0  ;;  %v2027_v46 = vmax.f32 %v4291_v32, 0.0  ;;  %v4879_v27 = vld [vmem:[#allocation7 + $0x2e4] ss:$16 sps:$4 sm:$0xff]  }
 0x1fe   :  { %v4290_v43 = vadd.f32 %v1850_v41, %v348_v19  ;;  %v4294_v44 = vadd.f32 %v2022_v42, %v356_v28  ;;  %v2026_v49 = vmax.f32 %v4288_v35, 0.0  ;;  %v2028_v50 = vmax.f32 %v4292_v36, 0.0  ;;  %v4882_v18 = vld [vmem:[#allocation7 + $0x2ec] ss:$16 sps:$4 sm:$0xff]   ;;  %v4877_v19 = vld [vmem:[#allocation7 + $0x2e0] ss:$16 sps:$4 sm:$0xff]  }
 0x1ff   :  { %v2029_v47 = vmax.f32 %v4289_v39, 0.0  ;;  %v2031_v48 = vmax.f32 %v4293_v40, 0.0  ;;  %v4880_v28 = vld [vmem:[#allocation7 + $0x2e8] ss:$16 sps:$4 sm:$0xff]   ;;  %v4883_v31 = vld [vmem:[#allocation7 + $0x300] ss:$16 sps:$4 sm:$0xff]  }
 0x200   :  { %v2030_v51 = vmax.f32 %v4290_v43, 0.0  ;;  %v2032_v52 = vmax.f32 %v4294_v44, 0.0  ;;  %v4886_v32 = vld [vmem:[#allocation7 + $0x308] ss:$16 sps:$4 sm:$0xff]   ;;  %v4889_v35 = vld [vmem:[#allocation7 + $0x320] ss:$16 sps:$4 sm:$0xff]  }
 0x201   :  { %v5208_v53 = vpack.c.bf16 %v2029_v47, %v2025_v45  ;;  %v5210_v54 = vpack.c.bf16 %v2031_v48, %v2027_v46  ;;  %v4892_v36 = vld [vmem:[#allocation7 + $0x328] ss:$16 sps:$4 sm:$0xff]   ;;  %v4897_v37 = vld [vmem:[#allocation7 + $0x344] ss:$16 sps:$4 sm:$0xff]   ;;  %v4900_v38 = vld [vmem:[#allocation7 + $0x34c] ss:$16 sps:$4 sm:$0xff]  }
 0x202   :  { %v5212_v55 = vpack.c.bf16 %v2030_v51, %v2026_v49  ;;  %v5214_v56 = vpack.c.bf16 %v2032_v52, %v2028_v50  ;;  %v4895_v39 = vld [vmem:[#allocation7 + $0x340] ss:$16 sps:$4 sm:$0xff]   ;;  %v4898_v40 = vld [vmem:[#allocation7 + $0x348] ss:$16 sps:$4 sm:$0xff]   ;;  %v4903_v41 = vld [vmem:[#allocation7 + $0x364] ss:$16 sps:$4 sm:$0xff]  }
 0x203   :  { %v4906_v42 = vld [vmem:[#allocation7 + $0x36c] ss:$16 sps:$4 sm:$0xff]   ;;  %v4901_v43 = vld [vmem:[#allocation7 + $0x360] ss:$16 sps:$4 sm:$0xff]   ;;  %v4904_v44 = vld [vmem:[#allocation7 + $0x368] ss:$16 sps:$4 sm:$0xff]  }
 0x204   :  { %2859 = vmatprep.mubr.bf16.mxu0 %v5212_v55  ;;  %2945 = vmatprep.mubr.bf16.mxu1 %v5212_v55  ;;  %v4909_v45 = vld [vmem:[#allocation7 + $0x384] ss:$16 sps:$4 sm:$0xff]   ;;  %v4912_v46 = vld [vmem:[#allocation7 + $0x38c] ss:$16 sps:$4 sm:$0xff]   ;;  %v4907_v47 = vld [vmem:[#allocation7 + $0x380] ss:$16 sps:$4 sm:$0xff]  }
 0x205   :  { %2860 = vmatmul.mubr.bf16.vlgmr.msra.gmra.mrb[4].mxu0 %v5208_v53  ;;  %2946 = vmatmul.mubr.bf16.vlgmr.msra.gmra.mrb[4].mxu1 %v5208_v53  ;;  %v4910_v48 = vld [vmem:[#allocation7 + $0x388] ss:$16 sps:$4 sm:$0xff]   ;;  %v4915_v49 = vld [vmem:[#allocation7 + $0x3a4] ss:$16 sps:$4 sm:$0xff]   ;;  %v4918_v50 = vld [vmem:[#allocation7 + $0x3ac] ss:$16 sps:$4 sm:$0xff]  }
 0x206   :  { %2871 = vmatpush1.bf16.msra.mxu0 %v4835_v57  ;;  %2957 = vmatpush1.bf16.msra.mxu1 %v4838_v58  ;;  %v4913_v51 = vld [vmem:[#allocation7 + $0x3a0] ss:$16 sps:$4 sm:$0xff]   ;;  %v4916_v52 = vld [vmem:[#allocation7 + $0x3a8] ss:$16 sps:$4 sm:$0xff]   ;;  %v4921_v57 = vld [vmem:[#allocation7 + $0x3c4] ss:$16 sps:$4 sm:$0xff]  }
 0x207   :  { %2902 = vmatprep.mubr.bf16.mxu0 %v5214_v56  ;;  %2988 = vmatprep.mubr.bf16.mxu1 %v5214_v56  ;;  %v4924_v58 = vld [vmem:[#allocation7 + $0x3cc] ss:$16 sps:$4 sm:$0xff]  }
 0x208   :  { %2872 = vmatprep.subr.bf16.mxu0 %v4843_v59  ;;  %2958 = vmatprep.subr.bf16.mxu1 %v4846_v60  ;;  %v4919_v59 = vld [vmem:[#allocation7 + $0x3c0] ss:$16 sps:$4 sm:$0xff]   ;;  %v4922_v60 = vld [vmem:[#allocation7 + $0x3c8] ss:$16 sps:$4 sm:$0xff]  }
 0x20a   :  { %2873 = vmatpush1.bf16.msra.mxu0 %v4841_v61  ;;  %2959 = vmatpush1.bf16.msra.mxu1 %v4844_v62  ;;  %v4927_v61 = vld [vmem:[#allocation7 + $0x3e4] ss:$16 sps:$4 sm:$0xff]   ;;  %v4930_v62 = vld [vmem:[#allocation7 + $0x3ec] ss:$16 sps:$4 sm:$0xff]  }
 0x20b   :  { %2874 = vmatprep.subr.bf16.mxu0 %v4849_v63  ;;  %2960 = vmatprep.subr.bf16.mxu1 %v4852_v0  ;;  %v4925_v63 = vld [vmem:[#allocation7 + $0x3e0] ss:$16 sps:$4 sm:$0xff]   ;;  %v4928_v0 = vld [vmem:[#allocation7 + $0x3e8] ss:$16 sps:$4 sm:$0xff]  }
 0x20e   :  { %2875 = vmatpush1.bf16.msra.mxu0 %v4847_v1  ;;  %2961 = vmatpush1.bf16.msra.mxu1 %v4850_v2  ;;  %v3047_v1 = vld [vmem:[%s5586_s6 + $0x80] sm:$0xff]  ;;  %v3048_v2 = vld [vmem:[%s5586_s6 + $0x88] sm:$0xff] }
 0x20f   :  { %2876 = vmatprep.subr.bf16.mxu0 %v4855_v3  ;;  %2962 = vmatprep.subr.bf16.mxu1 %v4858_v4  ;;  %v4191_v3 = vpack.c.bf16 %v3048_v2, %v3047_v1 }
 0x212   :  { %2877 = vmatpush1.bf16.msra.mxu0 %v4853_v5  ;;  %2963 = vmatpush1.bf16.msra.mxu1 %v4856_v6  ;;  %v3050_v5 = vld [vmem:[%s5586_s6 + $0x98] sm:$0xff] }
 0x213   :  { %2878 = vmatprep.subr.bf16.mxu0 %v4861_v7  ;;  %2964 = vmatprep.subr.bf16.mxu1 %v4864_v8  ;;  %v3033_v7 = vld [vmem:[%s5586_s6 + $0x10] sm:$0xff]  ;;  %v3034_v8 = vld [vmem:[%s5586_s6 + $0x18] sm:$0xff] }
 0x216   :  { %2879 = vmatpush1.bf16.msra.mxu0 %v4859_v9  ;;  %2965 = vmatpush1.bf16.msra.mxu1 %v4862_v10  ;;  %v4197_v9 = vpack.c.bf16 %v3034_v8, %v3033_v7  ;;  %v3051_v10 = vld [vmem:[%s5586_s6 + $0xa0] sm:$0xff] }
 0x217   :  { %2880 = vmatprep.subr.bf16.mxu0 %v4867_v11  ;;  %2966 = vmatprep.subr.bf16.mxu1 %v4870_v12  ;;  %v3052_v11 = vld [vmem:[%s5586_s6 + $0xa8] sm:$0xff] }
 0x218   :  { %v4199_v12 = vpack.c.bf16 %v3052_v11, %v3051_v10 }
 0x21a   :  { %2881 = vmatpush1.bf16.msra.mxu0 %v4865_v13  ;;  %2967 = vmatpush1.bf16.msra.mxu1 %v4868_v16  ;;  %v3035_v13 = vld [vmem:[%s5586_s6 + $0x20] sm:$0xff]  ;;  %v3036_v16 = vld [vmem:[%s5586_s6 + $0x28] sm:$0xff] }
 0x21b   :  { %2882 = vmatprep.subr.bf16.mxu0 %v4873_v17  ;;  %2968 = vmatprep.subr.bf16.mxu1 %v4876_v20  ;;  %v4201_v17 = vpack.c.bf16 %v3036_v16, %v3035_v13  ;;  %v3053_v20 = vld [vmem:[%s5586_s6 + $0xb0] sm:$0xff] }
 0x21e   :  { %2883 = vmatpush1.bf16.msra.mxu0 %v4871_v21  ;;  %2969 = vmatpush1.bf16.msra.mxu1 %v4874_v24  ;;  %v3054_v21 = vld [vmem:[%s5586_s6 + $0xb8] sm:$0xff] }
 0x21f   :  { %2884 = vmatprep.subr.bf16.mxu0 %v4879_v27  ;;  %2970 = vmatprep.subr.bf16.mxu1 %v4882_v18  ;;  %v4203_v24 = vpack.c.bf16 %v3054_v21, %v3053_v20  ;;  %v3037_v27 = vld [vmem:[%s5586_s6 + $0x30] sm:$0xff]  ;;  %v3038_v18 = vld [vmem:[%s5586_s6 + $0x38] sm:$0xff] }
 0x222   :  { %2885 = vmatpush1.bf16.msra.mxu0 %v4877_v19  ;;  %2971 = vmatpush1.bf16.msra.mxu1 %v4880_v28  ;;  %v4205_v19 = vpack.c.bf16 %v3038_v18, %v3037_v27  ;;  %v3055_v28 = vld [vmem:[%s5586_s6 + $0xc0] sm:$0xff] }
 0x223   :  { %2886 = vmatprep.subr.bf16.mxu0 %v4885_v29  ;;  %2972 = vmatprep.subr.bf16.mxu1 %v4888_v30  ;;  %v3056_v29 = vld [vmem:[%s5586_s6 + $0xc8] sm:$0xff] }
 0x224   :  { %v4207_v30 = vpack.c.bf16 %v3056_v29, %v3055_v28 }
 0x226   :  { %2887 = vmatpush1.bf16.msra.mxu0 %v4883_v31  ;;  %2973 = vmatpush1.bf16.msra.mxu1 %v4886_v32  ;;  %v3039_v31 = vld [vmem:[%s5586_s6 + $0x40] sm:$0xff]  ;;  %v3040_v32 = vld [vmem:[%s5586_s6 + $0x48] sm:$0xff] }
 0x227   :  { %2888 = vmatprep.subr.bf16.mxu0 %v4891_v33  ;;  %2974 = vmatprep.subr.bf16.mxu1 %v4894_v34  ;;  %v4209_v33 = vpack.c.bf16 %v3040_v32, %v3039_v31  ;;  %v3057_v34 = vld [vmem:[%s5586_s6 + $0xd0] sm:$0xff] }
 0x22a   :  { %2889 = vmatpush1.bf16.msra.mxu0 %v4889_v35  ;;  %2975 = vmatpush1.bf16.msra.mxu1 %v4892_v36  ;;  %v3058_v35 = vld [vmem:[%s5586_s6 + $0xd8] sm:$0xff] }
 0x22b   :  { %2890 = vmatprep.subr.bf16.mxu0 %v4897_v37  ;;  %2976 = vmatprep.subr.bf16.mxu1 %v4900_v38  ;;  %v4211_v36 = vpack.c.bf16 %v3058_v35, %v3057_v34  ;;  %v3041_v37 = vld [vmem:[%s5586_s6 + $0x50] sm:$0xff]  ;;  %v3042_v38 = vld [vmem:[%s5586_s6 + $0x58] sm:$0xff] }
 0x22e   :  { %2891 = vmatpush1.bf16.msra.mxu0 %v4895_v39  ;;  %2977 = vmatpush1.bf16.msra.mxu1 %v4898_v40  ;;  %v4213_v39 = vpack.c.bf16 %v3042_v38, %v3041_v37  ;;  %v3059_v40 = vld [vmem:[%s5586_s6 + $0xe0] sm:$0xff] }
 0x22f   :  { %2892 = vmatprep.subr.bf16.mxu0 %v4903_v41  ;;  %2978 = vmatprep.subr.bf16.mxu1 %v4906_v42  ;;  %v3060_v41 = vld [vmem:[%s5586_s6 + $0xe8] sm:$0xff]  ;;  %v3043_v42 = vld [vmem:[%s5586_s6 + $0x60] sm:$0xff] }
 0x230   :  { %v4068_v37 = vld [vmem:[%s5587_s7] ss:$0 sm:$0xff] }
 0x232   :  { %2893 = vmatpush1.bf16.msra.mxu0 %v4901_v43  ;;  %2979 = vmatpush1.bf16.msra.mxu1 %v4904_v44  ;;  %v4215_v43 = vpack.c.bf16 %v3060_v41, %v3059_v40  ;;  %v3044_v44 = vld [vmem:[%s5586_s6 + $0x68] sm:$0xff] }
 0x233   :  { %2894 = vmatprep.subr.bf16.mxu0 %v4909_v45  ;;  %2980 = vmatprep.subr.bf16.mxu1 %v4912_v46  ;;  %v3061_v45 = vld [vmem:[%s5586_s6 + $0xf0] sm:$0xff]  ;;  %v3062_v46 = vld [vmem:[%s5586_s6 + $0xf8] sm:$0xff] }
 0x236   :  { %2895 = vmatpush1.bf16.msra.mxu0 %v4907_v47  ;;  %2981 = vmatpush1.bf16.msra.mxu1 %v4910_v48  ;;  %v4217_v47 = vpack.c.bf16 %v3044_v44, %v3043_v42  ;;  %v4219_v48 = vpack.c.bf16 %v3062_v46, %v3061_v45 }
 0x237   :  { %2896 = vmatprep.subr.bf16.mxu0 %v4915_v49  ;;  %2982 = vmatprep.subr.bf16.mxu1 %v4918_v50  ;;  %v3045_v49 = vld [vmem:[%s5586_s6 + $0x70] sm:$0xff]  ;;  %v3046_v50 = vld [vmem:[%s5586_s6 + $0x78] sm:$0xff] }
 0x23a   :  { %2897 = vmatpush1.bf16.msra.mxu0 %v4913_v51  ;;  %2983 = vmatpush1.bf16.msra.mxu1 %v4916_v52  ;;  %v4221_v51 = vpack.c.bf16 %v3046_v50, %v3045_v49  ;;  %v2165_v52 = vld [vmem:[%s5585_s5] sm:$0xf]  ;;  %s5057_s5 = smov [#allocation9]  }
 0x23b   :  { %2898 = vmatprep.subr.bf16.mxu0 %v4921_v57  ;;  %2984 = vmatprep.subr.bf16.mxu1 %v4924_v58  ;;  %v2178_v57 = vrot.slane %v2165_v52, %v351_v23  ;;  %v2182_v58 = vrot.slane %v2165_v52, %v355_v26  ;;  %v2170_v26 = vrot.slane %v2165_v52, %v343_v15 }
 0x23c   :  { %v2174_v7 = vrot.slane %v2165_v52, %v347_v25  ;;  %v3145_v52 = vld [vmem:[%s5581_s1] sm:$0xff] }
 0x23e   :  { %2899 = vmatpush1.bf16.msra.mxu0 %v4919_v59  ;;  %2985 = vmatpush1.bf16.msra.mxu1 %v4922_v60 }
 0x23f   :  { %2900 = vmatprep.subr.bf16.mxu0 %v4927_v61  ;;  %2986 = vmatprep.subr.bf16.mxu1 %v4930_v62 }
 0x242   :  { %2901 = vmatpush1.bf16.msra.mxu0 %v4925_v63  ;;  %2987 = vmatpush1.bf16.msra.mxu1 %v4928_v0 }
 0x243   :  { %3231 = vmatprep.subr.bf16.mxu1 %v5212_v55  ;;  %4192 = vmatprep.subr.bf16.mxu0 %v4191_v3  ;;  %v3031_v55 = vld [vmem:[%s5586_s6] sm:$0xff] }
 0x245   :  { %2903 = vmatmul.mubr.bf16.vlgmr.msra.gmra.mrb[4].mxu0 %v5210_v54  ;;  %2989 = vmatmul.mubr.bf16.vlgmr.msra.gmra.mrb[4].mxu1 %v5210_v54 }
 0x246   :  { %3232 = vmatpush1.bf16.msra.mxu1 %v5208_v53  ;;  %v3032_v53 = vld [vmem:[%s5586_s6 + $0x8] sm:$0xff] }
 0x247   :  { %3272 = vmatprep.subr.bf16.mxu1 %v5214_v56  ;;  %v4193_v4 = vpack.c.bf16 %v3032_v53, %v3031_v55  ;;  %v3049_v56 = vld [vmem:[%s5586_s6 + $0x90] sm:$0xff]  ;;  %s3660_s6 = sshll.u32 %s5057_s5, 4  ;;  %s3661_s6 = int_to_ptr.vmem [resolvable:$true] %s3660_s6 }
 0x248   :  { %v4195_v6 = vpack.c.bf16 %v3050_v5, %v3049_v56  ;;  %p5022_p3 = scmp.lt.s32.totalorder %s3661_s6, %s3661_s6 }
 0x249   :  { %4194 = vmatpush3.bf16.msra.mxu0 %v4193_v4 }
 0x24a   :  { %4196 = vmatprep.subr.bf16.mxu0 %v4195_v6 }
 0x24d   :  { %4198 = vmatpush3.bf16.msra.mxu0 %v4197_v9 }
 0x24e   :  { %4200 = vmatprep.subr.bf16.mxu0 %v4199_v12 }
 0x251   :  { %4202 = vmatpush3.bf16.msra.mxu0 %v4201_v17 }
 0x252   :  { %4204 = vmatprep.subr.bf16.mxu0 %v4203_v24 }
 0x255   :  { %4206 = vmatpush3.bf16.msra.mxu0 %v4205_v19 }
 0x256   :  { %4208 = vmatprep.subr.bf16.mxu0 %v4207_v30 }
 0x259   :  { %4210 = vmatpush3.bf16.msra.mxu0 %v4209_v33 }
 0x25a   :  { %4212 = vmatprep.subr.bf16.mxu0 %v4211_v36 }
 0x25d   :  { %4214 = vmatpush3.bf16.msra.mxu0 %v4213_v39 }
 0x25e   :  { %4216 = vmatprep.subr.bf16.mxu0 %v4215_v43 }
 0x261   :  { %4218 = vmatpush3.bf16.msra.mxu0 %v4217_v47 }
 0x262   :  { %4220 = vmatprep.subr.bf16.mxu0 %v4219_v48 }
 0x265   :  { %4222 = vmatpush3.bf16.msra.mxu0 %v4221_v51  ;;  %v5050_v51 = vmov 0  }
 0x266   :  { %4348 = vset.pattern.permute.xlu1 %v5050_v51  ;;  %3263 = vmatprep.mubr.bf16.mxu1 %v5050_v51 }
 0x267   :  { %4354 = vset.pattern.permute.xlu0 %v5050_v51 }
 0x318   :  { %v2904_v59 = vpop.f32.mrb[4].mxu0  ;;  %v2990_v60 = vpop.f32.mrb[4].mxu1 }
 0x319   :  { %v4299_v61 = vadd.f32 %v2990_v60, %v2178_v57  ;;  %v2906_v62 = vpop.f32.mrb[5].mxu0  ;;  %v2992_v63 = vpop.f32.mrb[5].mxu1  ;;  %v4295_v8 = vadd.f32 %v2904_v59, %v2170_v26  ;;  %v3146_v59 = vld [vmem:[%s5581_s1 + $0x8] sm:$0xff] }
 0x31a   :  { %v4300_v0 = vadd.f32 %v2992_v63, %v2182_v58  ;;  %v2908_v1 = vpop.f32.mrb[6].mxu0  ;;  %v2994_v2 = vpop.f32.mrb[6].mxu1  ;;  %v4296_v9 = vadd.f32 %v2906_v62, %v2174_v7 }
 0x31b   :  { %v4064_v3 = vmul.f32 -1.442695, %v4299_v61  ;;  %v4301_v55 = vadd.f32 %v2994_v2, %v2178_v57  ;;  %v2910_v53 = vpop.f32.mrb[7].mxu0  ;;  %v2996_v4 = vpop.f32.mrb[7].mxu1  ;;  %v4297_v13 = vadd.f32 %v2908_v1, %v2170_v26 }
 0x31c   :  { %v4065_v56 = vmul.f32 -1.442695, %v4300_v0  ;;  %v4302_v5 = vadd.f32 %v2996_v4, %v2182_v58  ;;  %v4298_v20 = vadd.f32 %v2910_v53, %v2174_v7 }
 0x31d   :  { %4931 = vpow2.f32 %v4064_v3  ;;  %v4066_v6 = vmul.f32 -1.442695, %v4301_v55 }
 0x31e   :  { %4933 = vpow2.f32 %v4065_v56  ;;  %v4067_v23 = vmul.f32 -1.442695, %v4302_v5 }
 0x31f   :  { %4935 = vpow2.f32 %v4066_v6  ;;  %v5051_v6 = vmov 0.0  }
 0x320   :  { %4937 = vpow2.f32 %v4067_v23  ;;  %74 = vst.msk [vmem:[#allocation3] sm:$0x3] %vm73_vm1, %v5051_v6  ;;  %v3188_v23 = vand.u32 127, %v341_v22 }
 0x321   :  { %4939 = vtanh.f32 %v4295_v8  ;;  %v3183_v8 = vadd.s32 8, %v5191_v14 }
 0x322   :  { %4941 = vtanh.f32 %v4296_v9  ;;  %v3189_v26 = vmul.u32 8, %v3188_v23 }
 0x324   :  { %v3192_v7 = vadd.s32 8, %v3189_v26  ;;  %vm3190_vm2 = vcmp.ge.s32.totalorder %v5191_v14, %v3189_v26  ;;  %vm3191_vm4 = vcmp.ge.s32.totalorder %v3183_v8, %v3189_v26 }
 0x326   :  { %vm3193_vm3 = vcmp.lt.s32.totalorder %v5191_v14, %v3192_v7  ;;  %vm3194_vm5 = vcmp.lt.s32.totalorder %v3183_v8, %v3192_v7 }
 0x327   :  { %v4932_v10 = vpop.eup %4931  ;;  %vm3195_vm6 = vmand %vm3190_vm2, %vm3193_vm3  ;;  %v3337_v7 = vld [vmem:[#allocation3] sm:$0x3] }
 0x328   :  { %v4934_v11 = vpop.eup %4933  ;;  %v3015_v12 = vadd.f32 1.0, %v4932_v10  ;;  %vm3196_vm7 = vmand %vm3191_vm4, %vm3194_vm5 }
 0x329   :  { %v3016_v16 = vadd.f32 1.0, %v4934_v11  ;;  %v4936_v17 = vpop.eup %4935 }
 0x32a   :  { %4943 = vrcp.f32 %v3015_v12  ;;  %v3017_v21 = vadd.f32 1.0, %v4936_v17  ;;  %v4938_v15 = vpop.eup %4937  ;;  %v5052_v17 = vmov 1065369472  }
 0x32b   :  { %4945 = vrcp.f32 %v3016_v16  ;;  %v3018_v24 = vadd.f32 1.0, %v4938_v15  ;;  %v4940_v25 = vpop.eup %4939 }
 0x32c   :  { %4947 = vtanh.f32 %v4297_v13  ;;  %v4942_v27 = vpop.eup %4941 }
 0x32d   :  { %4949 = vrcp.f32 %v3017_v21  ;;  %v3417_v21 = vld [vmem:[%s5588_s8 + $0x88] sm:$0xff] }
 0x32e   :  { %4951 = vtanh.f32 %v4298_v20  ;;  %v3416_v20 = vld [vmem:[%s5588_s8 + $0x80] sm:$0xff] }
 0x32f   :  { %4953 = vrcp.f32 %v3018_v24  ;;  %v4223_v15 = vpack.c.bf16 %v3417_v21, %v3416_v20  ;;  %v3401_v24 = vld [vmem:[%s5588_s8 + $0x8] sm:$0xff]  ;;  %v3406_v20 = vld [vmem:[%s5588_s8 + $0x30] sm:$0xff]  ;;  %v3407_v21 = vld [vmem:[%s5588_s8 + $0x38] sm:$0xff] }
 0x334   :  { %v4944_v18 = vpop.eup %4943 }
 0x335   :  { %v4946_v19 = vpop.eup %4945  ;;  %v3027_v28 = vmul.f32 %v4944_v18, %v4940_v25  ;;  %v3448_v25 = vld [vmem:[%s5588_s8 + $0x180] sm:$0xff] }
 0x336   :  { %v4948_v29 = vpop.eup %4947  ;;  %v3028_v30 = vmul.f32 %v4946_v19, %v4942_v27  ;;  %v3449_v27 = vld [vmem:[%s5588_s8 + $0x188] sm:$0xff] }
 0x337   :  { %v4950_v31 = vpop.eup %4949  ;;  %v4255_v19 = vpack.c.bf16 %v3449_v27, %v3448_v25  ;;  %v3438_v25 = vld [vmem:[%s5588_s8 + $0x130] sm:$0xff] }
 0x338   :  { %v4952_v32 = vpop.eup %4951  ;;  %3134 = vmatprep.mubr.f32.mxu0 %v3028_v30  ;;  %v3029_v33 = vmul.f32 %v4950_v31, %v4948_v29  ;;  %v3433_v29 = vld [vmem:[%s5588_s8 + $0x108] sm:$0xff]  ;;  %v3418_v30 = vld [vmem:[%s5588_s8 + $0x90] sm:$0xff] }
 0x339   :  { %v4954_v34 = vpop.eup %4953  ;;  %3135 = vmatmul.mubr.f32.vlgmr.msra.gmra.mrb[8].mxu0 %v3027_v28  ;;  %v3432_v28 = vld [vmem:[%s5588_s8 + $0x100] sm:$0xff]  ;;  %4256 = vmatprep.subr.bf16.mxu0 %v4255_v19 }
 0x33a   :  { %v3030_v35 = vmul.f32 %v4954_v34, %v4952_v32  ;;  %v4257_v31 = vpack.c.bf16 %v3433_v29, %v3432_v28  ;;  %v3419_v32 = vld [vmem:[%s5588_s8 + $0x98] sm:$0xff]  ;;  %v3424_v19 = vld [vmem:[%s5588_s8 + $0xc0] sm:$0xff]  ;;  %v3425_v28 = vld [vmem:[%s5588_s8 + $0xc8] sm:$0xff] }
 0x33b   :  { %v3403_v34 = vld [vmem:[%s5588_s8 + $0x18] sm:$0xff] }
 0x33c   :  { %3139 = vmatprep.mubr.f32.mxu0 %v3030_v35  ;;  %v4227_v35 = vpack.c.bf16 %v3419_v32, %v3418_v30  ;;  %4258 = vmatpush3.bf16.msra.mxu0 %v4257_v31  ;;  %v4239_v30 = vpack.c.bf16 %v3425_v28, %v3424_v19  ;;  %v3408_v31 = vld [vmem:[%s5588_s8 + $0x40] sm:$0xff]  ;;  %v3409_v32 = vld [vmem:[%s5588_s8 + $0x48] sm:$0xff] }
 0x33d   :  { %3140 = vmatmul.mubr.f32.gmra.mrb[10].mxu0 %v3029_v33  ;;  %v3402_v33 = vld [vmem:[%s5588_s8 + $0x10] sm:$0xff] }
 0x40c   :  { %v4107_v36 = vpop.f32.mrb[8].mxu0 }
 0x40d   :  { %v4108_v38 = vpop.f32.mrb[9].mxu0 }
 0x40e   :  { %v4109_v39 = vadd.f32 %v4108_v38, %v4107_v36  ;;  %v4229_v36 = vpack.c.bf16 %v3403_v34, %v3402_v33  ;;  %v3451_v38 = vld [vmem:[%s5588_s8 + $0x198] sm:$0xff]  ;;  %v3456_v33 = vld [vmem:[%s5588_s8 + $0x1c0] sm:$0xff]  ;;  %v4241_v34 = vpack.c.bf16 %v3409_v32, %v3408_v31 }
 0x410   :  { %v3137_v40 = vadd.f32 %v4109_v39, %v4068_v37  ;;  %v4110_v41 = vpop.f32.mrb[10].mxu0  ;;  %v3434_v39 = vld [vmem:[%s5588_s8 + $0x110] sm:$0xff] }
 0x411   :  { %v4111_v42 = vpop.f32.mrb[11].mxu0 }
 0x412   :  { %v3147_v43 = vmul.f32 0.5, %v3137_v40  ;;  %v4112_v44 = vadd.f32 %v4111_v42, %v4110_v41  ;;  %v3435_v41 = vld [vmem:[%s5588_s8 + $0x118] sm:$0xff]  ;;  %v3420_v42 = vld [vmem:[%s5588_s8 + $0xa0] sm:$0xff] }
 0x414   :  { %v3149_v45 = vmul.f32 1.442695, %v3147_v43  ;;  %v3142_v46 = vadd.f32 %v4112_v44, %v4068_v37  ;;  %v3450_v37 = vld [vmem:[%s5588_s8 + $0x190] sm:$0xff]  ;;  %v3421_v43 = vld [vmem:[%s5588_s8 + $0xa8] sm:$0xff]  ;;  %v4261_v44 = vpack.c.bf16 %v3435_v41, %v3434_v39  ;;  %v3427_v41 = vld [vmem:[%s5588_s8 + $0xd8] sm:$0xff] }
 0x416   :  { %4955 = vpow2.f32 %v3149_v45  ;;  %v3148_v47 = vmul.f32 0.5, %v3142_v46  ;;  %v4231_v45 = vpack.c.bf16 %v3421_v43, %v3420_v42  ;;  %v3410_v42 = vld [vmem:[%s5588_s8 + $0x50] sm:$0xff] }
 0x418   :  { %v3151_v48 = vmul.f32 1.442695, %v3148_v47  ;;  %v3405_v47 = vld [vmem:[%s5588_s8 + $0x28] sm:$0xff] }
 0x41a   :  { %4957 = vpow2.f32 %v3151_v48  ;;  %v3452_v48 = vld [vmem:[%s5588_s8 + $0x1a0] sm:$0xff] }
 0x420   :  { %v4956_v49 = vpop.eup %4955 }
 0x421   :  { %3155 = vrot.lane.b32.xlu0 %v4956_v49, %s5049_s19  ;;  %v3453_v49 = vld [vmem:[%s5588_s8 + $0x1a8] sm:$0xff] }
 0x424   :  { %v4958_v50 = vpop.eup %4957 }
 0x425   :  { %3157 = vrot.lane.b32.xlu0 %v4958_v50, %s5049_s19  ;;  %v3436_v50 = vld [vmem:[%s5588_s8 + $0x120] sm:$0xff]  ;;  %s5017_s19 = scalar_lea.vmem %s3661_s6, 32 }
 0x426   :  { %p5018_p2 = scmp.ne.s32.totalorder %s3661_s6, %s5017_s19  ;;  %p5023_p4 = scmp.lt.s32.totalorder %s5017_s19, %s5017_s19 }
 0x428   :  { %p5024_p5 = por %p5023_p4, %p5022_p3 }
 0x42a   :  { %p5025_p6 = pnand %p5024_p5, %p5018_p2 }
 0x493   :  { %v3156_v57 = vpop.permute.xlu0 %3155 }
 0x494   :  { %v3161_v58 = vmul.f32 %v3156_v57, %v3145_v52  ;;  %v4263_v57 = vpack.c.bf16 %v3453_v49, %v3452_v48  ;;  %v3442_v49 = vld [vmem:[%s5588_s8 + $0x150] sm:$0xff] }
 0x496   :  { %v3163_v60 = vadd.f32 %v3161_v58, %v3137_v40  ;;  %v4259_v40 = vpack.c.bf16 %v3451_v38, %v3450_v37  ;;  %v3441_v37 = vld [vmem:[%s5588_s8 + $0x148] sm:$0xff] }
 0x497   :  { %v3158_v61 = vpop.permute.xlu0 %3157 }
 0x498   :  { %v4069_v62 = vmul.f32 -1.442695, %v3163_v60  ;;  %v3162_v63 = vmul.f32 %v3158_v61, %v3146_v59  ;;  %4260 = vmatprep.subr.bf16.mxu0 %v4259_v40  ;;  %v5054_v60 = vmov 1983009808   ;;  %v3426_v40 = vld [vmem:[%s5588_s8 + $0xd0] sm:$0xff] }
 0x499   :  { %4262 = vmatpush3.bf16.msra.mxu0 %v4261_v44  ;;  %v3320_v61 = vunpack.c.l.s4 %v5054_v60  ;;  %v4243_v43 = vpack.c.bf16 %v3427_v41, %v3426_v40  ;;  %v3411_v44 = vld [vmem:[%s5588_s8 + $0x58] sm:$0xff] }
 0x49a   :  { %4959 = vpow2.f32 %v4069_v62  ;;  %v3164_v0 = vadd.f32 %v3162_v63, %v3142_v46  ;;  %v3404_v46 = vld [vmem:[%s5588_s8 + $0x20] sm:$0xff]  ;;  %4264 = vmatprep.subr.bf16.mxu0 %v4263_v57 }
 0x49b   :  { %v4233_v52 = vpack.c.bf16 %v3405_v47, %v3404_v46  ;;  %v3459_v46 = vld [vmem:[%s5588_s8 + $0x1d8] sm:$0xff]  ;;  %v4245_v47 = vpack.c.bf16 %v3411_v44, %v3410_v42  ;;  %v3412_v57 = vld [vmem:[%s5588_s8 + $0x60] sm:$0xff] }
 0x49c   :  { %v4070_v1 = vmul.f32 -1.442695, %v3164_v0 }
 0x49e   :  { %4961 = vpow2.f32 %v4070_v1 }
 0x4a4   :  { %v4960_v2 = vpop.eup %4959 }
 0x4a5   :  { %v3171_v3 = vadd.f32 1.0, %v4960_v2  ;;  %v3321_v2 = vunpack.c.0.s8 %v3320_v61  ;;  %v3460_v61 = vld [vmem:[%s5588_s8 + $0x1e0] sm:$0xff] }
 0x4a7   :  { %4963 = vrcp.f32 %v3171_v3  ;;  %v5428_v3 = vsub.s32 %v3321_v2, %v5191_v14  ;;  %v3430_v2 = vld [vmem:[%s5588_s8 + $0xf0] sm:$0xff] }
 0x4a8   :  { %v4962_v55 = vpop.eup %4961 }
 0x4a9   :  { %v3172_v53 = vadd.f32 1.0, %v4962_v55 }
 0x4ab   :  { %4965 = vrcp.f32 %v3172_v53 }
 0x4b1   :  { %v4964_v4 = vpop.eup %4963 }
 0x4b2   :  { %3178 = vst.msk [vmem:[%s5590_s10] sm:$0xff] %vm3177_vm0, %v4964_v4 }
 0x4b5   :  { %v4966_v56 = vpop.eup %4965 }
 0x4b6   :  { %3179 = vst.msk [vmem:[%s5590_s10 + $0x8] sm:$0xff] %vm3177_vm0, %v4966_v56  ;;  %v4349_v5 = vpack.i.bf16 %v4966_v56, %v4964_v4 }
 0x4b8   :  { %4350 = vperm.xlu1 %4348, %v4349_v5  }
 0x537   :  { %v4351_v9 = vpop.permute.xlu1 %4350 }
 0x538   :  { %v4353_v10 = vunpack.i.h.bf16 %v4351_v9  ;;  %v4352_v11 = vunpack.i.l.bf16 %v4351_v9 }
 0x53a   :  { %v3208_v12 = vsel %vm3196_vm7, %v4353_v10, 0.0  ;;  %v3207_v13 = vsel %vm3195_vm6, %v4352_v11, 0.0 }
 0x53b   :  { %v3209_v16 = vpack.c.bf16 %v3208_v12, %v3207_v13 }
 0x53d   :  { %3211 = vxpose.xlu1.c.b16.start.end [1/1] (short) (narrow) %v3209_v16, 16  ;;  %v3422_v16 = vld [vmem:[%s5588_s8 + $0xb0] sm:$0xff] }
 0x5a3   :  { %v3219_v22 = vpop.trf.xlu1 }
 0x5a4   :  { %4071 = vmatmul.mubr.msk.bf16.vlgmr.msra.gmra.mrb[8].mxu1 %vm3227_vm8, %v3219_v22 }
 0x5a5   :  { %3273 = vmatpush1.bf16.msra.mxu1 %v5210_v54  ;;  %3304 = vmatprep.mubr.bf16.mxu1 %v5050_v51  ;;  %v3400_v54 = vld [vmem:[%s5588_s8] sm:$0xff]  ;;  %v3437_v51 = vld [vmem:[%s5588_s8 + $0x128] sm:$0xff] }
 0x5a6   :  { %4185 = vmatprep.subr.bf16.mxu1 %v5051_v6  ;;  %v4225_v18 = vpack.c.bf16 %v3401_v24, %v3400_v54  ;;  %v4265_v58 = vpack.c.bf16 %v3437_v51, %v3436_v50  ;;  %v4237_v54 = vpack.c.bf16 %v3407_v21, %v3406_v20  ;;  %v3455_v24 = vld [vmem:[%s5588_s8 + $0x1b8] sm:$0xff]  ;;  %v3428_v51 = vld [vmem:[%s5588_s8 + $0xe0] sm:$0xff] }
 0x5a7   :  { %v3443_v50 = vld [vmem:[%s5588_s8 + $0x158] sm:$0xff] }
 0x5a8   :  { %4266 = vmatpush3.bf16.msra.mxu0 %v4265_v58  ;;  %v3413_v58 = vld [vmem:[%s5588_s8 + $0x68] sm:$0xff] }
 0x5ac   :  { %4072 = vmatmul.mubr.msk.bf16.vlgmr.msra.gmra.mrb[12].mxu1 %vm3227_vm8, %v3219_v22 }
 0x5ad   :  { %4186 = vmatpush3.bf16.msra.mxu1 %v5052_v17  ;;  %4187 = vmatprep.mubr.msk.bf16.mxu1 %vm5053_vm9, %v5051_v6 }
 0x5ae   :  { %4224 = vmatprep.subr.bf16.mxu1 %v4223_v15  ;;  %v3454_v15 = vld [vmem:[%s5588_s8 + $0x1b0] sm:$0xff] }
 0x5af   :  { %v4267_v27 = vpack.c.bf16 %v3455_v24, %v3454_v15 }
 0x5b1   :  { %4268 = vmatprep.subr.bf16.mxu0 %v4267_v27 }
 0x5b4   :  { %4188 = vmatmul.mubr.msk.bf16.vlgmr.msra.gmra.mrb[16].mxu1 %vm3227_vm8, %v3219_v22  ;;  %v3423_v22 = vld [vmem:[%s5588_s8 + $0xb8] sm:$0xff] }
 0x5b5   :  { %4226 = vmatpush3.bf16.msra.mxu1 %v4225_v18  ;;  %v4235_v17 = vpack.c.bf16 %v3423_v22, %v3422_v16  ;;  %v3439_v18 = vld [vmem:[%s5588_s8 + $0x138] sm:$0xff]  ;;  %v5055_v22 = vmov 269488144  }
 0x5b6   :  { %4228 = vmatprep.subr.bf16.mxu1 %v4227_v35  ;;  %v4269_v29 = vpack.c.bf16 %v3439_v18, %v3438_v25  ;;  %v3457_v35 = vld [vmem:[%s5588_s8 + $0x1c8] sm:$0xff] }
 0x5b7   :  { %v4271_v38 = vpack.c.bf16 %v3457_v35, %v3456_v33 }
 0x5b8   :  { %4270 = vmatpush3.bf16.msra.mxu0 %v4269_v29 }
 0x5b9   :  { %4230 = vmatpush3.bf16.msra.mxu1 %v4229_v36  ;;  %v3440_v36 = vld [vmem:[%s5588_s8 + $0x140] sm:$0xff]  ;;  %4272 = vmatprep.subr.bf16.mxu0 %v4271_v38 }
 0x5ba   :  { %4232 = vmatprep.subr.bf16.mxu1 %v4231_v45  ;;  %v4273_v39 = vpack.c.bf16 %v3441_v37, %v3440_v36  ;;  %v3458_v45 = vld [vmem:[%s5588_s8 + $0x1d0] sm:$0xff] }
 0x5bb   :  { %v4275_v48 = vpack.c.bf16 %v3459_v46, %v3458_v45 }
 0x5bc   :  { %4274 = vmatpush3.bf16.msra.mxu0 %v4273_v39 }
 0x5bd   :  { %4234 = vmatpush3.bf16.msra.mxu1 %v4233_v52  ;;  %v3429_v52 = vld [vmem:[%s5588_s8 + $0xe8] sm:$0xff]  ;;  %4276 = vmatprep.subr.bf16.mxu0 %v4275_v48 }
 0x5be   :  { %4236 = vmatprep.subr.bf16.mxu1 %v4235_v17  ;;  %v4247_v60 = vpack.c.bf16 %v3429_v52, %v3428_v51  ;;  %v3391_v17 = vunpack.c.l.s4 %v5055_v22 }
 0x5c0   :  { %v3392_v20 = vunpack.c.0.s8 %v3391_v17 }
 0x5c1   :  { %4238 = vmatpush3.bf16.msra.mxu1 %v4237_v54 }
 0x5c2   :  { %4240 = vmatprep.subr.bf16.mxu1 %v4239_v30  ;;  %v3395_v21 = vsub.s32 %v3392_v20, %v5191_v14  ;;  %v4074_v30 = vld [vmem:[%s5589_s9] ss:$0 sm:$0xff]  ;;  %s5056_s9 = smov 2  }
 0x5c5   :  { %4242 = vmatpush3.bf16.msra.mxu1 %v4241_v34 }
 0x5c6   :  { %4244 = vmatprep.subr.bf16.mxu1 %v4243_v43 }
 0x5c9   :  { %4246 = vmatpush3.bf16.msra.mxu1 %v4245_v47 }
 0x5ca   :  { %4248 = vmatprep.subr.bf16.mxu1 %v4247_v60 }
 0x677   :  { %v3265_v59 = vpop.f32.mrb[8].mxu1 }
 0x678   :  { %v3267_v62 = vpop.f32.mrb[9].mxu1 }
 0x679   :  { %v3317_v63 = vcombine.low %v3265_v59, %v3267_v62  ;;  %v3269_v0 = vpop.f32.mrb[10].mxu1  ;;  %v4277_v59 = vpack.c.bf16 %v3443_v50, %v3442_v49  ;;  %v3461_v62 = vld [vmem:[%s5588_s8 + $0x1e8] sm:$0xff] }
 0x67a   :  { %v3270_v1 = vpop.f32.mrb[11].mxu1  ;;  %v4279_v0 = vpack.c.bf16 %v3461_v62, %v3460_v61 }
 0x67b   :  { %v5431_v6 = vrot.slane %v3317_v63, %v5428_v3  ;;  %v3444_v63 = vld [vmem:[%s5588_s8 + $0x160] sm:$0xff]  ;;  %v3445_v1 = vld [vmem:[%s5588_s8 + $0x168] sm:$0xff]  ;;  %4278 = vmatpush3.bf16.msra.mxu0 %v4277_v59 }
 0x67c   :  { %4280 = vmatprep.subr.bf16.mxu0 %v4279_v0 }
 0x67f   :  { %v3306_v55 = vpop.f32.mrb[12].mxu1 }
 0x680   :  { %v3308_v53 = vpop.f32.mrb[13].mxu1 }
 0x681   :  { %v3318_v4 = vcombine.low %v3306_v55, %v3308_v53  ;;  %v3310_v56 = vpop.f32.mrb[14].mxu1  ;;  %v3431_v55 = vld [vmem:[%s5588_s8 + $0xf8] sm:$0xff]  ;;  %v4249_v53 = vpack.c.bf16 %v3413_v58, %v3412_v57 }
 0x682   :  { %v3311_v5 = vpop.f32.mrb[15].mxu1  ;;  %v4251_v56 = vpack.c.bf16 %v3431_v55, %v3430_v2 }
 0x683   :  { %v5434_v23 = vrot.slane %v3318_v4, %v5428_v3  ;;  %v3462_v4 = vld [vmem:[%s5588_s8 + $0x1f0] sm:$0xff]  ;;  %4250 = vmatpush3.bf16.msra.mxu1 %v4249_v53 }
 0x684   :  { %v3414_v5 = vld [vmem:[%s5588_s8 + $0x70] sm:$0xff]  ;;  %4252 = vmatprep.subr.bf16.mxu1 %v4251_v56 }
 0x685   :  { %v3333_v26 = vcombine.low %v5431_v6, %v5434_v23 }
 0x687   :  { %v3372_v8 = vpop.f32.mrb[16].mxu1 }
 0x688   :  { %v3378_v9 = vadd.f32 %v3372_v8, %v3337_v7  ;;  %v4189_v10 = vpop.f32.mrb[17].mxu1  ;;  %v3415_v7 = vld [vmem:[%s5588_s8 + $0x78] sm:$0xff] }
 0x689   :  { %v3375_v11 = vpop.f32.mrb[18].mxu1  ;;  %v3463_v8 = vld [vmem:[%s5588_s8 + $0x1f8] sm:$0xff] }
 0x68a   :  { %3380 = vst.msk [vmem:[#allocation3] sm:$0x3] %vm73_vm1, %v3378_v9  ;;  %v4190_v12 = vpop.f32.mrb[19].mxu1  ;;  %v4281_v9 = vpack.c.bf16 %v3445_v1, %v3444_v63  ;;  %v4283_v10 = vpack.c.bf16 %v3463_v8, %v3462_v4  ;;  %v4253_v11 = vpack.c.bf16 %v3415_v7, %v3414_v5 }
 0x68b   :  { %v3446_v12 = vld [vmem:[%s5588_s8 + $0x170] sm:$0xff] }
 0x68c   :  { %4282 = vmatpush3.bf16.msra.mxu0 %v4281_v9  ;;  %4254 = vmatpush3.bf16.msra.mxu1 %v4253_v11 }
 0x68d   :  { %4284 = vmatprep.subr.bf16.mxu0 %v4283_v10 }
 0x691   :  { %v3385_v13 = vld [vmem:[#allocation3] sm:$0x3] }
 0x692   :  { %3388 = vperm.xlu0 %4354, %v3385_v13   ;;  %v3447_v13 = vld [vmem:[%s5588_s8 + $0x178] sm:$0xff] }
 0x693   :  { %v4285_v16 = vpack.c.bf16 %v3447_v13, %v3446_v12 }
 0x695   :  { %4286 = vmatpush3.bf16.msra.mxu0 %v4285_v16 }
 0x711   :  { %v3389_v54 = vpop.permute.xlu0 %3388 }
 0x712   :  { %v3396_v15 = vrot.slane %v3389_v54, %v3395_v21 }
 0x714   :  { %4967 = vrcp.f32 %v3396_v15 }
 0x71e   :  { %v4968_v24 = vpop.eup %4967 }
 0x71f   :  { %v3399_v25 = vmul.f32 %v4968_v24, %v3333_v26 }
 0x721   :  { %v3479_v27 = vrot.slane %v3399_v25, %v5428_v3  ;;  %v3472_v18 = vcombine.high %v3399_v25, %v3399_v25 }
 0x723   :  { %v3487_v19 = vcombine.high %v3479_v27, %v3479_v27  ;;  %v3486_v28 = vrot.slane %v3472_v18, %v5428_v3 }
 0x725   :  { %3557 = vmatprep.mubr.f32.mxu1 %v3487_v19  ;;  %v3488_v29 = vcombine.high %v3486_v28, %v3486_v28 }
 0x726   :  { %3558 = vmatmul.mubr.f32.vlgmr.msra.gmra.mrb[20].mxu1 %v3479_v27 }
 0x727   :  { %3627 = vmatprep.mubr.f32.mxu0 %v3488_v29 }
 0x728   :  { %3628 = vmatmul.mubr.f32.vlgmr.msra.gmra.mrb[12].mxu0 %v3486_v28 }
 0x7f9   :  { %v4147_v14 = vpop.f32.mrb[20].mxu1 }
 0x7fa   :  { %v4148_v31 = vpop.f32.mrb[21].mxu1 }
 0x7fb   :  { %v4149_v32 = vadd.f32 %v4148_v31, %v4147_v14  ;;  %v4182_v6 = vpop.f32.mrb[12].mxu0 }
 0x7fc   :  { %v4183_v23 = vpop.f32.mrb[13].mxu0 }
 0x7fd   :  { %v3560_v26 = vadd.f32 %v4149_v32, %v4074_v30  ;;  %v4184_v33 = vadd.f32 %v4183_v23, %v4182_v6 }
 0x7ff   :  { %v3630_v34 = vadd.f32 %v4184_v33, %v3560_v26 }
 0x801   :  { %v3635_v35 = vsel %vm3633_vm10, %v3630_v34, -inf  ;;  %3634 = vst.msk [vmem:[#allocation9] sm:$0x3] %vm3633_vm10, %v3630_v34 }
 0x802   :  { %3636 = vmax.xlane.f32.xlu0 %v3635_v35 }
 0x88f   :  { %v3637_v3 = vpop.xlane.xlu0 %3636 }
 0x890   :  { %v3638_v36 = vsub.f32 %v3630_v34, %v3637_v3 }
 0x892   :  { %v3639_v37 = vmul.f32 1.442695, %v3638_v36 }
 0x894   :  { %4969 = vpow2.f32 %v3639_v37 }
 0x89e   :  { %v4970_v38 = vpop.eup %4969 }
 0x89f   :  { %v3641_v39 = vsel %vm3633_vm10, %v4970_v38, 0.0 }
 0x8a0   :  { %3642 = vadd.xlane.f32.xlu1 %v3641_v39 }
 0x92d   :  { %v3643_v40 = vpop.xlane.xlu1 %3642 }
 0x92e   :  { %4971 = vrcp.f32 %v3643_v40 }
 0x938   :  { %v4972_v41 = vpop.eup %4971 }
 0x939   :  { %v3645_v42 = vmul.f32 %v4972_v41, %v4970_v38 }
 0x93b   :  { %3647 = vrot.lane.b32.xlu0 %v3645_v42, %s5056_s9 }
 0x9ad   :  { %v3648_v43 = vpop.permute.xlu0 %3647 }
 0x9ae   :  { %3651 = vst.msk [vmem:[#allocation9] sm:$0x3] %vm3650_vm11, %v3648_v43 }
 0x9af   :  { %5028 = shalt.err (!%p5025_p6)
}
 0x9b0   :  { %s5029_s20 = scalar_lea.hbm %s5591_s11, 32 }
 0x9b1   :  { %p5030_p7 = scmp.ne.s32.totalorder %s5591_s11, %s5029_s20  ;;  %p5033_p8 = scmp.lt.u32.totalorder %s5029_s20, %s5591_s11 }
 0x9b3   :  { %p5035_p9 = pnand %p5033_p8, %p5030_p7 }
 0x9b5   :  { %5038 = shalt.err (!%p5035_p9)
}
 0x9b6   :  { %3663 = dma.vmem_to_hbm [thread:$0]  %s3661_s6, 32, %s5591_s11, [#allocation6]  }
 0x9b7   :  { %5043 = dma.done.wait [#allocation6], 32  }
 0x9b8   :  { %5044 = vsyncadd [#allocation6], 4294967264 }
 0x9b9   :  { %3669 = vsyncpa [#allocation5], 1 }
 0x9ba   :  { %3670 = vsyncpa [#allocation8], 1 }
 0x9bb   :  { %3671 = vsyncpa [#allocation6], 1 }

</bundles_post_ra>
